<compile_context>
chip_gen: v7x
topology: tpu7x:2x2x1
jax: 0.10.0
libtpu: 0.0.40
codegen_flags: <defaults>
</compile_context>

<pallas_src>
import functools

import numpy as np
import jax
import jax.numpy as jnp
from jax import lax
from jax.experimental import pallas as pl
from jax.experimental.pallas import tpu as pltpu

# Fixed SimpleCNN geometry (fc1 = Linear(32*8*8, 128) implies a 32x32 input).
H1 = W1 = 32          # conv1 spatial
C1 = 16               # conv1 out channels
H2 = W2 = 16          # pooled-1 / conv2 spatial
C2 = 32               # conv2 out channels
P2H = P2W = 8         # pooled-2 spatial
NH = 128              # fc1 hidden
NCP = 128             # fc2 output padded to a full lane width


# ---------------------------------------------------------------------------
# The fused Pallas kernel: one image per grid step, everything stays in VMEM.
# ---------------------------------------------------------------------------
def _simple_cnn_kernel(x_ref, m1_ref, b1_ref, m2_ref, b2_ref,
                       sh1_ref, sv1_ref, sh2_ref, sv2_ref,
                       wf1_ref, bf1_ref, wf2_ref, bf2_ref,
                       out_ref, *, cin):
    f32, bf16 = jnp.float32, jnp.bfloat16

    # ---- conv1 + bias + ReLU (banded/Toeplitz matmuls, f32 accumulation) ----
    acc1 = jnp.zeros((H1, W1 * C1), f32)
    for c in range(cin):
        xc = x_ref[0, c]                                    # (H1+2, W1) f32
        for ky in range(3):
            acc1 += jnp.dot(xc[ky:ky + H1, :].astype(bf16),
                            m1_ref[c * 3 + ky],
                            preferred_element_type=f32)
    a1 = jnp.maximum(acc1 + b1_ref[...], 0.0).astype(bf16)  # (32, 512)

    # ---- maxpool-1 (exact 0/1 selection matmuls + elementwise max).
    #      sv1 also writes the zero border rows conv2's padding needs. ----
    h1 = jnp.maximum(jnp.dot(a1, sh1_ref[0], preferred_element_type=f32),
                     jnp.dot(a1, sh1_ref[1], preferred_element_type=f32)
                     ).astype(bf16)                          # (32, 256)
    p1 = jnp.maximum(jnp.dot(sv1_ref[0], h1, preferred_element_type=f32),
                     jnp.dot(sv1_ref[1], h1, preferred_element_type=f32))
    # p1: (18, 256) f32, rows 0 and 17 are the zero padding for conv2.

    # ---- conv2 + bias + ReLU ----
    acc2 = jnp.zeros((H2, W2 * C2), f32)
    for ky in range(3):
        acc2 += jnp.dot(p1[ky:ky + H2, :].astype(bf16), m2_ref[ky],
                        preferred_element_type=f32)
    a2 = jnp.maximum(acc2 + b2_ref[...], 0.0).astype(bf16)  # (16, 512)

    # ---- maxpool-2 ----
    h2 = jnp.maximum(jnp.dot(a2, sh2_ref[0], preferred_element_type=f32),
                     jnp.dot(a2, sh2_ref[1], preferred_element_type=f32)
                     ).astype(bf16)                          # (16, 256)
    p2 = jnp.maximum(jnp.dot(sv2_ref[0], h2, preferred_element_type=f32),
                     jnp.dot(sv2_ref[1], h2, preferred_element_type=f32))
    # p2: (8, 256) f32, layout (y, x*32 + c) == NHWC.

    # ---- fc1 + ReLU + fc2 (weights pre-permuted to our NHWC lane layout) ----
    hacc = jnp.zeros((1, NH), f32)
    for y in range(P2H):
        hacc += jnp.dot(p2[y:y + 1, :].astype(bf16), wf1_ref[y],
                        preferred_element_type=f32)
    h = jnp.maximum(hacc + bf1_ref[...], 0.0).astype(bf16)   # (1, 128)
    logits = jnp.dot(h, wf2_ref[...], preferred_element_type=f32) + bf2_ref[...]
    out_ref[0] = logits.astype(out_ref.dtype)                # lane-dense (1, 128)


# ---------------------------------------------------------------------------
# One-time parameter packing: PyTorch-layout weights -> banded conv matrices,
# pooling selectors and permuted FC weights (all bf16 except the f32 biases).
# ---------------------------------------------------------------------------
def pack_params(tp):
    w1 = np.asarray(tp["conv1_w"], np.float32)     # (C1, Cin, 3, 3)
    b1 = np.asarray(tp["conv1_b"], np.float32)
    w2 = np.asarray(tp["conv2_w"], np.float32)     # (C2, C1, 3, 3)
    b2 = np.asarray(tp["conv2_b"], np.float32)
    f1w = np.asarray(tp["fc1_w"], np.float32)      # (NH, C2*8*8)
    f1b = np.asarray(tp["fc1_b"], np.float32)
    f2w = np.asarray(tp["fc2_w"], np.float32)      # (nc, NH)
    f2b = np.asarray(tp["fc2_b"], np.float32)
    cin, nc = w1.shape[1], f2w.shape[0]

    # conv1 banded matrices: m1[c*3+ky][xi, xo*C1+o] = w1[o,c,ky,kx], kx = xi-xo+1
    m1 = np.zeros((cin * 3, W1, W1 * C1), np.float32)
    for c in range(cin):
        for ky in range(3):
            for xo in range(W1):
                for kx in range(3):
                    xi = xo + kx - 1
                    if 0 <= xi < W1:
                        m1[c * 3 + ky, xi, xo * C1:(xo + 1) * C1] = w1[:, c, ky, kx]
    b1t = np.tile(b1, W1)[None, :]                 # (1, 512)

    # conv2 banded matrices over pooled-1 layout (xi*C1 + c)
    m2 = np.zeros((3, W2 * C1, W2 * C2), np.float32)
    for ky in range(3):
        for xo in range(W2):
            for kx in range(3):
                xi = xo + kx - 1
                if 0 <= xi < W2:
                    for c in range(C1):
                        m2[ky, xi * C1 + c, xo * C2:(xo + 1) * C2] = w2[:, c, ky, kx]
    b2t = np.tile(b2, W2)[None, :]                 # (1, 512)

    # maxpool-1 selectors (horizontal pair pick, vertical pair pick + zero pad rows)
    sh1 = np.zeros((2, W1 * C1, W2 * C1), np.float32)
    for xp in range(W2):
        for o in range(C1):
            sh1[0, (2 * xp) * C1 + o, xp * C1 + o] = 1.0
            sh1[1, (2 * xp + 1) * C1 + o, xp * C1 + o] = 1.0
    sv1 = np.zeros((2, H2 + 2, H1), np.float32)    # rows 0 / 17 stay zero = conv2 pad
    for yp in range(H2):
        sv1[0, yp + 1, 2 * yp] = 1.0
        sv1[1, yp + 1, 2 * yp + 1] = 1.0

    # maxpool-2 selectors
    sh2 = np.zeros((2, W2 * C2, P2W * C2), np.float32)
    for xp in range(P2W):
        for o in range(C2):
            sh2[0, (2 * xp) * C2 + o, xp * C2 + o] = 1.0
            sh2[1, (2 * xp + 1) * C2 + o, xp * C2 + o] = 1.0
    sv2 = np.zeros((2, P2H, H2), np.float32)
    for yp in range(P2H):
        sv2[0, yp, 2 * yp] = 1.0
        sv2[1, yp, 2 * yp + 1] = 1.0

    # fc1: permute rows so our NHWC lane flatten (y, x, c) matches PyTorch's
    # NCHW x.view(B,-1) flatten (c*64 + y*8 + x).
    wf1r = f1w.reshape(NH, C2, P2H, P2W)           # (j, c, y, x)
    wf1r = np.transpose(wf1r, (2, 3, 1, 0))        # (y, x, c, j)
    wf1r = wf1r.reshape(P2H, P2W * C2, NH)         # (8, 256, 128)

    # fc2 padded to a full 128-lane output (extra columns are zero).
    wf2p = np.zeros((NH, NCP), np.float32)
    wf2p[:, :nc] = f2w.T
    bf2p = np.zeros((1, NCP), np.float32)
    bf2p[0, :nc] = f2b

    bf16, f32 = jnp.bfloat16, jnp.float32
    return dict(
        m1=jnp.asarray(m1, bf16), b1t=jnp.asarray(b1t, f32),
        m2=jnp.asarray(m2, bf16), b2t=jnp.asarray(b2t, f32),
        sh1=jnp.asarray(sh1, bf16), sv1=jnp.asarray(sv1, bf16),
        sh2=jnp.asarray(sh2, bf16), sv2=jnp.asarray(sv2, bf16),
        wf1r=jnp.asarray(wf1r, bf16), bf1=jnp.asarray(f1b[None, :], f32),
        wf2p=jnp.asarray(wf2p, bf16), bf2p=jnp.asarray(bf2p, f32),
    )


# ---------------------------------------------------------------------------
# Forward wrapper: pad the input vertically, launch the single fused kernel.
# ---------------------------------------------------------------------------
@functools.partial(jax.jit, static_argnames=("num_classes",))
def simple_cnn_forward(x_nchw, packed, num_classes=10):
    B, cin, hh, ww = x_nchw.shape
    assert (hh, ww) == (H1, W1), "SimpleCNN's fc1 implies a 32x32 spatial input"
    assert num_classes <= NCP

    xpad = jnp.pad(x_nchw.astype(jnp.float32), ((0, 0), (0, 0), (1, 1), (0, 0)))

    def resident(arr):  # full-array block, fetched once and kept in VMEM
        nd = arr.ndim
        return pl.BlockSpec(arr.shape, lambda i, _n=nd: (0,) * _n)

    w_names = ("m1", "b1t", "m2", "b2t", "sh1", "sv1", "sh2", "sv2",
               "wf1r", "bf1", "wf2p", "bf2p")
    w_args = [packed[k] for k in w_names]

    out = pl.pallas_call(
        functools.partial(_simple_cnn_kernel, cin=cin),
        out_shape=jax.ShapeDtypeStruct((B, 1, NCP), jnp.float32),
        grid=(B,),
        in_specs=[pl.BlockSpec((1, cin, H1 + 2, W1), lambda i: (i, 0, 0, 0))]
                 + [resident(a) for a in w_args],
        out_specs=pl.BlockSpec((1, 1, NCP), lambda i: (i, 0, 0)),
        compiler_params=pltpu.CompilerParams(
            dimension_semantics=("parallel",)),
    )(xpad, *w_args)
    return out[:, 0, :num_classes]


# ---------------------------------------------------------------------------
# Plain-JAX reference (f32) of the exact PyTorch forward, used for self-check.
# ---------------------------------------------------------------------------
def reference_forward(x, tp):
    hp = lax.Precision.HIGHEST
    y = lax.conv_general_dilated(x, tp["conv1_w"], (1, 1), ((1, 1), (1, 1)),
                                 dimension_numbers=("NCHW", "OIHW", "NCHW"),
                                 precision=hp)
    y = jax.nn.relu(y + tp["conv1_b"][None, :, None, None])
    y = lax.reduce_window(y, -jnp.inf, lax.max, (1, 1, 2, 2), (1, 1, 2, 2), "VALID")
    y = lax.conv_general_dilated(y, tp["conv2_w"], (1, 1), ((1, 1), (1, 1)),
                                 dimension_numbers=("NCHW", "OIHW", "NCHW"),
                                 precision=hp)
    y = jax.nn.relu(y + tp["conv2_b"][None, :, None, None])
    y = lax.reduce_window(y, -jnp.inf, lax.max, (1, 1, 2, 2), (1, 1, 2, 2), "VALID")
    y = y.reshape(y.shape[0], -1)
    y = jax.nn.relu(jnp.dot(y, tp["fc1_w"].T, precision=hp) + tp["fc1_b"])
    return jnp.dot(y, tp["fc2_w"].T, precision=hp) + tp["fc2_b"]


def init_torch_like_params(key, input_channels=3, num_classes=10):
    ks = jax.random.split(key, 8)
    s = 0.05
    return dict(
        conv1_w=s * jax.random.normal(ks[0], (C1, input_channels, 3, 3), jnp.float32),
        conv1_b=s * jax.random.normal(ks[1], (C1,), jnp.float32),
        conv2_w=s * jax.random.normal(ks[2], (C2, C1, 3, 3), jnp.float32),
        conv2_b=s * jax.random.normal(ks[3], (C2,), jnp.float32),
        fc1_w=s * jax.random.normal(ks[4], (NH, C2 * P2H * P2W), jnp.float32),
        fc1_b=s * jax.random.normal(ks[5], (NH,), jnp.float32),
        fc2_w=s * jax.random.normal(ks[6], (num_classes, NH), jnp.float32),
        fc2_b=s * jax.random.normal(ks[7], (num_classes,), jnp.float32),
    )


if __name__ == "__main__":
    key = jax.random.PRNGKey(0)
    kx, kp = jax.random.split(key)
    # fc1 = Linear(32*8*8, 128) implies 32x32 spatial input (32 -> 16 -> 8 after pools).
    x = jax.random.normal(kx, (2, 3, 32, 32), jnp.float32)

    tparams = init_torch_like_params(kp)
    packed = pack_params(tparams)

    logits = simple_cnn_forward(x, packed)
    logits = jax.block_until_ready(logits)
    assert logits.shape == (2, 10) and logits.dtype == jnp.float32

    # Self-check against the f32 reference (kernel uses bf16 MXU inputs).
    ref = reference_forward(x, tparams)
    np.testing.assert_allclose(np.asarray(logits), np.asarray(ref),
                               atol=2e-2, rtol=2e-2)
    print("KERNEL_OK")
</pallas_src>

<mosaic_0001>
module attributes {stable_mosaic.version = 11 : i64} {
  func.func @_simple_cnn_kernel(%arg0: i32, %arg1: memref<1x3x34x32xf32, #tpu.memory_space<vmem>>, %arg2: memref<9x32x512xbf16, #tpu.memory_space<vmem>>, %arg3: memref<1x512xf32, #tpu.memory_space<vmem>>, %arg4: memref<3x256x512xbf16, #tpu.memory_space<vmem>>, %arg5: memref<1x512xf32, #tpu.memory_space<vmem>>, %arg6: memref<2x512x256xbf16, #tpu.memory_space<vmem>>, %arg7: memref<2x18x32xbf16, #tpu.memory_space<vmem>>, %arg8: memref<2x512x256xbf16, #tpu.memory_space<vmem>>, %arg9: memref<2x8x16xbf16, #tpu.memory_space<vmem>>, %arg10: memref<8x256x128xbf16, #tpu.memory_space<vmem>>, %arg11: memref<1x128xf32, #tpu.memory_space<vmem>>, %arg12: memref<128x128xbf16, #tpu.memory_space<vmem>>, %arg13: memref<1x128xf32, #tpu.memory_space<vmem>>, %arg14: memref<1x1x128xf32, #tpu.memory_space<vmem>>) attributes {dimension_semantics = [#tpu.dimension_semantics<parallel>], iteration_bounds = array<i64: 2>, scalar_prefetch = 0 : i64, scratch_operands = 0 : i64, tpu.core_type = #tpu.core_type<tc>, window_params = [{transform_indices = @transform_0, window_bounds = array<i64: 1, 3, 34, 32>}, {pipeline_mode = #tpu.pipeline_mode<synchronous>, transform_indices = @transform_1, window_bounds = array<i64: 9, 32, 512>}, {pipeline_mode = #tpu.pipeline_mode<synchronous>, transform_indices = @transform_2, window_bounds = array<i64: 1, 512>}, {pipeline_mode = #tpu.pipeline_mode<synchronous>, transform_indices = @transform_3, window_bounds = array<i64: 3, 256, 512>}, {pipeline_mode = #tpu.pipeline_mode<synchronous>, transform_indices = @transform_4, window_bounds = array<i64: 1, 512>}, {pipeline_mode = #tpu.pipeline_mode<synchronous>, transform_indices = @transform_5, window_bounds = array<i64: 2, 512, 256>}, {pipeline_mode = #tpu.pipeline_mode<synchronous>, transform_indices = @transform_6, window_bounds = array<i64: 2, 18, 32>}, {pipeline_mode = #tpu.pipeline_mode<synchronous>, transform_indices = @transform_7, window_bounds = array<i64: 2, 512, 256>}, {pipeline_mode = #tpu.pipeline_mode<synchronous>, transform_indices = @transform_8, window_bounds = array<i64: 2, 8, 16>}, {pipeline_mode = #tpu.pipeline_mode<synchronous>, transform_indices = @transform_9, window_bounds = array<i64: 8, 256, 128>}, {pipeline_mode = #tpu.pipeline_mode<synchronous>, transform_indices = @transform_10, window_bounds = array<i64: 1, 128>}, {pipeline_mode = #tpu.pipeline_mode<synchronous>, transform_indices = @transform_11, window_bounds = array<i64: 128, 128>}, {pipeline_mode = #tpu.pipeline_mode<synchronous>, transform_indices = @transform_12, window_bounds = array<i64: 1, 128>}, {transform_indices = @transform_13, window_bounds = array<i64: 1, 1, 128>}]} {
    %cst = arith.constant 0.000000e+00 : f32
    %0 = vector.broadcast %cst : f32 to vector<32x512xf32>
    %c0 = arith.constant 0 : index
    %c0_0 = arith.constant 0 : index
    %c0_1 = arith.constant 0 : index
    %c0_2 = arith.constant 0 : index
    %1 = vector.load %arg1[%c0, %c0_0, %c0_1, %c0_2] : memref<1x3x34x32xf32, #tpu.memory_space<vmem>>, vector<1x1x34x32xf32>
    %2 = vector.shape_cast %1 : vector<1x1x34x32xf32> to vector<34x32xf32>
    %3 = vector.extract_strided_slice %2 {offsets = [0, 0], sizes = [32, 32], strides = [1, 1]} : vector<34x32xf32> to vector<32x32xf32>
    %4 = arith.truncf %3 : vector<32x32xf32> to vector<32x32xbf16>
    %c0_3 = arith.constant 0 : index
    %c0_4 = arith.constant 0 : index
    %c0_5 = arith.constant 0 : index
    %5 = vector.load %arg2[%c0_3, %c0_4, %c0_5] : memref<9x32x512xbf16, #tpu.memory_space<vmem>>, vector<1x32x512xbf16>
    %6 = vector.shape_cast %5 : vector<1x32x512xbf16> to vector<32x512xbf16>
    %cst_6 = arith.constant dense<0.000000e+00> : vector<32x512xf32>
    %7 = tpu.matmul %4, %6, %cst_6 {dimension_numbers = #tpu.dot_dimension_numbers<[1], [0], [0], [1], [0, 0, 1, 1], [], []>} : vector<32x32xbf16>, vector<32x512xbf16>, vector<32x512xf32> -> vector<32x512xf32>
    %8 = arith.addf %0, %7 : vector<32x512xf32>
    %9 = vector.extract_strided_slice %2 {offsets = [1, 0], sizes = [32, 32], strides = [1, 1]} : vector<34x32xf32> to vector<32x32xf32>
    %10 = arith.truncf %9 : vector<32x32xf32> to vector<32x32xbf16>
    %c1 = arith.constant 1 : index
    %c0_7 = arith.constant 0 : index
    %c0_8 = arith.constant 0 : index
    %11 = vector.load %arg2[%c1, %c0_7, %c0_8] : memref<9x32x512xbf16, #tpu.memory_space<vmem>>, vector<1x32x512xbf16>
    %12 = vector.shape_cast %11 : vector<1x32x512xbf16> to vector<32x512xbf16>
    %cst_9 = arith.constant dense<0.000000e+00> : vector<32x512xf32>
    %13 = tpu.matmul %10, %12, %cst_9 {dimension_numbers = #tpu.dot_dimension_numbers<[1], [0], [0], [1], [0, 0, 1, 1], [], []>} : vector<32x32xbf16>, vector<32x512xbf16>, vector<32x512xf32> -> vector<32x512xf32>
    %14 = arith.addf %8, %13 : vector<32x512xf32>
    %15 = vector.extract_strided_slice %2 {offsets = [2, 0], sizes = [32, 32], strides = [1, 1]} : vector<34x32xf32> to vector<32x32xf32>
    %16 = arith.truncf %15 : vector<32x32xf32> to vector<32x32xbf16>
    %c2 = arith.constant 2 : index
    %c0_10 = arith.constant 0 : index
    %c0_11 = arith.constant 0 : index
    %17 = vector.load %arg2[%c2, %c0_10, %c0_11] : memref<9x32x512xbf16, #tpu.memory_space<vmem>>, vector<1x32x512xbf16>
    %18 = vector.shape_cast %17 : vector<1x32x512xbf16> to vector<32x512xbf16>
    %cst_12 = arith.constant dense<0.000000e+00> : vector<32x512xf32>
    %19 = tpu.matmul %16, %18, %cst_12 {dimension_numbers = #tpu.dot_dimension_numbers<[1], [0], [0], [1], [0, 0, 1, 1], [], []>} : vector<32x32xbf16>, vector<32x512xbf16>, vector<32x512xf32> -> vector<32x512xf32>
    %20 = arith.addf %14, %19 : vector<32x512xf32>
    %c0_13 = arith.constant 0 : index
    %c1_14 = arith.constant 1 : index
    %c0_15 = arith.constant 0 : index
    %c0_16 = arith.constant 0 : index
    %21 = vector.load %arg1[%c0_13, %c1_14, %c0_15, %c0_16] : memref<1x3x34x32xf32, #tpu.memory_space<vmem>>, vector<1x1x34x32xf32>
    %22 = vector.shape_cast %21 : vector<1x1x34x32xf32> to vector<34x32xf32>
    %23 = vector.extract_strided_slice %22 {offsets = [0, 0], sizes = [32, 32], strides = [1, 1]} : vector<34x32xf32> to vector<32x32xf32>
    %24 = arith.truncf %23 : vector<32x32xf32> to vector<32x32xbf16>
    %c3 = arith.constant 3 : index
    %c0_17 = arith.constant 0 : index
    %c0_18 = arith.constant 0 : index
    %25 = vector.load %arg2[%c3, %c0_17, %c0_18] : memref<9x32x512xbf16, #tpu.memory_space<vmem>>, vector<1x32x512xbf16>
    %26 = vector.shape_cast %25 : vector<1x32x512xbf16> to vector<32x512xbf16>
    %cst_19 = arith.constant dense<0.000000e+00> : vector<32x512xf32>
    %27 = tpu.matmul %24, %26, %cst_19 {dimension_numbers = #tpu.dot_dimension_numbers<[1], [0], [0], [1], [0, 0, 1, 1], [], []>} : vector<32x32xbf16>, vector<32x512xbf16>, vector<32x512xf32> -> vector<32x512xf32>
    %28 = arith.addf %20, %27 : vector<32x512xf32>
    %29 = vector.extract_strided_slice %22 {offsets = [1, 0], sizes = [32, 32], strides = [1, 1]} : vector<34x32xf32> to vector<32x32xf32>
    %30 = arith.truncf %29 : vector<32x32xf32> to vector<32x32xbf16>
    %c4 = arith.constant 4 : index
    %c0_20 = arith.constant 0 : index
    %c0_21 = arith.constant 0 : index
    %31 = vector.load %arg2[%c4, %c0_20, %c0_21] : memref<9x32x512xbf16, #tpu.memory_space<vmem>>, vector<1x32x512xbf16>
    %32 = vector.shape_cast %31 : vector<1x32x512xbf16> to vector<32x512xbf16>
    %cst_22 = arith.constant dense<0.000000e+00> : vector<32x512xf32>
    %33 = tpu.matmul %30, %32, %cst_22 {dimension_numbers = #tpu.dot_dimension_numbers<[1], [0], [0], [1], [0, 0, 1, 1], [], []>} : vector<32x32xbf16>, vector<32x512xbf16>, vector<32x512xf32> -> vector<32x512xf32>
    %34 = arith.addf %28, %33 : vector<32x512xf32>
    %35 = vector.extract_strided_slice %22 {offsets = [2, 0], sizes = [32, 32], strides = [1, 1]} : vector<34x32xf32> to vector<32x32xf32>
    %36 = arith.truncf %35 : vector<32x32xf32> to vector<32x32xbf16>
    %c5 = arith.constant 5 : index
    %c0_23 = arith.constant 0 : index
    %c0_24 = arith.constant 0 : index
    %37 = vector.load %arg2[%c5, %c0_23, %c0_24] : memref<9x32x512xbf16, #tpu.memory_space<vmem>>, vector<1x32x512xbf16>
    %38 = vector.shape_cast %37 : vector<1x32x512xbf16> to vector<32x512xbf16>
    %cst_25 = arith.constant dense<0.000000e+00> : vector<32x512xf32>
    %39 = tpu.matmul %36, %38, %cst_25 {dimension_numbers = #tpu.dot_dimension_numbers<[1], [0], [0], [1], [0, 0, 1, 1], [], []>} : vector<32x32xbf16>, vector<32x512xbf16>, vector<32x512xf32> -> vector<32x512xf32>
    %40 = arith.addf %34, %39 : vector<32x512xf32>
    %c0_26 = arith.constant 0 : index
    %c2_27 = arith.constant 2 : index
    %c0_28 = arith.constant 0 : index
    %c0_29 = arith.constant 0 : index
    %41 = vector.load %arg1[%c0_26, %c2_27, %c0_28, %c0_29] : memref<1x3x34x32xf32, #tpu.memory_space<vmem>>, vector<1x1x34x32xf32>
    %42 = vector.shape_cast %41 : vector<1x1x34x32xf32> to vector<34x32xf32>
    %43 = vector.extract_strided_slice %42 {offsets = [0, 0], sizes = [32, 32], strides = [1, 1]} : vector<34x32xf32> to vector<32x32xf32>
    %44 = arith.truncf %43 : vector<32x32xf32> to vector<32x32xbf16>
    %c6 = arith.constant 6 : index
    %c0_30 = arith.constant 0 : index
    %c0_31 = arith.constant 0 : index
    %45 = vector.load %arg2[%c6, %c0_30, %c0_31] : memref<9x32x512xbf16, #tpu.memory_space<vmem>>, vector<1x32x512xbf16>
    %46 = vector.shape_cast %45 : vector<1x32x512xbf16> to vector<32x512xbf16>
    %cst_32 = arith.constant dense<0.000000e+00> : vector<32x512xf32>
    %47 = tpu.matmul %44, %46, %cst_32 {dimension_numbers = #tpu.dot_dimension_numbers<[1], [0], [0], [1], [0, 0, 1, 1], [], []>} : vector<32x32xbf16>, vector<32x512xbf16>, vector<32x512xf32> -> vector<32x512xf32>
    %48 = arith.addf %40, %47 : vector<32x512xf32>
    %49 = vector.extract_strided_slice %42 {offsets = [1, 0], sizes = [32, 32], strides = [1, 1]} : vector<34x32xf32> to vector<32x32xf32>
    %50 = arith.truncf %49 : vector<32x32xf32> to vector<32x32xbf16>
    %c7 = arith.constant 7 : index
    %c0_33 = arith.constant 0 : index
    %c0_34 = arith.constant 0 : index
    %51 = vector.load %arg2[%c7, %c0_33, %c0_34] : memref<9x32x512xbf16, #tpu.memory_space<vmem>>, vector<1x32x512xbf16>
    %52 = vector.shape_cast %51 : vector<1x32x512xbf16> to vector<32x512xbf16>
    %cst_35 = arith.constant dense<0.000000e+00> : vector<32x512xf32>
    %53 = tpu.matmul %50, %52, %cst_35 {dimension_numbers = #tpu.dot_dimension_numbers<[1], [0], [0], [1], [0, 0, 1, 1], [], []>} : vector<32x32xbf16>, vector<32x512xbf16>, vector<32x512xf32> -> vector<32x512xf32>
    %54 = arith.addf %48, %53 : vector<32x512xf32>
    %55 = vector.extract_strided_slice %42 {offsets = [2, 0], sizes = [32, 32], strides = [1, 1]} : vector<34x32xf32> to vector<32x32xf32>
    %56 = arith.truncf %55 : vector<32x32xf32> to vector<32x32xbf16>
    %c8 = arith.constant 8 : index
    %c0_36 = arith.constant 0 : index
    %c0_37 = arith.constant 0 : index
    %57 = vector.load %arg2[%c8, %c0_36, %c0_37] : memref<9x32x512xbf16, #tpu.memory_space<vmem>>, vector<1x32x512xbf16>
    %58 = vector.shape_cast %57 : vector<1x32x512xbf16> to vector<32x512xbf16>
    %cst_38 = arith.constant dense<0.000000e+00> : vector<32x512xf32>
    %59 = tpu.matmul %56, %58, %cst_38 {dimension_numbers = #tpu.dot_dimension_numbers<[1], [0], [0], [1], [0, 0, 1, 1], [], []>} : vector<32x32xbf16>, vector<32x512xbf16>, vector<32x512xf32> -> vector<32x512xf32>
    %60 = arith.addf %54, %59 : vector<32x512xf32>
    %c0_39 = arith.constant 0 : index
    %c0_40 = arith.constant 0 : index
    %61 = vector.load %arg3[%c0_39, %c0_40] : memref<1x512xf32, #tpu.memory_space<vmem>>, vector<1x512xf32>
    %62 = vector.broadcast %61 : vector<1x512xf32> to vector<32x512xf32>
    %63 = arith.addf %60, %62 : vector<32x512xf32>
    %cst_41 = arith.constant 0.000000e+00 : f32
    %64 = vector.broadcast %cst_41 : f32 to vector<32x512xf32>
    %65 = arith.maximumf %63, %64 : vector<32x512xf32>
    %66 = arith.truncf %65 : vector<32x512xf32> to vector<32x512xbf16>
    %c0_42 = arith.constant 0 : index
    %c0_43 = arith.constant 0 : index
    %c0_44 = arith.constant 0 : index
    %67 = vector.load %arg6[%c0_42, %c0_43, %c0_44] : memref<2x512x256xbf16, #tpu.memory_space<vmem>>, vector<1x512x256xbf16>
    %68 = vector.shape_cast %67 : vector<1x512x256xbf16> to vector<512x256xbf16>
    %cst_45 = arith.constant dense<0.000000e+00> : vector<32x256xf32>
    %69 = tpu.matmul %66, %68, %cst_45 {dimension_numbers = #tpu.dot_dimension_numbers<[1], [0], [0], [1], [0, 0, 1, 1], [], []>} : vector<32x512xbf16>, vector<512x256xbf16>, vector<32x256xf32> -> vector<32x256xf32>
    %c1_46 = arith.constant 1 : index
    %c0_47 = arith.constant 0 : index
    %c0_48 = arith.constant 0 : index
    %70 = vector.load %arg6[%c1_46, %c0_47, %c0_48] : memref<2x512x256xbf16, #tpu.memory_space<vmem>>, vector<1x512x256xbf16>
    %71 = vector.shape_cast %70 : vector<1x512x256xbf16> to vector<512x256xbf16>
    %cst_49 = arith.constant dense<0.000000e+00> : vector<32x256xf32>
    %72 = tpu.matmul %66, %71, %cst_49 {dimension_numbers = #tpu.dot_dimension_numbers<[1], [0], [0], [1], [0, 0, 1, 1], [], []>} : vector<32x512xbf16>, vector<512x256xbf16>, vector<32x256xf32> -> vector<32x256xf32>
    %73 = arith.maximumf %69, %72 : vector<32x256xf32>
    %74 = arith.truncf %73 : vector<32x256xf32> to vector<32x256xbf16>
    %c0_50 = arith.constant 0 : index
    %c0_51 = arith.constant 0 : index
    %c0_52 = arith.constant 0 : index
    %75 = vector.load %arg7[%c0_50, %c0_51, %c0_52] : memref<2x18x32xbf16, #tpu.memory_space<vmem>>, vector<1x18x32xbf16>
    %76 = vector.shape_cast %75 : vector<1x18x32xbf16> to vector<18x32xbf16>
    %cst_53 = arith.constant dense<0.000000e+00> : vector<18x256xf32>
    %77 = tpu.matmul %76, %74, %cst_53 {dimension_numbers = #tpu.dot_dimension_numbers<[1], [0], [0], [1], [0, 0, 1, 1], [], []>} : vector<18x32xbf16>, vector<32x256xbf16>, vector<18x256xf32> -> vector<18x256xf32>
    %c1_54 = arith.constant 1 : index
    %c0_55 = arith.constant 0 : index
    %c0_56 = arith.constant 0 : index
    %78 = vector.load %arg7[%c1_54, %c0_55, %c0_56] : memref<2x18x32xbf16, #tpu.memory_space<vmem>>, vector<1x18x32xbf16>
    %79 = vector.shape_cast %78 : vector<1x18x32xbf16> to vector<18x32xbf16>
    %cst_57 = arith.constant dense<0.000000e+00> : vector<18x256xf32>
    %80 = tpu.matmul %79, %74, %cst_57 {dimension_numbers = #tpu.dot_dimension_numbers<[1], [0], [0], [1], [0, 0, 1, 1], [], []>} : vector<18x32xbf16>, vector<32x256xbf16>, vector<18x256xf32> -> vector<18x256xf32>
    %81 = arith.maximumf %77, %80 : vector<18x256xf32>
    %cst_58 = arith.constant 0.000000e+00 : f32
    %82 = vector.broadcast %cst_58 : f32 to vector<16x512xf32>
    %83 = vector.extract_strided_slice %81 {offsets = [0, 0], sizes = [16, 256], strides = [1, 1]} : vector<18x256xf32> to vector<16x256xf32>
    %84 = arith.truncf %83 : vector<16x256xf32> to vector<16x256xbf16>
    %c0_59 = arith.constant 0 : index
    %c0_60 = arith.constant 0 : index
    %c0_61 = arith.constant 0 : index
    %85 = vector.load %arg4[%c0_59, %c0_60, %c0_61] : memref<3x256x512xbf16, #tpu.memory_space<vmem>>, vector<1x256x512xbf16>
    %86 = vector.shape_cast %85 : vector<1x256x512xbf16> to vector<256x512xbf16>
    %cst_62 = arith.constant dense<0.000000e+00> : vector<16x512xf32>
    %87 = tpu.matmul %84, %86, %cst_62 {dimension_numbers = #tpu.dot_dimension_numbers<[1], [0], [0], [1], [0, 0, 1, 1], [], []>} : vector<16x256xbf16>, vector<256x512xbf16>, vector<16x512xf32> -> vector<16x512xf32>
    %88 = arith.addf %82, %87 : vector<16x512xf32>
    %89 = vector.extract_strided_slice %81 {offsets = [1, 0], sizes = [16, 256], strides = [1, 1]} : vector<18x256xf32> to vector<16x256xf32>
    %90 = arith.truncf %89 : vector<16x256xf32> to vector<16x256xbf16>
    %c1_63 = arith.constant 1 : index
    %c0_64 = arith.constant 0 : index
    %c0_65 = arith.constant 0 : index
    %91 = vector.load %arg4[%c1_63, %c0_64, %c0_65] : memref<3x256x512xbf16, #tpu.memory_space<vmem>>, vector<1x256x512xbf16>
    %92 = vector.shape_cast %91 : vector<1x256x512xbf16> to vector<256x512xbf16>
    %cst_66 = arith.constant dense<0.000000e+00> : vector<16x512xf32>
    %93 = tpu.matmul %90, %92, %cst_66 {dimension_numbers = #tpu.dot_dimension_numbers<[1], [0], [0], [1], [0, 0, 1, 1], [], []>} : vector<16x256xbf16>, vector<256x512xbf16>, vector<16x512xf32> -> vector<16x512xf32>
    %94 = arith.addf %88, %93 : vector<16x512xf32>
    %95 = vector.extract_strided_slice %81 {offsets = [2, 0], sizes = [16, 256], strides = [1, 1]} : vector<18x256xf32> to vector<16x256xf32>
    %96 = arith.truncf %95 : vector<16x256xf32> to vector<16x256xbf16>
    %c2_67 = arith.constant 2 : index
    %c0_68 = arith.constant 0 : index
    %c0_69 = arith.constant 0 : index
    %97 = vector.load %arg4[%c2_67, %c0_68, %c0_69] : memref<3x256x512xbf16, #tpu.memory_space<vmem>>, vector<1x256x512xbf16>
    %98 = vector.shape_cast %97 : vector<1x256x512xbf16> to vector<256x512xbf16>
    %cst_70 = arith.constant dense<0.000000e+00> : vector<16x512xf32>
    %99 = tpu.matmul %96, %98, %cst_70 {dimension_numbers = #tpu.dot_dimension_numbers<[1], [0], [0], [1], [0, 0, 1, 1], [], []>} : vector<16x256xbf16>, vector<256x512xbf16>, vector<16x512xf32> -> vector<16x512xf32>
    %100 = arith.addf %94, %99 : vector<16x512xf32>
    %c0_71 = arith.constant 0 : index
    %c0_72 = arith.constant 0 : index
    %101 = vector.load %arg5[%c0_71, %c0_72] : memref<1x512xf32, #tpu.memory_space<vmem>>, vector<1x512xf32>
    %102 = vector.broadcast %101 : vector<1x512xf32> to vector<16x512xf32>
    %103 = arith.addf %100, %102 : vector<16x512xf32>
    %cst_73 = arith.constant 0.000000e+00 : f32
    %104 = vector.broadcast %cst_73 : f32 to vector<16x512xf32>
    %105 = arith.maximumf %103, %104 : vector<16x512xf32>
    %106 = arith.truncf %105 : vector<16x512xf32> to vector<16x512xbf16>
    %c0_74 = arith.constant 0 : index
    %c0_75 = arith.constant 0 : index
    %c0_76 = arith.constant 0 : index
    %107 = vector.load %arg8[%c0_74, %c0_75, %c0_76] : memref<2x512x256xbf16, #tpu.memory_space<vmem>>, vector<1x512x256xbf16>
    %108 = vector.shape_cast %107 : vector<1x512x256xbf16> to vector<512x256xbf16>
    %cst_77 = arith.constant dense<0.000000e+00> : vector<16x256xf32>
    %109 = tpu.matmul %106, %108, %cst_77 {dimension_numbers = #tpu.dot_dimension_numbers<[1], [0], [0], [1], [0, 0, 1, 1], [], []>} : vector<16x512xbf16>, vector<512x256xbf16>, vector<16x256xf32> -> vector<16x256xf32>
    %c1_78 = arith.constant 1 : index
    %c0_79 = arith.constant 0 : index
    %c0_80 = arith.constant 0 : index
    %110 = vector.load %arg8[%c1_78, %c0_79, %c0_80] : memref<2x512x256xbf16, #tpu.memory_space<vmem>>, vector<1x512x256xbf16>
    %111 = vector.shape_cast %110 : vector<1x512x256xbf16> to vector<512x256xbf16>
    %cst_81 = arith.constant dense<0.000000e+00> : vector<16x256xf32>
    %112 = tpu.matmul %106, %111, %cst_81 {dimension_numbers = #tpu.dot_dimension_numbers<[1], [0], [0], [1], [0, 0, 1, 1], [], []>} : vector<16x512xbf16>, vector<512x256xbf16>, vector<16x256xf32> -> vector<16x256xf32>
    %113 = arith.maximumf %109, %112 : vector<16x256xf32>
    %114 = arith.truncf %113 : vector<16x256xf32> to vector<16x256xbf16>
    %c0_82 = arith.constant 0 : index
    %c0_83 = arith.constant 0 : index
    %c0_84 = arith.constant 0 : index
    %115 = vector.load %arg9[%c0_82, %c0_83, %c0_84] : memref<2x8x16xbf16, #tpu.memory_space<vmem>>, vector<1x8x16xbf16>
    %116 = vector.shape_cast %115 : vector<1x8x16xbf16> to vector<8x16xbf16>
    %cst_85 = arith.constant dense<0.000000e+00> : vector<8x256xf32>
    %117 = tpu.matmul %116, %114, %cst_85 {dimension_numbers = #tpu.dot_dimension_numbers<[1], [0], [0], [1], [0, 0, 1, 1], [], []>} : vector<8x16xbf16>, vector<16x256xbf16>, vector<8x256xf32> -> vector<8x256xf32>
    %c1_86 = arith.constant 1 : index
    %c0_87 = arith.constant 0 : index
    %c0_88 = arith.constant 0 : index
    %118 = vector.load %arg9[%c1_86, %c0_87, %c0_88] : memref<2x8x16xbf16, #tpu.memory_space<vmem>>, vector<1x8x16xbf16>
    %119 = vector.shape_cast %118 : vector<1x8x16xbf16> to vector<8x16xbf16>
    %cst_89 = arith.constant dense<0.000000e+00> : vector<8x256xf32>
    %120 = tpu.matmul %119, %114, %cst_89 {dimension_numbers = #tpu.dot_dimension_numbers<[1], [0], [0], [1], [0, 0, 1, 1], [], []>} : vector<8x16xbf16>, vector<16x256xbf16>, vector<8x256xf32> -> vector<8x256xf32>
    %121 = arith.maximumf %117, %120 : vector<8x256xf32>
    %cst_90 = arith.constant 0.000000e+00 : f32
    %122 = vector.broadcast %cst_90 : f32 to vector<1x128xf32>
    %123 = vector.extract_strided_slice %121 {offsets = [0, 0], sizes = [1, 256], strides = [1, 1]} : vector<8x256xf32> to vector<1x256xf32>
    %124 = arith.truncf %123 : vector<1x256xf32> to vector<1x256xbf16>
    %c0_91 = arith.constant 0 : index
    %c0_92 = arith.constant 0 : index
    %c0_93 = arith.constant 0 : index
    %125 = vector.load %arg10[%c0_91, %c0_92, %c0_93] : memref<8x256x128xbf16, #tpu.memory_space<vmem>>, vector<1x256x128xbf16>
    %126 = vector.shape_cast %125 : vector<1x256x128xbf16> to vector<256x128xbf16>
    %cst_94 = arith.constant dense<0.000000e+00> : vector<1x128xf32>
    %127 = tpu.matmul %124, %126, %cst_94 {dimension_numbers = #tpu.dot_dimension_numbers<[1], [0], [0], [1], [0, 0, 1, 1], [], []>} : vector<1x256xbf16>, vector<256x128xbf16>, vector<1x128xf32> -> vector<1x128xf32>
    %128 = arith.addf %122, %127 : vector<1x128xf32>
    %129 = vector.extract_strided_slice %121 {offsets = [1, 0], sizes = [1, 256], strides = [1, 1]} : vector<8x256xf32> to vector<1x256xf32>
    %130 = arith.truncf %129 : vector<1x256xf32> to vector<1x256xbf16>
    %c1_95 = arith.constant 1 : index
    %c0_96 = arith.constant 0 : index
    %c0_97 = arith.constant 0 : index
    %131 = vector.load %arg10[%c1_95, %c0_96, %c0_97] : memref<8x256x128xbf16, #tpu.memory_space<vmem>>, vector<1x256x128xbf16>
    %132 = vector.shape_cast %131 : vector<1x256x128xbf16> to vector<256x128xbf16>
    %cst_98 = arith.constant dense<0.000000e+00> : vector<1x128xf32>
    %133 = tpu.matmul %130, %132, %cst_98 {dimension_numbers = #tpu.dot_dimension_numbers<[1], [0], [0], [1], [0, 0, 1, 1], [], []>} : vector<1x256xbf16>, vector<256x128xbf16>, vector<1x128xf32> -> vector<1x128xf32>
    %134 = arith.addf %128, %133 : vector<1x128xf32>
    %135 = vector.extract_strided_slice %121 {offsets = [2, 0], sizes = [1, 256], strides = [1, 1]} : vector<8x256xf32> to vector<1x256xf32>
    %136 = arith.truncf %135 : vector<1x256xf32> to vector<1x256xbf16>
    %c2_99 = arith.constant 2 : index
    %c0_100 = arith.constant 0 : index
    %c0_101 = arith.constant 0 : index
    %137 = vector.load %arg10[%c2_99, %c0_100, %c0_101] : memref<8x256x128xbf16, #tpu.memory_space<vmem>>, vector<1x256x128xbf16>
    %138 = vector.shape_cast %137 : vector<1x256x128xbf16> to vector<256x128xbf16>
    %cst_102 = arith.constant dense<0.000000e+00> : vector<1x128xf32>
    %139 = tpu.matmul %136, %138, %cst_102 {dimension_numbers = #tpu.dot_dimension_numbers<[1], [0], [0], [1], [0, 0, 1, 1], [], []>} : vector<1x256xbf16>, vector<256x128xbf16>, vector<1x128xf32> -> vector<1x128xf32>
    %140 = arith.addf %134, %139 : vector<1x128xf32>
    %141 = vector.extract_strided_slice %121 {offsets = [3, 0], sizes = [1, 256], strides = [1, 1]} : vector<8x256xf32> to vector<1x256xf32>
    %142 = arith.truncf %141 : vector<1x256xf32> to vector<1x256xbf16>
    %c3_103 = arith.constant 3 : index
    %c0_104 = arith.constant 0 : index
    %c0_105 = arith.constant 0 : index
    %143 = vector.load %arg10[%c3_103, %c0_104, %c0_105] : memref<8x256x128xbf16, #tpu.memory_space<vmem>>, vector<1x256x128xbf16>
    %144 = vector.shape_cast %143 : vector<1x256x128xbf16> to vector<256x128xbf16>
    %cst_106 = arith.constant dense<0.000000e+00> : vector<1x128xf32>
    %145 = tpu.matmul %142, %144, %cst_106 {dimension_numbers = #tpu.dot_dimension_numbers<[1], [0], [0], [1], [0, 0, 1, 1], [], []>} : vector<1x256xbf16>, vector<256x128xbf16>, vector<1x128xf32> -> vector<1x128xf32>
    %146 = arith.addf %140, %145 : vector<1x128xf32>
    %147 = vector.extract_strided_slice %121 {offsets = [4, 0], sizes = [1, 256], strides = [1, 1]} : vector<8x256xf32> to vector<1x256xf32>
    %148 = arith.truncf %147 : vector<1x256xf32> to vector<1x256xbf16>
    %c4_107 = arith.constant 4 : index
    %c0_108 = arith.constant 0 : index
    %c0_109 = arith.constant 0 : index
    %149 = vector.load %arg10[%c4_107, %c0_108, %c0_109] : memref<8x256x128xbf16, #tpu.memory_space<vmem>>, vector<1x256x128xbf16>
    %150 = vector.shape_cast %149 : vector<1x256x128xbf16> to vector<256x128xbf16>
    %cst_110 = arith.constant dense<0.000000e+00> : vector<1x128xf32>
    %151 = tpu.matmul %148, %150, %cst_110 {dimension_numbers = #tpu.dot_dimension_numbers<[1], [0], [0], [1], [0, 0, 1, 1], [], []>} : vector<1x256xbf16>, vector<256x128xbf16>, vector<1x128xf32> -> vector<1x128xf32>
    %152 = arith.addf %146, %151 : vector<1x128xf32>
    %153 = vector.extract_strided_slice %121 {offsets = [5, 0], sizes = [1, 256], strides = [1, 1]} : vector<8x256xf32> to vector<1x256xf32>
    %154 = arith.truncf %153 : vector<1x256xf32> to vector<1x256xbf16>
    %c5_111 = arith.constant 5 : index
    %c0_112 = arith.constant 0 : index
    %c0_113 = arith.constant 0 : index
    %155 = vector.load %arg10[%c5_111, %c0_112, %c0_113] : memref<8x256x128xbf16, #tpu.memory_space<vmem>>, vector<1x256x128xbf16>
    %156 = vector.shape_cast %155 : vector<1x256x128xbf16> to vector<256x128xbf16>
    %cst_114 = arith.constant dense<0.000000e+00> : vector<1x128xf32>
    %157 = tpu.matmul %154, %156, %cst_114 {dimension_numbers = #tpu.dot_dimension_numbers<[1], [0], [0], [1], [0, 0, 1, 1], [], []>} : vector<1x256xbf16>, vector<256x128xbf16>, vector<1x128xf32> -> vector<1x128xf32>
    %158 = arith.addf %152, %157 : vector<1x128xf32>
    %159 = vector.extract_strided_slice %121 {offsets = [6, 0], sizes = [1, 256], strides = [1, 1]} : vector<8x256xf32> to vector<1x256xf32>
    %160 = arith.truncf %159 : vector<1x256xf32> to vector<1x256xbf16>
    %c6_115 = arith.constant 6 : index
    %c0_116 = arith.constant 0 : index
    %c0_117 = arith.constant 0 : index
    %161 = vector.load %arg10[%c6_115, %c0_116, %c0_117] : memref<8x256x128xbf16, #tpu.memory_space<vmem>>, vector<1x256x128xbf16>
    %162 = vector.shape_cast %161 : vector<1x256x128xbf16> to vector<256x128xbf16>
    %cst_118 = arith.constant dense<0.000000e+00> : vector<1x128xf32>
    %163 = tpu.matmul %160, %162, %cst_118 {dimension_numbers = #tpu.dot_dimension_numbers<[1], [0], [0], [1], [0, 0, 1, 1], [], []>} : vector<1x256xbf16>, vector<256x128xbf16>, vector<1x128xf32> -> vector<1x128xf32>
    %164 = arith.addf %158, %163 : vector<1x128xf32>
    %165 = vector.extract_strided_slice %121 {offsets = [7, 0], sizes = [1, 256], strides = [1, 1]} : vector<8x256xf32> to vector<1x256xf32>
    %166 = arith.truncf %165 : vector<1x256xf32> to vector<1x256xbf16>
    %c7_119 = arith.constant 7 : index
    %c0_120 = arith.constant 0 : index
    %c0_121 = arith.constant 0 : index
    %167 = vector.load %arg10[%c7_119, %c0_120, %c0_121] : memref<8x256x128xbf16, #tpu.memory_space<vmem>>, vector<1x256x128xbf16>
    %168 = vector.shape_cast %167 : vector<1x256x128xbf16> to vector<256x128xbf16>
    %cst_122 = arith.constant dense<0.000000e+00> : vector<1x128xf32>
    %169 = tpu.matmul %166, %168, %cst_122 {dimension_numbers = #tpu.dot_dimension_numbers<[1], [0], [0], [1], [0, 0, 1, 1], [], []>} : vector<1x256xbf16>, vector<256x128xbf16>, vector<1x128xf32> -> vector<1x128xf32>
    %170 = arith.addf %164, %169 : vector<1x128xf32>
    %c0_123 = arith.constant 0 : index
    %c0_124 = arith.constant 0 : index
    %171 = vector.load %arg11[%c0_123, %c0_124] : memref<1x128xf32, #tpu.memory_space<vmem>>, vector<1x128xf32>
    %172 = arith.addf %170, %171 : vector<1x128xf32>
    %cst_125 = arith.constant 0.000000e+00 : f32
    %173 = vector.broadcast %cst_125 : f32 to vector<1x128xf32>
    %174 = arith.maximumf %172, %173 : vector<1x128xf32>
    %175 = arith.truncf %174 : vector<1x128xf32> to vector<1x128xbf16>
    %c0_126 = arith.constant 0 : index
    %c0_127 = arith.constant 0 : index
    %176 = vector.load %arg12[%c0_126, %c0_127] : memref<128x128xbf16, #tpu.memory_space<vmem>>, vector<128x128xbf16>
    %cst_128 = arith.constant dense<0.000000e+00> : vector<1x128xf32>
    %177 = tpu.matmul %175, %176, %cst_128 {dimension_numbers = #tpu.dot_dimension_numbers<[1], [0], [0], [1], [0, 0, 1, 1], [], []>} : vector<1x128xbf16>, vector<128x128xbf16>, vector<1x128xf32> -> vector<1x128xf32>
    %c0_129 = arith.constant 0 : index
    %c0_130 = arith.constant 0 : index
    %178 = vector.load %arg13[%c0_129, %c0_130] : memref<1x128xf32, #tpu.memory_space<vmem>>, vector<1x128xf32>
    %179 = arith.addf %177, %178 : vector<1x128xf32>
    %c0_131 = arith.constant 0 : index
    %c0_132 = arith.constant 0 : index
    %c0_133 = arith.constant 0 : index
    %180 = vector.load %arg14[%c0_131, %c0_132, %c0_133] : memref<1x1x128xf32, #tpu.memory_space<vmem>>, vector<1x1x128xf32>
    %181 = vector.shape_cast %180 : vector<1x1x128xf32> to vector<1x128xf32>
    %182 = vector.shape_cast %179 : vector<1x128xf32> to vector<1x1x128xf32>
    tpu.vector_store %arg14[%c0_131, %c0_132, %c0_133], %182 {strides = array<i32>} : memref<1x1x128xf32, #tpu.memory_space<vmem>>, vector<1x1x128xf32>,
    return
  }
  func.func @transform_0(%arg0: i32) -> (i32, i32, i32, i32) {
    %c0_i32 = arith.constant 0 : i32
    %c0_i32_0 = arith.constant 0 : i32
    %c0_i32_1 = arith.constant 0 : i32
    %c0_i32_2 = arith.constant 0 : i32
    return %arg0, %c0_i32, %c0_i32_0, %c0_i32_1 : i32, i32, i32, i32
  }
  func.func @transform_1(%arg0: i32) -> (i32, i32, i32) {
    %c0_i32 = arith.constant 0 : i32
    %c0_i32_0 = arith.constant 0 : i32
    %c0_i32_1 = arith.constant 0 : i32
    %c0_i32_2 = arith.constant 0 : i32
    return %c0_i32, %c0_i32_0, %c0_i32_1 : i32, i32, i32
  }
  func.func @transform_2(%arg0: i32) -> (i32, i32) {
    %c0_i32 = arith.constant 0 : i32
    %c0_i32_0 = arith.constant 0 : i32
    %c0_i32_1 = arith.constant 0 : i32
    return %c0_i32, %c0_i32_0 : i32, i32
  }
  func.func @transform_3(%arg0: i32) -> (i32, i32, i32) {
    %c0_i32 = arith.constant 0 : i32
    %c0_i32_0 = arith.constant 0 : i32
    %c0_i32_1 = arith.constant 0 : i32
    %c0_i32_2 = arith.constant 0 : i32
    return %c0_i32, %c0_i32_0, %c0_i32_1 : i32, i32, i32
  }
  func.func @transform_4(%arg0: i32) -> (i32, i32) {
    %c0_i32 = arith.constant 0 : i32
    %c0_i32_0 = arith.constant 0 : i32
    %c0_i32_1 = arith.constant 0 : i32
    return %c0_i32, %c0_i32_0 : i32, i32
  }
  func.func @transform_5(%arg0: i32) -> (i32, i32, i32) {
    %c0_i32 = arith.constant 0 : i32
    %c0_i32_0 = arith.constant 0 : i32
    %c0_i32_1 = arith.constant 0 : i32
    %c0_i32_2 = arith.constant 0 : i32
    return %c0_i32, %c0_i32_0, %c0_i32_1 : i32, i32, i32
  }
  func.func @transform_6(%arg0: i32) -> (i32, i32, i32) {
    %c0_i32 = arith.constant 0 : i32
    %c0_i32_0 = arith.constant 0 : i32
    %c0_i32_1 = arith.constant 0 : i32
    %c0_i32_2 = arith.constant 0 : i32
    return %c0_i32, %c0_i32_0, %c0_i32_1 : i32, i32, i32
  }
  func.func @transform_7(%arg0: i32) -> (i32, i32, i32) {
    %c0_i32 = arith.constant 0 : i32
    %c0_i32_0 = arith.constant 0 : i32
    %c0_i32_1 = arith.constant 0 : i32
    %c0_i32_2 = arith.constant 0 : i32
    return %c0_i32, %c0_i32_0, %c0_i32_1 : i32, i32, i32
  }
  func.func @transform_8(%arg0: i32) -> (i32, i32, i32) {
    %c0_i32 = arith.constant 0 : i32
    %c0_i32_0 = arith.constant 0 : i32
    %c0_i32_1 = arith.constant 0 : i32
    %c0_i32_2 = arith.constant 0 : i32
    return %c0_i32, %c0_i32_0, %c0_i32_1 : i32, i32, i32
  }
  func.func @transform_9(%arg0: i32) -> (i32, i32, i32) {
    %c0_i32 = arith.constant 0 : i32
    %c0_i32_0 = arith.constant 0 : i32
    %c0_i32_1 = arith.constant 0 : i32
    %c0_i32_2 = arith.constant 0 : i32
    return %c0_i32, %c0_i32_0, %c0_i32_1 : i32, i32, i32
  }
  func.func @transform_10(%arg0: i32) -> (i32, i32) {
    %c0_i32 = arith.constant 0 : i32
    %c0_i32_0 = arith.constant 0 : i32
    %c0_i32_1 = arith.constant 0 : i32
    return %c0_i32, %c0_i32_0 : i32, i32
  }
  func.func @transform_11(%arg0: i32) -> (i32, i32) {
    %c0_i32 = arith.constant 0 : i32
    %c0_i32_0 = arith.constant 0 : i32
    %c0_i32_1 = arith.constant 0 : i32
    return %c0_i32, %c0_i32_0 : i32, i32
  }
  func.func @transform_12(%arg0: i32) -> (i32, i32) {
    %c0_i32 = arith.constant 0 : i32
    %c0_i32_0 = arith.constant 0 : i32
    %c0_i32_1 = arith.constant 0 : i32
    return %c0_i32, %c0_i32_0 : i32, i32
  }
  func.func @transform_13(%arg0: i32) -> (i32, i32, i32) {
    %c0_i32 = arith.constant 0 : i32
    %c0_i32_0 = arith.constant 0 : i32
    %c0_i32_1 = arith.constant 0 : i32
    return %arg0, %c0_i32, %c0_i32_0 : i32, i32, i32
  }
}

</mosaic_0001>

<bundles_post_ra>
// kernel: simple_cnn_forward.1
= control target key start
LH: loop header
LB: loop body
LE: loop exit
PB: predicated region body
PF: predicated region fallthrough
CT: control target
= control target key end

     0   :  { %s10534_s0 = inlined_call_operand.vmem [shape: f32[2,3,34,32], index: 0, kind: input, shape index: {}]   ;;  %s10535_s1 = inlined_call_operand.hbm [shape: bf16[9,32,512], index: 1, kind: input, shape index: {}]   ;;  %s10536_s2 = inlined_call_operand.vmem [shape: f32[1,512], index: 2, kind: input, shape index: {}]   ;;  %s10537_s3 = inlined_call_operand.hbm [shape: bf16[3,256,512], index: 3, kind: input, shape index: {}]   ;;  %s10538_s4 = inlined_call_operand.vmem [shape: f32[1,512], index: 4, kind: input, shape index: {}]   ;;  %s10539_s5 = inlined_call_operand.hbm [shape: bf16[2,512,256], index: 5, kind: input, shape index: {}]   ;;  %s10540_s6 = inlined_call_operand.vmem [shape: bf16[2,18,32], index: 6, kind: input, shape index: {}]   ;;  %s10541_s7 = inlined_call_operand.hbm [shape: bf16[2,512,256], index: 7, kind: input, shape index: {}]   ;;  %s10542_s8 = inlined_call_operand.vmem [shape: bf16[2,8,16], index: 8, kind: input, shape index: {}]   ;;  %s10543_s9 = inlined_call_operand.hbm [shape: bf16[8,256,128], index: 9, kind: input, shape index: {}]   ;;  %s10544_s10 = inlined_call_operand.vmem [shape: f32[1,128], index: 10, kind: input, shape index: {}]   ;;  %s10545_s11 = inlined_call_operand.vmem [shape: bf16[128,128], index: 11, kind: input, shape index: {}]   ;;  %s10546_s12 = inlined_call_operand.vmem [shape: f32[1,128], index: 12, kind: input, shape index: {}]   ;;  %s10547_s13 = inlined_call_operand.hbm [shape: f32[2,1,128], index: 13, kind: output, shape index: {}]  }
   0x1   :  { %10562 = sst [smem:[#allocation23_spill]] %s10544_s10 }
   0x2   :  { %10563 = sst [smem:[#allocation24_spill]] %s10546_s12 }
   0x3   :  { %10564 = sst [smem:[#allocation25_spill]] %s10547_s13 }
   0x4   :  { %18 = vsyncpa [#allocation3], 0 }
   0x5   :  { %19 = vsyncpa [#allocation6], 0 }
   0x6   :  { %20 = vsyncpa [#allocation9], 0 }
   0x7   :  { %21 = vsyncpa [#allocation4], 0 }
   0x8   :  { %23 = vsyncpa [#allocation4 + $0x1], 0  ;;  %s9971_s25 = smov 0   ;;  %s9973_s26 = smov 0  }
   0x9   :  { %s9975_s27 = smov 0   ;;  %s9977_s28 = smov 0  }
   0xa LB: > { %10565 = sst [smem:[#allocation16_spill]] %s9872_s25  ;;  %s9992_s29 = sadd.s32 4294967295, %s9884_s28   ;;  %s9884_s28 = sphi %s9977_s28, %s10596_s28   ;;  %s9880_s27 = sphi %s9975_s27, %s10598_s27   ;;  %s9876_s26 = sphi %s9973_s26, %s10600_s26   ;;  %s9872_s25 = sphi %s9971_s25, %s10599_s25  }
   0xb   : > { %10566 = sst [smem:[#allocation17_spill]] %s9880_s27  ;;  %s7543_s30 = sadd.s32 4294967294, %s9884_s28  }
   0xc   : > { %10567 = sst [smem:[#allocation18_spill]] %s9884_s28  ;;  %s9996_s14 = sadd.s32 1, %s9884_s28  }
   0xd   : > { %10568 = sst [smem:[#allocation19_spill]] %s9996_s14  ;;  %s314_s15 = sadd.s32 1, %s9880_s27 }
   0xe   : > { %s311_s16 = ssub.s32 %s9884_s28, %s9996_s14  ;;  %p324_p0 = scmp.ne.s32.totalorder %s9880_s27, %s9876_s26 }
   0xf   : > { %p312_p1 = scmp.eq.s32.totalorder %s311_s16, 0  ;;  %p325_p2 = scmp.eq.s32.totalorder %s9992_s29, 1 }
  0x10   : > { %p330_p3 = scmp.ne.s32.totalorder %s9876_s26, %s9872_s25  ;;  %p331_p4 = scmp.eq.s32.totalorder %s7543_s30, 1 }
  0x11   : > { %s10007_s17 = scalar_select %p312_p1, %s9880_s27, %s314_s15  }
  0x12   : > { %p10009_p5 = por %p325_p2, %p324_p0  ;;  %p10013_p6 = por %p331_p4, %p330_p3 }
  0x13   : > { %10569 = sst [smem:[#allocation20_spill]] %s10007_s17  ;;  %p7544_p7 = scmp.ge.s32.totalorder %s9884_s28, 1 }
  0x14   : > { %s10570_s18 = scalar_select %p10009_p5, 1, 0 }
  0x15   : > { %s10572_s19 = scalar_select %p10013_p6, 1, 0 }
  0x16   : > { %10571 = sst [smem:[#allocation21_spill]] %s10570_s18  ;;  %p338_p8 = scmp.lt.s32.totalorder %s9884_s28, 3 }
  0x17   : > { %10573 = sst [smem:[#allocation22_spill]] %s10572_s19  ;;  %p10553_p9 = scmp.eq.s32.totalorder %s9992_s29, 0 }
  0x18   : > { %p10020_p10 = pnand %p7544_p7, %p338_p8  ;;  %s9886_s21 = smov [#allocation5]  }
  0x19   : > { %s366_s22 = sshll.u32 %s9886_s21, 4  ;;  %s9887_s24 = smov [#allocation8]   ;;  %s367_s22 = int_to_ptr.vmem [resolvable:$true] %s366_s22 }
  0x1a   : > { %s10574_s20 = scalar_select %p10020_p10, 1, 0 }
  0x1b   : > { %p8673_p11 = pneg %p10020_p10  ;;  %s398_s30 = sshll.u32 %s9887_s24, 4  ;;  %s399_s30 = int_to_ptr.vmem [resolvable:$true] %s398_s30 }
  0x1c   : > { %s9670_s17 = scalar_lea.hbm %s10537_s3, 24576 }
  0x1d   : > { %p10028_p12 = pnand %p10553_p9, %p8673_p11  ;;  %p9671_p13 = scmp.ne.s32.totalorder %s10537_s3, %s9670_s17 }
  0x1e   : > { %p9677_p3 = scmp.lt.u32.totalorder %s9670_s17, %s10537_s3 }
  0x1f   : > { %p10040_p0 = pneg %p10028_p12 }
  0x21   : > { %p9673_p1 = pnand %p10040_p0, %p9671_p13 }
  0x23   : > { %p9674_p2 = pneg %p9673_p1 }
  0x25   : > { %p9679_p4 = pnand %p9677_p3, %p9674_p2 }
  0x27   : > { %9682 = shalt.err (!%p9679_p4)
}
  0x28   : > { %s9683_s24 = scalar_lea.vmem %s367_s22, 24576  ;;  %p9691_p9 = scmp.lt.s32.totalorder %s367_s22, %s367_s22 }
  0x29   : > { %p9684_p7 = scmp.ne.s32.totalorder %s367_s22, %s9683_s24  ;;  %p9692_p6 = scmp.lt.s32.totalorder %s9683_s24, %s9683_s24 }
  0x2b   : > { %p9686_p8 = pnand %p9684_p7, %p10040_p0  ;;  %p9693_p5 = por %p9692_p6, %p9691_p9 }
  0x2d   : > { %p9687_p11 = pneg %p9686_p8 }
  0x2f   : > { %p9694_p10 = pnand %p9693_p5, %p9687_p11 }
  0x31   : > { %9697 = shalt.err (!%p9694_p10)
}
  0x32   : > { %s9888_s27 = smov 256   ;;  %s9889_s14 = smov 16  }
  0x33   : > { %8679 = dma.hbm_to_vmem [thread:$0]  (!%p10028_p12), %s10537_s3, 24576, %s367_s22, [#allocation6], %s9888_s27, %s9888_s27, %s9889_s14  }
  0x34   : > { %s9890_s19 = smov [#allocation2]   ;;  %s9698_s28 = scalar_lea.hbm %s10541_s7, 16384 }
  0x35   : > { %s350_s15 = sshll.u32 %s9890_s19, 4  ;;  %p9699_p5 = scmp.ne.s32.totalorder %s10541_s7, %s9698_s28  ;;  %s351_s15 = int_to_ptr.vmem [resolvable:$true] %s350_s15 }
  0x36   : > { %p9705_p10 = scmp.lt.u32.totalorder %s9698_s28, %s10541_s7 }
  0x37   : > { %p9701_p6 = pnand %p9699_p5, %p10040_p0 }
  0x39   : > { %p9702_p9 = pneg %p9701_p6 }
  0x3b   : > { %p9707_p13 = pnand %p9705_p10, %p9702_p9 }
  0x3d   : > { %9710 = shalt.err (!%p9707_p13)
}
  0x3e   : > { %s9711_s22 = scalar_lea.vmem %s399_s30, 16384  ;;  %p9719_p4 = scmp.lt.s32.totalorder %s399_s30, %s399_s30 }
  0x3f   : > { %p9712_p1 = scmp.ne.s32.totalorder %s399_s30, %s9711_s22  ;;  %p9720_p7 = scmp.lt.s32.totalorder %s9711_s22, %s9711_s22 }
  0x41   : > { %p9714_p2 = pnand %p9712_p1, %p10040_p0  ;;  %p9721_p8 = por %p9720_p7, %p9719_p4 }
  0x43   : > { %p9715_p3 = pneg %p9714_p2 }
  0x45   : > { %p9722_p11 = pnand %p9721_p8, %p9715_p3 }
  0x47   : > { %9725 = shalt.err (!%p9722_p11)
}
  0x48   : > { %s10560_s13 = smov 128   ;;  %s10561_s18 = smov 8  }
  0x49   : > { %8685 = dma.hbm_to_vmem [thread:$0]  (!%p10028_p12), %s10541_s7, 16384, %s399_s30, [#allocation9], %s10560_s13, %s10560_s13, %s10561_s18  }
  0x4a   : > { %s9726_s17 = scalar_lea.hbm %s10535_s1, 9216 }
  0x4b   : > { %p9727_p5 = scmp.ne.s32.totalorder %s10535_s1, %s9726_s17  ;;  %p9733_p10 = scmp.lt.u32.totalorder %s9726_s17, %s10535_s1 }
  0x4d   : > { %p9729_p6 = pnand %p9727_p5, %p10040_p0 }
  0x4f   : > { %p9730_p9 = pneg %p9729_p6 }
  0x51   : > { %p9735_p13 = pnand %p9733_p10, %p9730_p9 }
  0x53   : > { %9738 = shalt.err (!%p9735_p13)
}
  0x54   : > { %s9739_s10 = scalar_lea.vmem %s351_s15, 9216  ;;  %p9747_p4 = scmp.lt.s32.totalorder %s351_s15, %s351_s15 }
  0x55   : > { %p9740_p1 = scmp.ne.s32.totalorder %s351_s15, %s9739_s10  ;;  %p9748_p7 = scmp.lt.s32.totalorder %s9739_s10, %s9739_s10 }
  0x57   : > { %p9742_p2 = pnand %p9740_p1, %p10040_p0  ;;  %p9749_p8 = por %p9748_p7, %p9747_p4 }
  0x59   : > { %p9743_p3 = pneg %p9742_p2 }
  0x5b   : > { %p9750_p11 = pnand %p9749_p8, %p9743_p3 }
  0x5d   : > { %9753 = shalt.err (!%p9750_p11)
}
  0x5e   : > { %8676 = dma.hbm_to_vmem [thread:$0]  (!%p10028_p12), %s10535_s1, 9216, %s351_s15, [#allocation3], %s9888_s27, %s9888_s27, %s9889_s14  }
  0x5f   : > { %s9893_s28 = smov [#allocation7]   ;;  %s9894_s17 = smov [#allocation10]  }
  0x60   : > { %s382_s25 = sshll.u32 %s9893_s28, 4  ;;  %s414_s19 = sshll.u32 %s9894_s17, 4  ;;  %s383_s25 = int_to_ptr.vmem [resolvable:$true] %s382_s25  ;;  %s415_s19 = int_to_ptr.vmem [resolvable:$true] %s414_s19 }
  0x61   : > { %s9754_s22 = scalar_lea.hbm %s10539_s5, 16384 }
  0x62   : > { %p9755_p5 = scmp.ne.s32.totalorder %s10539_s5, %s9754_s22  ;;  %p9761_p10 = scmp.lt.u32.totalorder %s9754_s22, %s10539_s5 }
  0x64   : > { %p9757_p6 = pnand %p9755_p5, %p10040_p0 }
  0x66   : > { %p9758_p9 = pneg %p9757_p6 }
  0x68   : > { %p9763_p13 = pnand %p9761_p10, %p9758_p9 }
  0x6a   : > { %9766 = shalt.err (!%p9763_p13)
}
  0x6b   : > { %s9767_s27 = scalar_lea.vmem %s383_s25, 16384  ;;  %p9775_p4 = scmp.lt.s32.totalorder %s383_s25, %s383_s25 }
  0x6c   : > { %p9768_p1 = scmp.ne.s32.totalorder %s383_s25, %s9767_s27  ;;  %p9776_p7 = scmp.lt.s32.totalorder %s9767_s27, %s9767_s27 }
  0x6e   : > { %p9770_p2 = pnand %p9768_p1, %p10040_p0  ;;  %p9777_p8 = por %p9776_p7, %p9775_p4 }
  0x70   : > { %p9771_p3 = pneg %p9770_p2 }
  0x72   : > { %p9778_p11 = pnand %p9777_p8, %p9771_p3 }
  0x74   : > { %9781 = shalt.err (!%p9778_p11)
}
  0x75   : > { %s10577_s14 = smov 8   ;;  %s10578_s15 = smov 128  }
  0x76   : > { %8682 = dma.hbm_to_vmem [thread:$0]  (!%p10028_p12), %s10539_s5, 16384, %s383_s25, [#allocation6], %s10578_s15, %s10578_s15, %s10577_s14  }
  0x77   : > { %s9782_s17 = scalar_lea.hbm %s10543_s9, 16384 }
  0x78   : > { %p9783_p5 = scmp.ne.s32.totalorder %s10543_s9, %s9782_s17  ;;  %p9789_p10 = scmp.lt.u32.totalorder %s9782_s17, %s10543_s9 }
  0x7a   : > { %p9785_p6 = pnand %p9783_p5, %p10040_p0 }
  0x7c   : > { %p9786_p9 = pneg %p9785_p6 }
  0x7e   : > { %p9791_p13 = pnand %p9789_p10, %p9786_p9 }
  0x80   : > { %9794 = shalt.err (!%p9791_p13)
}
  0x81   : > { %s9795_s30 = scalar_lea.vmem %s415_s19, 16384  ;;  %p9803_p4 = scmp.lt.s32.totalorder %s415_s19, %s415_s19 }
  0x82   : > { %p9796_p1 = scmp.ne.s32.totalorder %s415_s19, %s9795_s30  ;;  %p9804_p7 = scmp.lt.s32.totalorder %s9795_s30, %s9795_s30 }
  0x84   : > { %p9798_p2 = pnand %p9796_p1, %p10040_p0  ;;  %p9805_p8 = por %p9804_p7, %p9803_p4 }
  0x86   : > { %p9799_p3 = pneg %p9798_p2 }
  0x88   : > { %p9806_p11 = pnand %p9805_p8, %p9799_p3 }
  0x8a   : > { %9809 = shalt.err (!%p9806_p11)
}
  0x8b   : > { %s9895_s25 = smov 64   ;;  %s9896_s27 = smov 4  }
  0x8c   : > { %8688 = dma.hbm_to_vmem [thread:$0]  (!%p10028_p12), %s10543_s9, 16384, %s415_s19, [#allocation9], %s9895_s25, %s9895_s25, %s9896_s27  }
  0x8d   : > { %p10579_p5 = scmp.ne.s32.totalorder %s10574_s20, 0 }
  0x8e   : > { %p10580_p6 = scmp.eq.s32.totalorder (!%p10579_p5), %s9992_s29, 0 }
  0x8f   : > { %447 = sbr.rel (%p10579_p5) target bundleno = 2437 (0x985), region = 72 }
  0x96   : > { %9855 = dma.done.wait (%p10580_p6), [#allocation3], 9216   ;;  %p10581_p0 = pmov %p10580_p6 }
  0x98   : > { %9857 = vsyncadd (%p10581_p0), [#allocation3], 4294958080  ;;  %p10582_p9 = pmov %p10581_p0 }
  0x99   : > { %p10583_p10 = pmov %p10581_p0 }
  0x9a   : > { %9859 = dma.done.wait (%p10582_p9), [#allocation6], 40960  }
  0x9b   : > { %9861 = vsyncadd (%p10583_p10), [#allocation6], 4294926336  ;;  %p10584_p13 = pmov %p10581_p0 }
  0x9c   : > { %p10585_p12 = pmov %p10581_p0 }
  0x9d   : > { %9863 = dma.done.wait (%p10584_p13), [#allocation9], 32768  }
  0x9e   : > { %9865 = vsyncadd (%p10585_p12), [#allocation9], 4294934528  ;;  %p506_p1 = scmp.lt.s32.totalorder %s9992_s29, 1  ;;  %v9897_v0 = vmov 0   ;;  %v8750_v1 = vld [vmem:[#allocation2 + $0x44] ss:$16 sps:$4 sm:$0xff]  }
  0x9f   : > { %637 = vmatprep.mubr.bf16.mxu1 %v9897_v0  ;;  %787 = vmatprep.mubr.bf16.mxu0 %v9897_v0  ;;  %v8752_v2 = vld [vmem:[#allocation2 + $0x4] ss:$16 sps:$4 sm:$0xff]   ;;  %v8754_v3 = vld [vmem:[#allocation2 + $0x40] ss:$16 sps:$4 sm:$0xff]   ;;  %vm598_vm0 = vcmask 261120   ;;  %vm873_vm2 = vcmask 1046528  }
  0xa0   : > { %s507_s20 = scalar_select %p506_p1, %s9992_s29, 1  ;;  %605 = vmatprep.subr.bf16.mxu1 %v8750_v1  ;;  %v8755_v4 = vld [vmem:[#allocation2] ss:$16 sps:$4 sm:$0xff]   ;;  %755 = vmatprep.subr.bf16.mxu0 %v8752_v2  ;;  %v8756_v5 = vld [vmem:[#allocation2 + $0x64] ss:$16 sps:$4 sm:$0xff]   ;;  %vm5829_vm3 = vcmask 130048  }
  0xa1   : > { %606 = vmatpush1.bf16.msra.mxu1 %v8754_v3  ;;  %756 = vmatpush1.bf16.msra.mxu0 %v8755_v4  ;;  %v8758_v6 = vld [vmem:[#allocation2 + $0x24] ss:$16 sps:$4 sm:$0xff]   ;;  %v8760_v7 = vld [vmem:[#allocation2 + $0x60] ss:$16 sps:$4 sm:$0xff]   ;;  %v8767_v22 = vld [vmem:[#allocation2 + $0x4c] ss:$16 sps:$4 sm:$0xff]  }
  0xa2   : > { %s8650_s23 = smul.u32 120, %s507_s20  ;;  %607 = vmatprep.subr.bf16.mxu1 %v8756_v5  ;;  %v8761_v8 = vld [vmem:[#allocation2 + $0x20] ss:$16 sps:$4 sm:$0xff]   ;;  %757 = vmatprep.subr.bf16.mxu0 %v8758_v6  ;;  %v8764_v16 = vld [vmem:[#allocation2 + $0x84] ss:$16 sps:$4 sm:$0xff]   ;;  %vm9899_vm4 = vmmov 0  }
  0xa3   : > { %v8762_v15 = vld [vmem:[#allocation2 + $0x80] ss:$16 sps:$4 sm:$0xff]   ;;  %vm537_vm1 = vsmask.f32 7424  ;;  %v8765_v28 = vld [vmem:[#allocation2 + $0x48] ss:$16 sps:$4 sm:$0xff]  }
  0xa4   : > { %s10161_s13 = scalar_lea.vmem %s10534_s0, %s8650_s23  ;;  %v8773_v29 = vld [vmem:[#allocation2 + $0xa4] ss:$16 sps:$4 sm:$0xff]   ;;  %v8770_v30 = vld [vmem:[#allocation2 + $0x6c] ss:$16 sps:$4 sm:$0xff]   ;;  %v8771_v31 = vld [vmem:[#allocation2 + $0xa0] ss:$16 sps:$4 sm:$0xff]  }
  0xa5   : > { %v512_v9 = vld [vmem:[%s10161_s13] sm:$0xff]  ;;  %v513_v10 = vld [vmem:[%s10161_s13 + $0x8] sm:$0xff]  ;;  %v514_v11 = vld [vmem:[%s10161_s13 + $0x10] sm:$0xff]  ;;  %608 = vmatpush1.bf16.msra.mxu1 %v8760_v7  ;;  %758 = vmatpush1.bf16.msra.mxu0 %v8761_v8  ;;  %s10586_s19 = sld [smem:[#allocation23_spill]]  ;;  %s10587_s28 = sld [smem:[#allocation24_spill]] }
  0xa6   : > { %v515_v12 = vld [vmem:[%s10161_s13 + $0x18] sm:$0xff]  ;;  %v10167_v13 = vpack.c.bf16 %v513_v10, %v512_v9  ;;  %v516_v19 = vld [vmem:[%s10161_s13 + $0x20] sm:$0x3]  ;;  %925 = vmatprep.subr.bf16.mxu0 %v8764_v16  ;;  %658 = vmatprep.subr.bf16.mxu1 %v8767_v22  ;;  %v8776_v33 = vld [vmem:[#allocation2 + $0xc4] ss:$16 sps:$4 sm:$0xff]   ;;  %s10588_s17 = sld [smem:[#allocation21_spill]] }
  0xa7   : > { %v10169_v14 = vpack.c.bf16 %v515_v12, %v514_v11  ;;  %v527_v21 = vpack.c.bf16 %v516_v19, %v516_v19  ;;  %v8768_v36 = vld [vmem:[#allocation2 + $0x68] ss:$16 sps:$4 sm:$0xff]   ;;  %v8779_v37 = vld [vmem:[#allocation2 + $0xc] ss:$16 sps:$4 sm:$0xff]   ;;  %v8774_v42 = vld [vmem:[#allocation2 + $0xc0] ss:$16 sps:$4 sm:$0xff]  }
  0xa8   : > { %v539_v17 = vshrl.u32 %v10167_v13, 16  ;;  %v541_v18 = vshll.u32 %v10167_v13, 16  ;;  %7578 = vmatmul.mubr.msk.bf16.vlgmr.msra.gmra.mrb[0].mxu0 %vm598_vm0, %v10167_v13  ;;  %v874_v39 = vrot.slane %v10167_v13, 1  ;;  %v8785_v43 = vld [vmem:[#allocation2 + $0xe4] ss:$16 sps:$4 sm:$0xff]   ;;  %v7594_v52 = vld [vmem:[%s10161_s13 + $0x28] sm:$0xff] }
  0xa9   : > { %v546_v20 = vshll.u32 %v10169_v14, 16  ;;  %v550_v25 = vshrl.u32 %v10169_v14, 16  ;;  %926 = vmatpush1.bf16.msra.mxu0 %v8762_v15  ;;  %797 = vmatprep.mubr.bf16.mxu0 %v9897_v0  ;;  %v554_v27 = vshll.u32 %v527_v21, 16  ;;  %v875_v40 = vrot.slane %v10169_v14, 1  ;;  %v8777_v44 = vld [vmem:[#allocation2 + $0x8] ss:$16 sps:$4 sm:$0xff]  }
  0xaa   : > { %v543_v23 = vrot.slane %v541_v18, 1  ;;  %927 = vmatprep.subr.bf16.mxu0 %v8773_v29  ;;  %v877_v45 = vrot.slane %v527_v21, 1  ;;  %v8782_v46 = vld [vmem:[#allocation2 + $0x2c] ss:$16 sps:$4 sm:$0xff]   ;;  %v8783_v47 = vld [vmem:[#allocation2 + $0xe0] ss:$16 sps:$4 sm:$0xff]  }
  0xab   : > { %v548_v24 = vrot.slane %v546_v20, 1  ;;  %v556_v35 = vrot.slane %v554_v27, 1  ;;  %v10191_v41 = vsel %vm873_vm2, %v874_v39, %v875_v40  ;;  %v8788_v48 = vld [vmem:[#allocation2 + $0x104] ss:$16 sps:$4 sm:$0xff]   ;;  %v8780_v50 = vld [vmem:[#allocation2 + $0x28] ss:$16 sps:$4 sm:$0xff]  }
  0xac   : > { %v544_v26 = vor.u32 %v543_v23, %v539_v17  ;;  %v10199_v49 = vsel %vm873_vm2, %v875_v40, %v877_v45  ;;  %v8791_v51 = vld [vmem:[#allocation2 + $0x8c] ss:$16 sps:$4 sm:$0xff]   ;;  %v7595_v53 = vld [vmem:[%s10161_s13 + $0x30] sm:$0xff]  ;;  %v7597_v58 = vld [vmem:[%s10161_s13 + $0x40] sm:$0xff]  ;;  %s8274_s16 = sshll.u32 %s9992_s29, 4  ;;  %s10589_s25 = sld [smem:[#allocation25_spill]] }
  0xad   : > { %v552_v34 = vor.u32 %v550_v25, %v548_v24  ;;  %928 = vmatpush1.bf16.msra.mxu0 %v8771_v31  ;;  %v10207_v54 = vpack.c.bf16 %v7595_v53, %v7594_v52  ;;  %v8786_v55 = vld [vmem:[#allocation2 + $0x100] ss:$16 sps:$4 sm:$0xff]   ;;  %v8797_v56 = vld [vmem:[#allocation2 + $0x124] ss:$16 sps:$4 sm:$0xff]   ;;  %v7596_v57 = vld [vmem:[%s10161_s13 + $0x38] sm:$0xff]  ;;  %p10591_p3 = scmp.ne.s32.totalorder %s10588_s17, 0 }
  0xae   : > { %v549_v32 = vsel %vm537_vm1, %v544_v26, %v548_v24  ;;  %1110 = vmatprep.subr.bf16.mxu0 %v8776_v33  ;;  %v8789_v59 = vld [vmem:[#allocation2 + $0x88] ss:$16 sps:$4 sm:$0xff]   ;;  %v8794_v60 = vld [vmem:[#allocation2 + $0xac] ss:$16 sps:$4 sm:$0xff]   ;;  %v8795_v62 = vld [vmem:[#allocation2 + $0x120] ss:$16 sps:$4 sm:$0xff]   ;;  %v10216_v63 = vpack.c.bf16 %v7597_v58, %v7596_v57 }
  0xaf   : > { %7566 = vmatmul.mubr.msk.bf16.vlgmr.msra.gmra.mrb[0].mxu1 %vm598_vm0, %v549_v32  ;;  %v557_v38 = vsel %vm537_vm1, %v552_v34, %v556_v35  ;;  %v1244_v61 = vshll.u32 %v10207_v54, 16  ;;  %v8800_v1 = vld [vmem:[#allocation2 + $0x144] ss:$16 sps:$4 sm:$0xff]   ;;  %v8792_v2 = vld [vmem:[#allocation2 + $0xa8] ss:$16 sps:$4 sm:$0xff]   ;;  %v1242_v3 = vshrl.u32 %v10207_v54, 16 }
  0xb0   : > { %647 = vmatprep.mubr.bf16.mxu1 %v9897_v0  ;;  %659 = vmatpush1.bf16.msra.mxu1 %v8765_v28  ;;  %v1248_v5 = vshll.u32 %v10216_v63, 16  ;;  %v8803_v6 = vld [vmem:[#allocation2 + $0xcc] ss:$16 sps:$4 sm:$0xff]   ;;  %v7598_v7 = vld [vmem:[%s10161_s13 + $0x48] sm:$0x3]  ;;  %v1252_v15 = vshrl.u32 %v10216_v63, 16 }
  0xb1   : > { %660 = vmatprep.subr.bf16.mxu1 %v8770_v30  ;;  %7579 = vmatmul.mubr.msk.bf16.gmra.mrb[4].mxu0 %vm598_vm0, %v10169_v14  ;;  %v1246_v4 = vrot.slane %v1244_v61, 1  ;;  %v1232_v10 = vpack.c.bf16 %v7598_v7, %v7598_v7  ;;  %v8798_v11 = vld [vmem:[#allocation2 + $0x140] ss:$16 sps:$4 sm:$0xff]   ;;  %v8809_v12 = vld [vmem:[#allocation2 + $0x164] ss:$16 sps:$4 sm:$0xff]   ;;  %v1440_v25 = vrot.slane %v10207_v54, 1 }
  0xb2   : > { %957 = vmatprep.mubr.bf16.mxu0 %v9897_v0  ;;  %v1250_v9 = vrot.slane %v1248_v5, 1  ;;  %v8801_v17 = vld [vmem:[#allocation2 + $0xc8] ss:$16 sps:$4 sm:$0xff]   ;;  %v8806_v18 = vld [vmem:[#allocation2 + $0xec] ss:$16 sps:$4 sm:$0xff]   ;;  %v1441_v26 = vrot.slane %v10216_v63, 1  ;;  %s10590_s14 = smov %s10589_s25  ;;  %s10492_s27 = scalar_lea.hbm %s10589_s25, %s8274_s16 }
  0xb3   : > { %v1247_v8 = vor.u32 %v1246_v4, %v1242_v3  ;;  %v1256_v16 = vshll.u32 %v1232_v10, 16  ;;  %v8807_v19 = vld [vmem:[#allocation2 + $0x160] ss:$16 sps:$4 sm:$0xff]   ;;  %v8812_v21 = vld [vmem:[#allocation2 + $0x184] ss:$16 sps:$4 sm:$0xff]   ;;  %v1443_v33 = vrot.slane %v1232_v10, 1 }
  0xb4   : > { %661 = vmatpush1.bf16.msra.mxu1 %v8768_v36  ;;  %v1254_v20 = vor.u32 %v1252_v15, %v1250_v9  ;;  %v8804_v22 = vld [vmem:[#allocation2 + $0xe8] ss:$16 sps:$4 sm:$0xff]   ;;  %v8815_v23 = vld [vmem:[#allocation2 + $0x10c] ss:$16 sps:$4 sm:$0xff]   ;;  %v8810_v27 = vld [vmem:[#allocation2 + $0x180] ss:$16 sps:$4 sm:$0xff]   ;;  %v10252_v29 = vsel %vm873_vm2, %v1440_v25, %v1441_v26 }
  0xb5   : > { %808 = vmatprep.subr.bf16.mxu1 %v8779_v37  ;;  %v8821_v28 = vld [vmem:[#allocation2 + $0x1a4] ss:$16 sps:$4 sm:$0xff]   ;;  %v8813_v30 = vld [vmem:[#allocation2 + $0x108] ss:$16 sps:$4 sm:$0xff]   ;;  %v8818_v31 = vld [vmem:[#allocation2 + $0x12c] ss:$16 sps:$4 sm:$0xff]   ;;  %v10261_v37 = vsel %vm873_vm2, %v1441_v26, %v1443_v33 }
  0xb6   : > { %v8824_v34 = vld [vmem:[#allocation2 + $0x1c4] ss:$16 sps:$4 sm:$0xff]   ;;  %v8816_v35 = vld [vmem:[#allocation2 + $0x128] ss:$16 sps:$4 sm:$0xff]   ;;  %v8827_v36 = vld [vmem:[#allocation2 + $0x14c] ss:$16 sps:$4 sm:$0xff]  }
  0xb7   : > { %7567 = vmatmul.mubr.msk.bf16.gmra.mrb[4].mxu1 %vm598_vm0, %v557_v38  ;;  %v7636_v39 = vld [vmem:[%s10161_s13 + $0x58] sm:$0xff]  ;;  %v8822_v40 = vld [vmem:[#allocation2 + $0x1c0] ss:$16 sps:$4 sm:$0xff]   ;;  %v8845_v61 = vld [vmem:[#allocation2 + $0x224] ss:$16 sps:$4 sm:$0xff]   ;;  %s9900_s20 = smov [#allocation11]  }
  0xb8   : > { %690 = vmatprep.mubr.bf16.mxu1 %v9897_v0  ;;  %v8825_v45 = vld [vmem:[#allocation2 + $0x148] ss:$16 sps:$4 sm:$0xff]   ;;  %v8842_v5 = vld [vmem:[#allocation2 + $0x1ac] ss:$16 sps:$4 sm:$0xff]   ;;  %s9814_s23 = sshll.u32 %s9900_s20, 4  ;;  %s9815_s23 = int_to_ptr.vmem [resolvable:$false] %s9814_s23 }
  0xb9   : > { %7590 = vmatmul.mubr.msk.bf16.vlgmr.msra.gmra.mrb[0].mxu0 %vm598_vm0, %v10191_v41  ;;  %v8860_v7 = vld [vmem:[#allocation7 + $0x4] ss:$8 sps:$4 sm:$0xff]   ;;  %v8858_v15 = vld [vmem:[#allocation7] ss:$8 sps:$4 sm:$0xff]   ;;  %v8878_v25 = vld [vmem:[#allocation7 + $0x34] ss:$8 sps:$4 sm:$0xff]  }
  0xba   : > { %1111 = vmatpush1.bf16.msra.mxu0 %v8774_v42  ;;  %967 = vmatprep.mubr.bf16.mxu0 %v9897_v0  ;;  %v8833_v42 = vld [vmem:[#allocation2 + $0x1e4] ss:$16 sps:$4 sm:$0xff]   ;;  %v8848_v10 = vld [vmem:[#allocation2 + $0x1cc] ss:$16 sps:$4 sm:$0xff]   ;;  %v8876_v26 = vld [vmem:[#allocation7 + $0x30] ss:$8 sps:$4 sm:$0xff]  }
  0xbb   : > { %1112 = vmatprep.subr.bf16.mxu0 %v8785_v43  ;;  %v7637_v43 = vld [vmem:[%s10161_s13 + $0x60] sm:$0xff]  ;;  %s9816_s21 = scalar_lea.vmem %s9815_s23, 32 }
  0xbc   : > { %v8896_v33 = vld [vmem:[#allocation7 + $0x64] ss:$8 sps:$4 sm:$0xff]  }
  0xbe   : > { %1113 = vmatpush1.bf16.msra.mxu0 %v8783_v47  ;;  %v8831_v47 = vld [vmem:[#allocation2 + $0x1e0] ss:$16 sps:$4 sm:$0xff]  }
  0xbf   : > { %7568 = vmatmul.mubr.msk.bf16.vlgmr.msra.gmra.mrb[8].mxu1 %vm598_vm0, %v549_v32  ;;  %1306 = vmatprep.subr.bf16.mxu0 %v8788_v48  ;;  %v8819_v32 = vld [vmem:[#allocation2 + $0x1a0] ss:$16 sps:$4 sm:$0xff]  }
  0xc0   : > { %700 = vmatprep.mubr.bf16.mxu1 %v9897_v0  ;;  %809 = vmatpush1.bf16.msra.mxu1 %v8777_v44  ;;  %v7638_v44 = vld [vmem:[%s10161_s13 + $0x68] sm:$0xff] }
  0xc1   : > { %810 = vmatprep.subr.bf16.mxu1 %v8782_v46  ;;  %7591 = vmatmul.mubr.msk.bf16.gmra.mrb[4].mxu0 %vm598_vm0, %v10199_v49  ;;  %v8830_v46 = vld [vmem:[#allocation2 + $0x16c] ss:$16 sps:$4 sm:$0xff]  }
  0xc2   : > { %1142 = vmatprep.mubr.bf16.mxu0 %v9897_v0 }
  0xc4   : > { %811 = vmatpush1.bf16.msra.mxu1 %v8780_v50  ;;  %v10279_v50 = vpack.c.bf16 %v7638_v44, %v7637_v43  ;;  %v8869_v43 = vld [vmem:[#allocation7 + $0x214] ss:$8 sps:$4 sm:$0xff]   ;;  %v8912_v44 = vld [vmem:[#allocation7 + $0x90] ss:$8 sps:$4 sm:$0xff]  }
  0xc5   : > { %978 = vmatprep.subr.bf16.mxu1 %v8791_v51  ;;  %v8828_v51 = vld [vmem:[#allocation2 + $0x168] ss:$16 sps:$4 sm:$0xff]  }
  0xc7   : > { %7569 = vmatmul.mubr.msk.bf16.gmra.mrb[12].mxu1 %vm598_vm0, %v557_v38  ;;  %v7635_v38 = vld [vmem:[%s10161_s13 + $0x50] sm:$0xff] }
  0xc8   : > { %840 = vmatprep.mubr.bf16.mxu1 %v9897_v0 }
  0xc9   : > { %7607 = vmatmul.mubr.msk.bf16.vlgmr.msra.gmra.mrb[0].mxu0 %vm598_vm0, %v10207_v54 }
  0xca   : > { %1307 = vmatpush1.bf16.msra.mxu0 %v8786_v55  ;;  %1152 = vmatprep.mubr.bf16.mxu0 %v9897_v0  ;;  %v8839_v55 = vld [vmem:[#allocation2 + $0x18c] ss:$16 sps:$4 sm:$0xff]  }
  0xcb   : > { %1308 = vmatprep.subr.bf16.mxu0 %v8797_v56  ;;  %v7639_v56 = vld [vmem:[%s10161_s13 + $0x70] sm:$0x3]  ;;  %s504_s13 = sand.u32 1, %s9876_s26  }
  0xcc   : > { %s505_s24 = scalar_lea.vmem [#allocation11], %s504_s13  ;;  %s7426_s15 = scalar_lea.sflag [#allocation4], %s504_s13 }
  0xcd   : > { %s7438_s22 = sshll.u32 %s505_s24, 4  ;;  %s10494_s22 = int_to_ptr.vmem [resolvable:$true] %s7438_s22 }
  0xce   : > { %1309 = vmatpush1.bf16.msra.mxu0 %v8795_v62  ;;  %s9810_s29 = scalar_lea.vmem %s10494_s22, 16  ;;  %p9817_p8 = scmp.lt.s32.totalorder %s10494_s22, %s9815_s23 }
  0xcf   : > { %7580 = vmatmul.mubr.msk.bf16.vlgmr.msra.gmra.mrb[8].mxu1 %vm598_vm0, %v10167_v13  ;;  %1491 = vmatprep.subr.bf16.mxu0 %v8800_v1  ;;  %v10231_v13 = vsel %vm537_vm1, %v1247_v8, %v1250_v9  ;;  %v8840_v9 = vld [vmem:[#allocation2 + $0x1a8] ss:$16 sps:$4 sm:$0xff]   ;;  %p9811_p2 = scmp.ne.s32.totalorder %s10494_s22, %s9810_s29  ;;  %p9818_p11 = scmp.lt.s32.totalorder %s9816_s21, %s9810_s29 }
  0xd0   : > { %850 = vmatprep.mubr.bf16.mxu1 %v9897_v0  ;;  %979 = vmatpush1.bf16.msra.mxu1 %v8789_v59  ;;  %v1798_v59 = vpack.c.bf16 %v7639_v56, %v7639_v56  ;;  %v8930_v56 = vld [vmem:[#allocation7 + $0xc0] ss:$8 sps:$4 sm:$0xff]  }
  0xd1   : > { %980 = vmatprep.subr.bf16.mxu1 %v8794_v60  ;;  %7608 = vmatmul.mubr.msk.bf16.gmra.mrb[4].mxu0 %vm598_vm0, %v10216_v63  ;;  %v8834_v60 = vld [vmem:[#allocation2 + $0x200] ss:$16 sps:$4 sm:$0xff]   ;;  %p9812_p4 = pnand %p9811_p2, %p10591_p3  ;;  %p9819_p5 = por %p9818_p11, %p9817_p8 }
  0xd2   : > { %1338 = vmatprep.mubr.bf16.mxu0 %v9897_v0  ;;  %v1822_v1 = vshll.u32 %v1798_v59, 16 }
  0xd3   : > { %p9813_p7 = pneg %p9812_p4 }
  0xd4   : > { %981 = vmatpush1.bf16.msra.mxu1 %v8792_v2  ;;  %v8837_v2 = vld [vmem:[#allocation2 + $0x188] ss:$16 sps:$4 sm:$0xff]   ;;  %v1824_v4 = vrot.slane %v1822_v1, 1  ;;  %v8911_v1 = vld [vmem:[#allocation7 + $0x284] ss:$8 sps:$4 sm:$0xff]  }
  0xd5   : > { %1163 = vmatprep.subr.bf16.mxu1 %v8803_v6  ;;  %v8843_v6 = vld [vmem:[#allocation2 + $0x220] ss:$16 sps:$4 sm:$0xff]   ;;  %p9820_p6 = pnand %p9819_p5, %p9813_p7 }
  0xd7   : > { %7581 = vmatmul.mubr.msk.bf16.gmra.mrb[12].mxu1 %vm598_vm0, %v10169_v14  ;;  %v1258_v14 = vrot.slane %v1256_v16, 1  ;;  %v8866_v16 = vld [vmem:[#allocation7 + $0x14] ss:$8 sps:$4 sm:$0xff]  }
  0xd8   : > { %1010 = vmatprep.mubr.bf16.mxu1 %v9897_v0 }
  0xd9   : > { %7619 = vmatmul.mubr.msk.bf16.vlgmr.msra.gmra.mrb[0].mxu0 %vm598_vm0, %v10231_v13  ;;  %v10241_v24 = vsel %vm537_vm1, %v1254_v20, %v1258_v14  ;;  %v8864_v20 = vld [vmem:[#allocation7 + $0x10] ss:$8 sps:$4 sm:$0xff]  }
  0xda   : > { %1492 = vmatpush1.bf16.msra.mxu0 %v8798_v11  ;;  %1348 = vmatprep.mubr.bf16.mxu0 %v9897_v0  ;;  %v8849_v14 = vld [vmem:[#allocation2 + $0x1e8] ss:$16 sps:$4 sm:$0xff]  }
  0xdb   : > { %1493 = vmatprep.subr.bf16.mxu0 %v8809_v12  ;;  %v2007_v12 = vrot.slane %v10279_v50, 1 }
  0xde   : > { %1494 = vmatpush1.bf16.msra.mxu0 %v8807_v19  ;;  %v8851_v19 = vld [vmem:[#allocation2 + $0x1ec] ss:$16 sps:$4 sm:$0xff]  }
  0xdf   : > { %7592 = vmatmul.mubr.msk.bf16.vlgmr.msra.gmra.mrb[8].mxu1 %vm598_vm0, %v10191_v41  ;;  %1676 = vmatprep.subr.bf16.mxu0 %v8812_v21  ;;  %v10270_v41 = vpack.c.bf16 %v7636_v39, %v7635_v38  ;;  %v8872_v21 = vld [vmem:[#allocation7 + $0x24] ss:$8 sps:$4 sm:$0xff]   ;;  %v8900_v38 = vld [vmem:[#allocation7 + $0x70] ss:$8 sps:$4 sm:$0xff]  }
  0xe0   : > { %1020 = vmatprep.mubr.bf16.mxu1 %v9897_v0  ;;  %1164 = vmatpush1.bf16.msra.mxu1 %v8801_v17  ;;  %v8846_v17 = vld [vmem:[#allocation2 + $0x1c8] ss:$16 sps:$4 sm:$0xff]   ;;  %v8908_v39 = vld [vmem:[#allocation7 + $0x84] ss:$8 sps:$4 sm:$0xff]  }
  0xe1   : > { %1165 = vmatprep.subr.bf16.mxu1 %v8806_v18  ;;  %7620 = vmatmul.mubr.msk.bf16.gmra.mrb[4].mxu0 %vm598_vm0, %v10241_v24  ;;  %v1810_v48 = vshll.u32 %v10270_v41, 16  ;;  %v1808_v52 = vshrl.u32 %v10270_v41, 16  ;;  %v2006_v11 = vrot.slane %v10270_v41, 1  ;;  %v2009_v18 = vrot.slane %v1798_v59, 1  ;;  %v8891_v59 = vld [vmem:[#allocation7 + $0x250] ss:$8 sps:$4 sm:$0xff]  }
  0xe2   : > { %1523 = vmatprep.mubr.bf16.mxu0 %v9897_v0 }
  0xe3   : > { %v1812_v53 = vrot.slane %v1810_v48, 1  ;;  %v8918_v48 = vld [vmem:[#allocation7 + $0xa0] ss:$8 sps:$4 sm:$0xff]  }
  0xe4   : > { %1166 = vmatpush1.bf16.msra.mxu1 %v8804_v22  ;;  %v8854_v22 = vld [vmem:[#allocation2 + $0x20c] ss:$16 sps:$4 sm:$0xff]  }
  0xe5   : > { %1359 = vmatprep.subr.bf16.mxu1 %v8815_v23  ;;  %v1813_v57 = vor.u32 %v1812_v53, %v1808_v52  ;;  %v8870_v23 = vld [vmem:[#allocation7 + $0x20] ss:$8 sps:$4 sm:$0xff]   ;;  %v8924_v52 = vld [vmem:[#allocation7 + $0xb0] ss:$8 sps:$4 sm:$0xff]   ;;  %v8932_v53 = vld [vmem:[#allocation7 + $0xc4] ss:$8 sps:$4 sm:$0xff]  }
  0xe7   : > { %7593 = vmatmul.mubr.msk.bf16.gmra.mrb[12].mxu1 %vm598_vm0, %v10199_v49  ;;  %v8836_v49 = vld [vmem:[#allocation2 + $0x204] ss:$16 sps:$4 sm:$0xff]  }
  0xe8   : > { %1195 = vmatprep.mubr.bf16.mxu1 %v9897_v0 }
  0xe9   : > { %7631 = vmatmul.mubr.msk.bf16.vlgmr.msra.gmra.mrb[0].mxu0 %vm598_vm0, %v10252_v29 }
  0xea   : > { %1677 = vmatpush1.bf16.msra.mxu0 %v8810_v27  ;;  %1533 = vmatprep.mubr.bf16.mxu0 %v9897_v0  ;;  %v8884_v27 = vld [vmem:[#allocation7 + $0x44] ss:$8 sps:$4 sm:$0xff]  }
  0xeb   : > { %1678 = vmatprep.subr.bf16.mxu0 %v8821_v28  ;;  %v8882_v28 = vld [vmem:[#allocation7 + $0x40] ss:$8 sps:$4 sm:$0xff]  }
  0xee   : > { %1679 = vmatpush1.bf16.msra.mxu0 %v8819_v32  ;;  %v8888_v32 = vld [vmem:[#allocation7 + $0x50] ss:$8 sps:$4 sm:$0xff]  }
  0xef   : > { %7609 = vmatmul.mubr.msk.bf16.vlgmr.msra.gmra.mrb[8].mxu1 %vm598_vm0, %v10207_v54  ;;  %1872 = vmatprep.subr.bf16.mxu0 %v8824_v34  ;;  %v1814_v54 = vshll.u32 %v10279_v50, 16  ;;  %v8855_v34 = vld [vmem:[#allocation2 + $0x228] ss:$16 sps:$4 sm:$0xff]  }
  0xf0   : > { %1205 = vmatprep.mubr.bf16.mxu1 %v9897_v0  ;;  %1360 = vmatpush1.bf16.msra.mxu1 %v8813_v30  ;;  %v8852_v30 = vld [vmem:[#allocation2 + $0x208] ss:$16 sps:$4 sm:$0xff]  }
  0xf1   : > { %1361 = vmatprep.subr.bf16.mxu1 %v8818_v31  ;;  %7632 = vmatmul.mubr.msk.bf16.gmra.mrb[4].mxu0 %vm598_vm0, %v10261_v37  ;;  %v1816_v58 = vrot.slane %v1814_v54, 1  ;;  %v8857_v31 = vld [vmem:[#allocation2 + $0x22c] ss:$16 sps:$4 sm:$0xff]   ;;  %v8879_v54 = vld [vmem:[#allocation7 + $0x230] ss:$8 sps:$4 sm:$0xff]  }
  0xf2   : > { %1708 = vmatprep.mubr.bf16.mxu0 %v9897_v0 }
  0xf3   : > { %v10294_v62 = vsel %vm537_vm1, %v1813_v57, %v1816_v58  ;;  %v8885_v57 = vld [vmem:[#allocation7 + $0x240] ss:$8 sps:$4 sm:$0xff]  }
  0xf4   : > { %1362 = vmatpush1.bf16.msra.mxu1 %v8816_v35  ;;  %v8863_v35 = vld [vmem:[#allocation7 + $0x204] ss:$8 sps:$4 sm:$0xff]  }
  0xf5   : > { %1544 = vmatprep.subr.bf16.mxu1 %v8827_v36  ;;  %v8894_v36 = vld [vmem:[#allocation7 + $0x60] ss:$8 sps:$4 sm:$0xff]  }
  0xf7   : > { %7610 = vmatmul.mubr.msk.bf16.gmra.mrb[12].mxu1 %vm598_vm0, %v10216_v63  ;;  %v1818_v63 = vshrl.u32 %v10279_v50, 16 }
  0xf8   : > { %1391 = vmatprep.mubr.bf16.mxu1 %v9897_v0 }
  0xf9   : > { %7648 = vmatmul.mubr.msk.bf16.vlgmr.msra.gmra.mrb[0].mxu0 %vm598_vm0, %v10270_v41  ;;  %v1820_v3 = vor.u32 %v1818_v63, %v1816_v58  ;;  %v8893_v58 = vld [vmem:[#allocation7 + $0x254] ss:$8 sps:$4 sm:$0xff]   ;;  %v8903_v63 = vld [vmem:[#allocation7 + $0x270] ss:$8 sps:$4 sm:$0xff]  }
  0xfa   : > { %1873 = vmatpush1.bf16.msra.mxu0 %v8822_v40  ;;  %1718 = vmatprep.mubr.bf16.mxu0 %v9897_v0  ;;  %v8906_v40 = vld [vmem:[#allocation7 + $0x80] ss:$8 sps:$4 sm:$0xff]  }
  0xfb   : > { %1874 = vmatprep.subr.bf16.mxu0 %v8833_v42  ;;  %v10304_v8 = vsel %vm537_vm1, %v1820_v3, %v1824_v4  ;;  %v8861_v42 = vld [vmem:[#allocation7 + $0x200] ss:$8 sps:$4 sm:$0xff]   ;;  %v8917_v3 = vld [vmem:[#allocation7 + $0x294] ss:$8 sps:$4 sm:$0xff]   ;;  %v8915_v4 = vld [vmem:[#allocation7 + $0x290] ss:$8 sps:$4 sm:$0xff]  }
  0xfe   : > { %1875 = vmatpush1.bf16.msra.mxu0 %v8831_v47  ;;  %v8875_v47 = vld [vmem:[#allocation7 + $0x224] ss:$8 sps:$4 sm:$0xff]  }
  0xff   : > { %7621 = vmatmul.mubr.msk.bf16.vlgmr.msra.gmra.mrb[8].mxu1 %vm598_vm0, %v10231_v13  ;;  %2057 = vmatprep.subr.bf16.mxu0 %v8836_v49  ;;  %v10315_v13 = vsel %vm873_vm2, %v2006_v11, %v2007_v12  ;;  %v8926_v49 = vld [vmem:[#allocation7 + $0xb4] ss:$8 sps:$4 sm:$0xff]  }
 0x100   : > { %1401 = vmatprep.mubr.bf16.mxu1 %v9897_v0  ;;  %1545 = vmatpush1.bf16.msra.mxu1 %v8825_v45  ;;  %v8920_v45 = vld [vmem:[#allocation7 + $0xa4] ss:$8 sps:$4 sm:$0xff]   ;;  %v8938_v11 = vld [vmem:[#allocation7 + $0xd4] ss:$8 sps:$4 sm:$0xff]  }
 0x101   : > { %1546 = vmatprep.subr.bf16.mxu1 %v8830_v46  ;;  %7649 = vmatmul.mubr.msk.bf16.gmra.mrb[4].mxu0 %vm598_vm0, %v10279_v50  ;;  %v8867_v46 = vld [vmem:[#allocation7 + $0x210] ss:$8 sps:$4 sm:$0xff]  }
 0x102   : > { %1904 = vmatprep.mubr.bf16.mxu0 %v9897_v0 }
 0x104   : > { %1547 = vmatpush1.bf16.msra.mxu1 %v8828_v51  ;;  %v8881_v51 = vld [vmem:[#allocation7 + $0x234] ss:$8 sps:$4 sm:$0xff]  }
 0x105   : > { %1729 = vmatprep.subr.bf16.mxu1 %v8839_v55  ;;  %v8887_v55 = vld [vmem:[#allocation7 + $0x244] ss:$8 sps:$4 sm:$0xff]  }
 0x107   : > { %7622 = vmatmul.mubr.msk.bf16.gmra.mrb[12].mxu1 %vm598_vm0, %v10241_v24  ;;  %v10324_v24 = vsel %vm873_vm2, %v2007_v12, %v2009_v18  ;;  %v8941_v12 = vld [vmem:[#allocation7 + $0x2d4] ss:$8 sps:$4 sm:$0xff]   ;;  %v8942_v18 = vld [vmem:[#allocation7 + $0xe0] ss:$8 sps:$4 sm:$0xff]  }
 0x108   : > { %1576 = vmatprep.mubr.bf16.mxu1 %v9897_v0 }
 0x109   : > { %7660 = vmatmul.mubr.msk.bf16.vlgmr.msra.gmra.mrb[0].mxu0 %vm598_vm0, %v10294_v62 }
 0x10a   : > { %2058 = vmatpush1.bf16.msra.mxu0 %v8834_v60  ;;  %1914 = vmatprep.mubr.bf16.mxu0 %v9897_v0  ;;  %v8899_v60 = vld [vmem:[#allocation7 + $0x264] ss:$8 sps:$4 sm:$0xff]  }
 0x10b   : > { %2059 = vmatprep.subr.bf16.mxu0 %v8845_v61  ;;  %v8897_v61 = vld [vmem:[#allocation7 + $0x260] ss:$8 sps:$4 sm:$0xff]  }
 0x10e   : > { %2060 = vmatpush1.bf16.msra.mxu0 %v8843_v6  ;;  %v8921_v6 = vld [vmem:[#allocation7 + $0x2a0] ss:$8 sps:$4 sm:$0xff]  }
 0x10f   : > { %7633 = vmatmul.mubr.msk.bf16.vlgmr.msra.gmra.mrb[8].mxu1 %vm598_vm0, %v10252_v29  ;;  %2625 = vmatprep.subr.bf16.mxu0 %v8860_v7  ;;  %v8890_v29 = vld [vmem:[#allocation7 + $0x54] ss:$8 sps:$4 sm:$0xff]  }
 0x110   : > { %1586 = vmatprep.mubr.bf16.mxu1 %v9897_v0  ;;  %1730 = vmatpush1.bf16.msra.mxu1 %v8837_v2  ;;  %v8909_v2 = vld [vmem:[#allocation7 + $0x280] ss:$8 sps:$4 sm:$0xff]   ;;  %v8929_v7 = vld [vmem:[#allocation7 + $0x2b4] ss:$8 sps:$4 sm:$0xff]  }
 0x111   : > { %1731 = vmatprep.subr.bf16.mxu1 %v8842_v5  ;;  %7661 = vmatmul.mubr.msk.bf16.gmra.mrb[4].mxu0 %vm598_vm0, %v10304_v8  ;;  %v8923_v5 = vld [vmem:[#allocation7 + $0x2a4] ss:$8 sps:$4 sm:$0xff]  }
 0x112   : > { %2089 = vmatprep.mubr.bf16.mxu0 %v9897_v0 }
 0x114   : > { %1732 = vmatpush1.bf16.msra.mxu1 %v8840_v9  ;;  %v8935_v9 = vld [vmem:[#allocation7 + $0x2c4] ss:$8 sps:$4 sm:$0xff]  }
 0x115   : > { %1925 = vmatprep.subr.bf16.mxu1 %v8848_v10  ;;  %v8933_v10 = vld [vmem:[#allocation7 + $0x2c0] ss:$8 sps:$4 sm:$0xff]  }
 0x117   : > { %7634 = vmatmul.mubr.msk.bf16.gmra.mrb[12].mxu1 %vm598_vm0, %v10261_v37  ;;  %v8902_v37 = vld [vmem:[#allocation7 + $0x74] ss:$8 sps:$4 sm:$0xff]  }
 0x118   : > { %1761 = vmatprep.mubr.bf16.mxu1 %v9897_v0 }
 0x119   : > { %7672 = vmatmul.mubr.msk.bf16.vlgmr.msra.gmra.mrb[0].mxu0 %vm598_vm0, %v10315_v13 }
 0x11a   : > { %2099 = vmatprep.mubr.bf16.mxu0 %v9897_v0  ;;  %2626 = vmatpush1.bf16.msra.mxu0 %v8858_v15  ;;  %v8939_v15 = vld [vmem:[#allocation7 + $0x2d0] ss:$8 sps:$4 sm:$0xff]  }
 0x11b   : > { %2627 = vmatprep.subr.bf16.mxu0 %v8866_v16  ;;  %v8944_v16 = vld [vmem:[#allocation7 + $0xe4] ss:$8 sps:$4 sm:$0xff]  }
 0x11e   : > { %2628 = vmatpush1.bf16.msra.mxu0 %v8864_v20  ;;  %v8950_v20 = vld [vmem:[#allocation7 + $0xf4] ss:$8 sps:$4 sm:$0xff]  }
 0x11f   : > { %7650 = vmatmul.mubr.msk.bf16.vlgmr.msra.gmra.mrb[8].mxu1 %vm598_vm0, %v10270_v41  ;;  %2629 = vmatprep.subr.bf16.mxu0 %v8872_v21  ;;  %v8914_v41 = vld [vmem:[#allocation7 + $0x94] ss:$8 sps:$4 sm:$0xff]   ;;  %v8948_v21 = vld [vmem:[#allocation7 + $0xf0] ss:$8 sps:$4 sm:$0xff]  }
 0x120   : > { %1771 = vmatprep.mubr.bf16.mxu1 %v9897_v0  ;;  %1926 = vmatpush1.bf16.msra.mxu1 %v8846_v17  ;;  %v8947_v17 = vld [vmem:[#allocation7 + $0x2e4] ss:$8 sps:$4 sm:$0xff]  }
 0x121   : > { %1927 = vmatprep.subr.bf16.mxu1 %v8851_v19  ;;  %7673 = vmatmul.mubr.msk.bf16.gmra.mrb[4].mxu0 %vm598_vm0, %v10324_v24  ;;  %v8945_v19 = vld [vmem:[#allocation7 + $0x2e0] ss:$8 sps:$4 sm:$0xff]  }
 0x122   : > { %2630 = vmatpush1.bf16.msra.mxu0 %v8870_v23  ;;  %v8956_v23 = vld [vmem:[#allocation7 + $0x104] ss:$8 sps:$4 sm:$0xff]  }
 0x123   : > { %2631 = vmatprep.subr.bf16.mxu0 %v8878_v25 }
 0x124   : > { %1928 = vmatpush1.bf16.msra.mxu1 %v8849_v14  ;;  %v8953_v14 = vld [vmem:[#allocation7 + $0x2f4] ss:$8 sps:$4 sm:$0xff]  }
 0x125   : > { %2110 = vmatprep.subr.bf16.mxu1 %v8854_v22  ;;  %v8951_v22 = vld [vmem:[#allocation7 + $0x2f0] ss:$8 sps:$4 sm:$0xff]  }
 0x126   : > { %2632 = vmatpush1.bf16.msra.mxu0 %v8876_v26 }
 0x127   : > { %7651 = vmatmul.mubr.msk.bf16.gmra.mrb[12].mxu1 %vm598_vm0, %v10279_v50  ;;  %2633 = vmatprep.subr.bf16.mxu0 %v8884_v27  ;;  %v8873_v50 = vld [vmem:[#allocation7 + $0x220] ss:$8 sps:$4 sm:$0xff]  }
 0x128   : > { %1957 = vmatprep.mubr.bf16.mxu1 %v9897_v0 }
 0x12a   : > { %2634 = vmatpush1.bf16.msra.mxu0 %v8882_v28 }
 0x12b   : > { %2635 = vmatprep.subr.bf16.mxu0 %v8890_v29 }
 0x12e   : > { %2636 = vmatpush1.bf16.msra.mxu0 %v8888_v32 }
 0x12f   : > { %7662 = vmatmul.mubr.msk.bf16.vlgmr.msra.gmra.mrb[8].mxu1 %vm598_vm0, %v10294_v62  ;;  %2637 = vmatprep.subr.bf16.mxu0 %v8896_v33  ;;  %v8905_v62 = vld [vmem:[#allocation7 + $0x274] ss:$8 sps:$4 sm:$0xff]   ;;  %v2181_v33 = vlaneseq }
 0x130   : > { %1967 = vmatprep.mubr.bf16.mxu1 %v9897_v0  ;;  %2111 = vmatpush1.bf16.msra.mxu1 %v8852_v30 }
 0x131   : > { %2112 = vmatprep.subr.bf16.mxu1 %v8857_v31 }
 0x132   : > { %2638 = vmatpush1.bf16.msra.mxu0 %v8894_v36 }
 0x133   : > { %2639 = vmatprep.subr.bf16.mxu0 %v8902_v37  ;;  %v10349_v37 = vld [vmem:[%s10536_s2] sm:$0xf] }
 0x134   : > { %2113 = vmatpush1.bf16.msra.mxu1 %v8855_v34  ;;  %v10342_v34 = vshrl.u32 %v2181_v33, 7 }
 0x135   : > { %3116 = vmatprep.subr.bf16.mxu1 %v8863_v35 }
 0x136   : > { %2640 = vmatpush1.bf16.msra.mxu0 %v8900_v38  ;;  %v2183_v35 = vsub.s32 0, %v10342_v34  ;;  %v2187_v36 = vsub.s32 1, %v10342_v34  ;;  %v2191_v33 = vsub.s32 2, %v10342_v34 }
 0x137   : > { %7663 = vmatmul.mubr.msk.bf16.gmra.mrb[12].mxu1 %vm598_vm0, %v10304_v8  ;;  %2641 = vmatprep.subr.bf16.mxu0 %v8908_v39  ;;  %v8927_v8 = vld [vmem:[#allocation7 + $0x2b0] ss:$8 sps:$4 sm:$0xff]  }
 0x138   : > { %2142 = vmatprep.mubr.bf16.mxu1 %v9897_v0  ;;  %v2184_v38 = vrot.slane %v10349_v37, %v2183_v35 }
 0x13a   : > { %2642 = vmatpush1.bf16.msra.mxu0 %v8906_v40  ;;  %v2188_v40 = vrot.slane %v10349_v37, %v2187_v36 }
 0x13b   : > { %2643 = vmatprep.subr.bf16.mxu0 %v8914_v41 }
 0x13e   : > { %2644 = vmatpush1.bf16.msra.mxu0 %v8912_v44 }
 0x13f   : > { %7674 = vmatmul.mubr.msk.bf16.vlgmr.msra.gmra.mrb[8].mxu1 %vm598_vm0, %v10315_v13  ;;  %2645 = vmatprep.subr.bf16.mxu0 %v8920_v45  ;;  %v8936_v13 = vld [vmem:[#allocation7 + $0xd0] ss:$8 sps:$4 sm:$0xff]  }
 0x140   : > { %2152 = vmatprep.mubr.bf16.mxu1 %v9897_v0  ;;  %3117 = vmatpush1.bf16.msra.mxu1 %v8861_v42 }
 0x141   : > { %3118 = vmatprep.subr.bf16.mxu1 %v8869_v43 }
 0x142   : > { %2646 = vmatpush1.bf16.msra.mxu0 %v8918_v48 }
 0x143   : > { %2647 = vmatprep.subr.bf16.mxu0 %v8926_v49 }
 0x144   : > { %3119 = vmatpush1.bf16.msra.mxu1 %v8867_v46 }
 0x145   : > { %3120 = vmatprep.subr.bf16.mxu1 %v8875_v47 }
 0x146   : > { %2648 = vmatpush1.bf16.msra.mxu0 %v8924_v52 }
 0x147   : > { %7675 = vmatmul.mubr.msk.bf16.gmra.mrb[12].mxu1 %vm598_vm0, %v10324_v24  ;;  %2649 = vmatprep.subr.bf16.mxu0 %v8932_v53  ;;  %v8959_v24 = vld [vmem:[#allocation7 + $0x304] ss:$8 sps:$4 sm:$0xff]  }
 0x148   : > { %3121 = vmatpush1.bf16.msra.mxu1 %v8873_v50 }
 0x149   : > { %3122 = vmatprep.subr.bf16.mxu1 %v8881_v51 }
 0x14a   : > { %2650 = vmatpush1.bf16.msra.mxu0 %v8930_v56 }
 0x14b   : > { %2651 = vmatprep.subr.bf16.mxu0 %v8938_v11  ;;  %v8960_v11 = vld [vmem:[#allocation7 + $0x110] ss:$8 sps:$4 sm:$0xff]  }
 0x14c   : > { %3123 = vmatpush1.bf16.msra.mxu1 %v8879_v54 }
 0x14d   : > { %3124 = vmatprep.subr.bf16.mxu1 %v8887_v55 }
 0x14e   : > { %2652 = vmatpush1.bf16.msra.mxu0 %v8936_v13 }
 0x14f   : > { %2653 = vmatprep.subr.bf16.mxu0 %v8944_v16  ;;  %v8968_v16 = vld [vmem:[#allocation7 + $0x124] ss:$8 sps:$4 sm:$0xff]  }
 0x150   : > { %3125 = vmatpush1.bf16.msra.mxu1 %v8885_v57 }
 0x151   : > { %3126 = vmatprep.subr.bf16.mxu1 %v8893_v58 }
 0x152   : > { %2654 = vmatpush1.bf16.msra.mxu0 %v8942_v18 }
 0x153   : > { %2655 = vmatprep.subr.bf16.mxu0 %v8950_v20 }
 0x154   : > { %3127 = vmatpush1.bf16.msra.mxu1 %v8891_v59 }
 0x155   : > { %3128 = vmatprep.subr.bf16.mxu1 %v8899_v60 }
 0x156   : > { %2656 = vmatpush1.bf16.msra.mxu0 %v8948_v21  ;;  %v8966_v21 = vld [vmem:[#allocation7 + $0x120] ss:$8 sps:$4 sm:$0xff]  }
 0x157   : > { %2678 = vmatprep.subr.bf16.mxu0 %v8956_v23  ;;  %v8974_v23 = vld [vmem:[#allocation7 + $0x134] ss:$8 sps:$4 sm:$0xff]  }
 0x158   : > { %3129 = vmatpush1.bf16.msra.mxu1 %v8897_v61 }
 0x159   : > { %3130 = vmatprep.subr.bf16.mxu1 %v8905_v62 }
 0x15c   : > { %3131 = vmatpush1.bf16.msra.mxu1 %v8903_v63  ;;  %v8954_v63 = vld [vmem:[#allocation7 + $0x100] ss:$8 sps:$4 sm:$0xff]  }
 0x15d   : > { %3132 = vmatprep.subr.bf16.mxu1 %v8911_v1  ;;  %v8957_v1 = vld [vmem:[#allocation7 + $0x300] ss:$8 sps:$4 sm:$0xff]  }
 0x160   : > { %3133 = vmatpush1.bf16.msra.mxu1 %v8909_v2 }
 0x161   : > { %3134 = vmatprep.subr.bf16.mxu1 %v8917_v3 }
 0x164   : > { %3135 = vmatpush1.bf16.msra.mxu1 %v8915_v4 }
 0x165   : > { %3136 = vmatprep.subr.bf16.mxu1 %v8923_v5  ;;  %v8962_v5 = vld [vmem:[#allocation7 + $0x114] ss:$8 sps:$4 sm:$0xff]  }
 0x168   : > { %3137 = vmatpush1.bf16.msra.mxu1 %v8921_v6  ;;  %v8965_v6 = vld [vmem:[#allocation7 + $0x314] ss:$8 sps:$4 sm:$0xff]  }
 0x169   : > { %3138 = vmatprep.subr.bf16.mxu1 %v8929_v7 }
 0x16c   : > { %3139 = vmatpush1.bf16.msra.mxu1 %v8927_v8 }
 0x16d   : > { %3140 = vmatprep.subr.bf16.mxu1 %v8935_v9 }
 0x170   : > { %3141 = vmatpush1.bf16.msra.mxu1 %v8933_v10 }
 0x171   : > { %3142 = vmatprep.subr.bf16.mxu1 %v8941_v12  ;;  %v8963_v12 = vld [vmem:[#allocation7 + $0x310] ss:$8 sps:$4 sm:$0xff]  }
 0x174   : > { %3143 = vmatpush1.bf16.msra.mxu1 %v8939_v15 }
 0x175   : > { %3144 = vmatprep.subr.bf16.mxu1 %v8947_v17  ;;  %v8971_v17 = vld [vmem:[#allocation7 + $0x324] ss:$8 sps:$4 sm:$0xff]  }
 0x178   : > { %3145 = vmatpush1.bf16.msra.mxu1 %v8945_v19 }
 0x179   : > { %3146 = vmatprep.subr.bf16.mxu1 %v8953_v14 }
 0x17c   : > { %3147 = vmatpush1.bf16.msra.mxu1 %v8951_v22  ;;  %v8969_v22 = vld [vmem:[#allocation7 + $0x320] ss:$8 sps:$4 sm:$0xff]  }
 0x17d   : > { %3169 = vmatprep.subr.bf16.mxu1 %v8959_v24  ;;  %v8977_v24 = vld [vmem:[#allocation7 + $0x334] ss:$8 sps:$4 sm:$0xff]  }
 0x182   : > { %v639_v25 = vpop.f32.mrb[0].mxu1 }
 0x183   : > { %v641_v26 = vpop.f32.mrb[1].mxu1 }
 0x184   : > { %v643_v27 = vpop.f32.mrb[2].mxu1 }
 0x185   : > { %v645_v28 = vpop.f32.mrb[3].mxu1 }
 0x18a   : > { %v649_v29 = vpop.f32.mrb[4].mxu1 }
 0x18b   : > { %v651_v30 = vpop.f32.mrb[5].mxu1 }
 0x18c   : > { %v653_v31 = vpop.f32.mrb[6].mxu1 }
 0x18d   : > { %v655_v32 = vpop.f32.mrb[7].mxu1 }
 0x1ec   : > { %v2091_v39 = vpop.f32.mrb[0].mxu0 }
 0x1ed   : > { %v8482_v41 = vadd.f32 %v2091_v39, %v639_v25  ;;  %v2093_v42 = vpop.f32.mrb[1].mxu0  ;;  %v8972_v25 = vld [vmem:[#allocation7 + $0x130] ss:$8 sps:$4 sm:$0xff]  }
 0x1ee   : > { %v8483_v43 = vadd.f32 %v2093_v42, %v641_v26  ;;  %v2095_v44 = vpop.f32.mrb[2].mxu0  ;;  %v8975_v26 = vld [vmem:[#allocation7 + $0x330] ss:$8 sps:$4 sm:$0xff]   ;;  %v8995_v42 = vld [vmem:[#allocation7 + $0x364] ss:$8 sps:$4 sm:$0xff]  }
 0x1ef   : > { %v2201_v45 = vadd.f32 %v8482_v41, %v2184_v38  ;;  %v8484_v46 = vadd.f32 %v2095_v44, %v643_v27  ;;  %v2097_v47 = vpop.f32.mrb[3].mxu0  ;;  %v8980_v27 = vld [vmem:[#allocation7 + $0x144] ss:$8 sps:$4 sm:$0xff]   ;;  %v8987_v39 = vld [vmem:[#allocation7 + $0x350] ss:$8 sps:$4 sm:$0xff]  }
 0x1f0   : > { %v2202_v48 = vadd.f32 %v8483_v43, %v2188_v40  ;;  %v8485_v49 = vadd.f32 %v2097_v47, %v645_v28  ;;  %v8983_v28 = vld [vmem:[#allocation7 + $0x344] ss:$8 sps:$4 sm:$0xff]   ;;  %v2192_v43 = vrot.slane %v10349_v37, %v2191_v33  ;;  %v8998_v47 = vld [vmem:[#allocation7 + $0x174] ss:$8 sps:$4 sm:$0xff]  }
 0x1f1   : > { %v2205_v50 = vadd.f32 %v8484_v46, %v2184_v38  ;;  %v2217_v51 = vmax.f32 %v2201_v45, 0.0  ;;  %v8992_v41 = vld [vmem:[#allocation7 + $0x164] ss:$8 sps:$4 sm:$0xff]   ;;  %v8990_v45 = vld [vmem:[#allocation7 + $0x160] ss:$8 sps:$4 sm:$0xff]  }
 0x1f2   : > { %v2206_v52 = vadd.f32 %v8485_v49, %v2188_v40  ;;  %v2218_v53 = vmax.f32 %v2202_v48, 0.0  ;;  %v8993_v46 = vld [vmem:[#allocation7 + $0x360] ss:$8 sps:$4 sm:$0xff]   ;;  %v9001_v48 = vld [vmem:[#allocation7 + $0x374] ss:$8 sps:$4 sm:$0xff]  }
 0x1f3   : > { %v2221_v54 = vmax.f32 %v2205_v50, 0.0 }
 0x1f4   : > { %v2222_v55 = vmax.f32 %v2206_v52, 0.0  ;;  %v2101_v56 = vpop.f32.mrb[4].mxu0 }
 0x1f5   : > { %v2233_v57 = vpack.c.bf16 %v2221_v54, %v2217_v51  ;;  %v8486_v58 = vadd.f32 %v2101_v56, %v649_v29  ;;  %v2103_v59 = vpop.f32.mrb[5].mxu0  ;;  %v8978_v29 = vld [vmem:[#allocation7 + $0x140] ss:$8 sps:$4 sm:$0xff]   ;;  %v8996_v54 = vld [vmem:[#allocation7 + $0x170] ss:$8 sps:$4 sm:$0xff]  }
 0x1f6   : > { %v8487_v60 = vadd.f32 %v2103_v59, %v651_v30  ;;  %v2105_v61 = vpop.f32.mrb[6].mxu0  ;;  %v2234_v62 = vpack.c.bf16 %v2222_v55, %v2218_v53  ;;  %v8981_v30 = vld [vmem:[#allocation7 + $0x340] ss:$8 sps:$4 sm:$0xff]   ;;  %v8999_v55 = vld [vmem:[#allocation7 + $0x370] ss:$8 sps:$4 sm:$0xff]  }
 0x1f7   : > { %v2209_v2 = vadd.f32 %v8486_v58, %v2184_v38  ;;  %v8488_v3 = vadd.f32 %v2105_v61, %v653_v31  ;;  %v2107_v4 = vpop.f32.mrb[7].mxu0  ;;  %v8986_v31 = vld [vmem:[#allocation7 + $0x154] ss:$8 sps:$4 sm:$0xff]   ;;  %v9007_v58 = vld [vmem:[#allocation7 + $0x384] ss:$8 sps:$4 sm:$0xff]  }
 0x1f8   : > { %v2210_v7 = vadd.f32 %v8487_v60, %v2188_v40  ;;  %v8489_v8 = vadd.f32 %v2107_v4, %v655_v32  ;;  %2657 = vmatprep.mubr.bf16.mxu0 %v2234_v62  ;;  %3148 = vmatprep.mubr.bf16.mxu1 %v2234_v62  ;;  %v8989_v32 = vld [vmem:[#allocation7 + $0x354] ss:$8 sps:$4 sm:$0xff]  }
 0x1f9   : > { %v2213_v9 = vadd.f32 %v8488_v3, %v2184_v38  ;;  %2658 = vmatmul.mubr.bf16.vlgmr.msra.gmra.mrb[8].mxu0 %v2233_v57  ;;  %3149 = vmatmul.mubr.bf16.vlgmr.msra.gmra.mrb[16].mxu1 %v2233_v57  ;;  %v2225_v13 = vmax.f32 %v2209_v2, 0.0  ;;  %v8984_v38 = vld [vmem:[#allocation7 + $0x150] ss:$8 sps:$4 sm:$0xff]   ;;  %v9002_v2 = vld [vmem:[#allocation7 + $0x180] ss:$8 sps:$4 sm:$0xff]  }
 0x1fa   : > { %v2214_v10 = vadd.f32 %v8489_v8, %v2188_v40  ;;  %2679 = vmatpush1.bf16.msra.mxu0 %v8954_v63  ;;  %3170 = vmatpush1.bf16.msra.mxu1 %v8957_v1  ;;  %v2226_v18 = vmax.f32 %v2210_v7, 0.0  ;;  %v2195_v40 = vsub.s32 3, %v10342_v34  ;;  %v9005_v3 = vld [vmem:[#allocation7 + $0x380] ss:$8 sps:$4 sm:$0xff]   ;;  %v9013_v7 = vld [vmem:[#allocation7 + $0x394] ss:$8 sps:$4 sm:$0xff]  }
 0x1fb   : > { %v2229_v15 = vmax.f32 %v2213_v9, 0.0  ;;  %2680 = vmatprep.subr.bf16.mxu0 %v8962_v5  ;;  %3171 = vmatprep.subr.bf16.mxu1 %v8965_v6  ;;  %v9010_v6 = vld [vmem:[#allocation7 + $0x194] ss:$8 sps:$4 sm:$0xff]  }
 0x1fc   : > { %v2230_v19 = vmax.f32 %v2214_v10, 0.0  ;;  %v2196_v44 = vrot.slane %v10349_v37, %v2195_v40  ;;  %v9004_v37 = vld [vmem:[#allocation7 + $0x184] ss:$8 sps:$4 sm:$0xff]  }
 0x1fd   : > { %v2237_v20 = vpack.c.bf16 %v2229_v15, %v2225_v13  ;;  %v9008_v15 = vld [vmem:[#allocation7 + $0x190] ss:$8 sps:$4 sm:$0xff]  }
 0x1fe   : > { %2681 = vmatpush1.bf16.msra.mxu0 %v8960_v11  ;;  %3172 = vmatpush1.bf16.msra.mxu1 %v8963_v12  ;;  %v2238_v14 = vpack.c.bf16 %v2230_v19, %v2226_v18  ;;  %v9016_v18 = vld [vmem:[#allocation7 + $0x1a4] ss:$8 sps:$4 sm:$0xff]  }
 0x1ff   : > { %2682 = vmatprep.subr.bf16.mxu0 %v8968_v16  ;;  %3173 = vmatprep.subr.bf16.mxu1 %v8971_v17  ;;  %v9011_v16 = vld [vmem:[#allocation7 + $0x390] ss:$8 sps:$4 sm:$0xff]   ;;  %v9019_v19 = vld [vmem:[#allocation7 + $0x3a4] ss:$8 sps:$4 sm:$0xff]  }
 0x200   : > { %2667 = vmatprep.mubr.bf16.mxu0 %v2238_v14  ;;  %3158 = vmatprep.mubr.bf16.mxu1 %v2238_v14 }
 0x201   : > { %2668 = vmatmul.mubr.bf16.gmra.mrb[12].mxu0 %v2237_v20  ;;  %3159 = vmatmul.mubr.bf16.gmra.mrb[20].mxu1 %v2237_v20 }
 0x202   : > { %2683 = vmatpush1.bf16.msra.mxu0 %v8966_v21  ;;  %3174 = vmatpush1.bf16.msra.mxu1 %v8969_v22 }
 0x203   : > { %2684 = vmatprep.subr.bf16.mxu0 %v8974_v23  ;;  %3175 = vmatprep.subr.bf16.mxu1 %v8977_v24  ;;  %v9014_v24 = vld [vmem:[#allocation7 + $0x1a0] ss:$8 sps:$4 sm:$0xff]  }
 0x206   : > { %2685 = vmatpush1.bf16.msra.mxu0 %v8972_v25  ;;  %3176 = vmatpush1.bf16.msra.mxu1 %v8975_v26  ;;  %v9017_v25 = vld [vmem:[#allocation7 + $0x3a0] ss:$8 sps:$4 sm:$0xff]  }
 0x207   : > { %2686 = vmatprep.subr.bf16.mxu0 %v8980_v27  ;;  %3177 = vmatprep.subr.bf16.mxu1 %v8983_v28  ;;  %v9022_v27 = vld [vmem:[#allocation7 + $0x1b4] ss:$8 sps:$4 sm:$0xff]  }
 0x208   : > { %v9025_v28 = vld [vmem:[#allocation7 + $0x3b4] ss:$8 sps:$4 sm:$0xff]  }
 0x20a   : > { %2687 = vmatpush1.bf16.msra.mxu0 %v8978_v29  ;;  %3178 = vmatpush1.bf16.msra.mxu1 %v8981_v30  ;;  %v9020_v29 = vld [vmem:[#allocation7 + $0x1b0] ss:$8 sps:$4 sm:$0xff]  }
 0x20b   : > { %2688 = vmatprep.subr.bf16.mxu0 %v8986_v31  ;;  %3179 = vmatprep.subr.bf16.mxu1 %v8989_v32  ;;  %v9023_v30 = vld [vmem:[#allocation7 + $0x3b0] ss:$8 sps:$4 sm:$0xff]   ;;  %v9028_v31 = vld [vmem:[#allocation7 + $0x1c4] ss:$8 sps:$4 sm:$0xff]  }
 0x20c   : > { %v9031_v32 = vld [vmem:[#allocation7 + $0x3c4] ss:$8 sps:$4 sm:$0xff]  }
 0x20e   : > { %2689 = vmatpush1.bf16.msra.mxu0 %v8984_v38  ;;  %3180 = vmatpush1.bf16.msra.mxu1 %v8987_v39  ;;  %v9026_v38 = vld [vmem:[#allocation7 + $0x1c0] ss:$8 sps:$4 sm:$0xff]  }
 0x20f   : > { %2690 = vmatprep.subr.bf16.mxu0 %v8992_v41  ;;  %3181 = vmatprep.subr.bf16.mxu1 %v8995_v42  ;;  %v9029_v39 = vld [vmem:[#allocation7 + $0x3c0] ss:$8 sps:$4 sm:$0xff]   ;;  %v9034_v41 = vld [vmem:[#allocation7 + $0x1d4] ss:$8 sps:$4 sm:$0xff]  }
 0x210   : > { %v9037_v42 = vld [vmem:[#allocation7 + $0x3d4] ss:$8 sps:$4 sm:$0xff]  }
 0x212   : > { %v2144_v49 = vpop.f32.mrb[8].mxu1  ;;  %2691 = vmatpush1.bf16.msra.mxu0 %v8990_v45  ;;  %3182 = vmatpush1.bf16.msra.mxu1 %v8993_v46  ;;  %v9040_v45 = vld [vmem:[#allocation7 + $0x1e4] ss:$8 sps:$4 sm:$0xff]  }
 0x213   : > { %v2203_v50 = vadd.f32 %v2192_v43, %v2144_v49  ;;  %v2146_v51 = vpop.f32.mrb[9].mxu1  ;;  %2692 = vmatprep.subr.bf16.mxu0 %v8998_v47  ;;  %3183 = vmatprep.subr.bf16.mxu1 %v9001_v48  ;;  %v9043_v46 = vld [vmem:[#allocation7 + $0x3e4] ss:$8 sps:$4 sm:$0xff]   ;;  %v9038_v47 = vld [vmem:[#allocation7 + $0x1e0] ss:$8 sps:$4 sm:$0xff]  }
 0x214   : > { %v2204_v52 = vadd.f32 %v2196_v44, %v2146_v51  ;;  %v2148_v53 = vpop.f32.mrb[10].mxu1  ;;  %v9041_v48 = vld [vmem:[#allocation7 + $0x3e0] ss:$8 sps:$4 sm:$0xff]   ;;  %v9046_v49 = vld [vmem:[#allocation7 + $0x1f4] ss:$8 sps:$4 sm:$0xff]  }
 0x215   : > { %v2207_v56 = vadd.f32 %v2192_v43, %v2148_v53  ;;  %v2150_v57 = vpop.f32.mrb[11].mxu1  ;;  %v2219_v60 = vmax.f32 %v2203_v50, 0.0  ;;  %v9049_v50 = vld [vmem:[#allocation7 + $0x3f4] ss:$8 sps:$4 sm:$0xff]   ;;  %v9044_v51 = vld [vmem:[#allocation7 + $0x1f0] ss:$8 sps:$4 sm:$0xff]  }
 0x216   : > { %v2208_v59 = vadd.f32 %v2196_v44, %v2150_v57  ;;  %v2220_v62 = vmax.f32 %v2204_v52, 0.0  ;;  %2693 = vmatpush1.bf16.msra.mxu0 %v8996_v54  ;;  %3184 = vmatpush1.bf16.msra.mxu1 %v8999_v55  ;;  %v9047_v52 = vld [vmem:[#allocation7 + $0x3f0] ss:$8 sps:$4 sm:$0xff]  }
 0x217   : > { %v2223_v61 = vmax.f32 %v2207_v56, 0.0  ;;  %2694 = vmatprep.subr.bf16.mxu0 %v9004_v37  ;;  %3185 = vmatprep.subr.bf16.mxu1 %v9007_v58 }
 0x218   : > { %v2224_v63 = vmax.f32 %v2208_v59, 0.0 }
 0x219   : > { %v10365_v1 = vpack.c.bf16 %v2223_v61, %v2219_v60 }
 0x21a   : > { %v2236_v4 = vpack.c.bf16 %v2224_v63, %v2220_v62  ;;  %v2154_v5 = vpop.f32.mrb[12].mxu1  ;;  %2695 = vmatpush1.bf16.msra.mxu0 %v9002_v2  ;;  %3186 = vmatpush1.bf16.msra.mxu1 %v9005_v3 }
 0x21b   : > { %v2211_v8 = vadd.f32 %v2192_v43, %v2154_v5  ;;  %v2156_v9 = vpop.f32.mrb[13].mxu1  ;;  %2696 = vmatprep.subr.bf16.mxu0 %v9010_v6  ;;  %3187 = vmatprep.subr.bf16.mxu1 %v9013_v7 }
 0x21c   : > { %v2212_v10 = vadd.f32 %v2196_v44, %v2156_v9  ;;  %v2158_v11 = vpop.f32.mrb[14].mxu1  ;;  %2710 = vmatprep.mubr.bf16.mxu0 %v2236_v4  ;;  %3201 = vmatprep.mubr.bf16.mxu1 %v2236_v4 }
 0x21d   : > { %v2215_v12 = vadd.f32 %v2192_v43, %v2158_v11  ;;  %v2160_v13 = vpop.f32.mrb[15].mxu1  ;;  %v2227_v20 = vmax.f32 %v2211_v8, 0.0  ;;  %v9032_v43 = vld [vmem:[#allocation7 + $0x1d0] ss:$8 sps:$4 sm:$0xff]  }
 0x21e   : > { %v2216_v17 = vadd.f32 %v2196_v44, %v2160_v13  ;;  %v2228_v21 = vmax.f32 %v2212_v10, 0.0  ;;  %2697 = vmatpush1.bf16.msra.mxu0 %v9008_v15  ;;  %3188 = vmatpush1.bf16.msra.mxu1 %v9011_v16  ;;  %v9035_v44 = vld [vmem:[#allocation7 + $0x3d0] ss:$8 sps:$4 sm:$0xff]  }
 0x21f   : > { %v2231_v14 = vmax.f32 %v2215_v12, 0.0  ;;  %2698 = vmatprep.subr.bf16.mxu0 %v9016_v18  ;;  %3189 = vmatprep.subr.bf16.mxu1 %v9019_v19  ;;  %v9056_v18 = vld [vmem:[#allocation5 + $0x204] ss:$16 sps:$4 sm:$0xff]   ;;  %v9059_v19 = vld [vmem:[#allocation5 + $0x20c] ss:$16 sps:$4 sm:$0xff]  }
 0x220   : > { %v2232_v22 = vmax.f32 %v2216_v17, 0.0 }
 0x221   : > { %v2239_v23 = vpack.c.bf16 %v2231_v14, %v2227_v20  ;;  %v9050_v20 = vld [vmem:[%s10540_s6] sm:$0xff]   ;;  %v9051_v14 = vld [vmem:[%s10540_s6 + $0xc] sm:$0xff]  }
 0x222   : > { %v2240_v26 = vpack.c.bf16 %v2232_v22, %v2228_v21  ;;  %2699 = vmatpush1.bf16.msra.mxu0 %v9014_v24  ;;  %3190 = vmatpush1.bf16.msra.mxu1 %v9017_v25  ;;  %v9054_v21 = vld [vmem:[#allocation5 + $0x200] ss:$16 sps:$4 sm:$0xff]   ;;  %v9057_v22 = vld [vmem:[#allocation5 + $0x208] ss:$16 sps:$4 sm:$0xff]   ;;  %v9065_v24 = vld [vmem:[#allocation5 + $0x22c] ss:$16 sps:$4 sm:$0xff]  }
 0x223   : > { %2700 = vmatprep.subr.bf16.mxu0 %v9022_v27  ;;  %3191 = vmatprep.subr.bf16.mxu1 %v9025_v28  ;;  %v9060_v25 = vld [vmem:[#allocation5 + $0x220] ss:$16 sps:$4 sm:$0xff]   ;;  %v9068_v27 = vld [vmem:[#allocation5 + $0x244] ss:$16 sps:$4 sm:$0xff]   ;;  %v9071_v28 = vld [vmem:[#allocation5 + $0x24c] ss:$16 sps:$4 sm:$0xff]  }
 0x226   : > { %2701 = vmatpush1.bf16.msra.mxu0 %v9020_v29  ;;  %3192 = vmatpush1.bf16.msra.mxu1 %v9023_v30  ;;  %v9052_v29 = vld [vmem:[%s10540_s6 + $0x8] ss:$0 sps:$4 sm:$0x11]   ;;  %v9053_v30 = vld [vmem:[%s10540_s6 + $0x14] ss:$0 sps:$4 sm:$0x11]  }
 0x227   : > { %2702 = vmatprep.subr.bf16.mxu0 %v9028_v31  ;;  %3193 = vmatprep.subr.bf16.mxu1 %v9031_v32  ;;  %v9066_v31 = vld [vmem:[#allocation5 + $0x240] ss:$16 sps:$4 sm:$0xff]   ;;  %v9069_v32 = vld [vmem:[#allocation5 + $0x248] ss:$16 sps:$4 sm:$0xff]  }
 0x22a   : > { %2703 = vmatpush1.bf16.msra.mxu0 %v9026_v38  ;;  %3194 = vmatpush1.bf16.msra.mxu1 %v9029_v39  ;;  %v9074_v38 = vld [vmem:[#allocation5 + $0x264] ss:$16 sps:$4 sm:$0xff]   ;;  %v9077_v39 = vld [vmem:[#allocation5 + $0x26c] ss:$16 sps:$4 sm:$0xff]  }
 0x22b   : > { %2704 = vmatprep.subr.bf16.mxu0 %v9034_v41  ;;  %3195 = vmatprep.subr.bf16.mxu1 %v9037_v42  ;;  %v9072_v41 = vld [vmem:[#allocation5 + $0x260] ss:$16 sps:$4 sm:$0xff]   ;;  %v9075_v42 = vld [vmem:[#allocation5 + $0x268] ss:$16 sps:$4 sm:$0xff]  }
 0x22e   : > { %2705 = vmatpush1.bf16.msra.mxu0 %v9032_v43  ;;  %3196 = vmatpush1.bf16.msra.mxu1 %v9035_v44  ;;  %v9080_v43 = vld [vmem:[#allocation5 + $0x284] ss:$16 sps:$4 sm:$0xff]   ;;  %v9083_v44 = vld [vmem:[#allocation5 + $0x28c] ss:$16 sps:$4 sm:$0xff]  }
 0x22f   : > { %2706 = vmatprep.subr.bf16.mxu0 %v9040_v45  ;;  %3197 = vmatprep.subr.bf16.mxu1 %v9043_v46  ;;  %v9078_v45 = vld [vmem:[#allocation5 + $0x280] ss:$16 sps:$4 sm:$0xff]   ;;  %v9081_v46 = vld [vmem:[#allocation5 + $0x288] ss:$16 sps:$4 sm:$0xff]  }
 0x232   : > { %2707 = vmatpush1.bf16.msra.mxu0 %v9038_v47  ;;  %3198 = vmatpush1.bf16.msra.mxu1 %v9041_v48  ;;  %v9086_v47 = vld [vmem:[#allocation5 + $0x2a4] ss:$16 sps:$4 sm:$0xff]   ;;  %v9089_v48 = vld [vmem:[#allocation5 + $0x2ac] ss:$16 sps:$4 sm:$0xff]  }
 0x233   : > { %2708 = vmatprep.subr.bf16.mxu0 %v9046_v49  ;;  %3199 = vmatprep.subr.bf16.mxu1 %v9049_v50  ;;  %v9084_v49 = vld [vmem:[#allocation5 + $0x2a0] ss:$16 sps:$4 sm:$0xff]   ;;  %v9087_v50 = vld [vmem:[#allocation5 + $0x2a8] ss:$16 sps:$4 sm:$0xff]  }
 0x236   : > { %2709 = vmatpush1.bf16.msra.mxu0 %v9044_v51  ;;  %3200 = vmatpush1.bf16.msra.mxu1 %v9047_v52  ;;  %v9092_v51 = vld [vmem:[#allocation5 + $0x2c4] ss:$16 sps:$4 sm:$0xff]   ;;  %v9095_v52 = vld [vmem:[#allocation5 + $0x2cc] ss:$16 sps:$4 sm:$0xff]  }
 0x239   : > { %2711 = vmatmul.mubr.bf16.vlgmr.msra.gmra.mrb[8].mxu0 %v10365_v1  ;;  %3202 = vmatmul.mubr.bf16.vlgmr.msra.gmra.mrb[16].mxu1 %v10365_v1 }
 0x23a   : > { %2720 = vmatprep.mubr.bf16.mxu0 %v2240_v26  ;;  %3211 = vmatprep.mubr.bf16.mxu1 %v2240_v26  ;;  %v9063_v26 = vld [vmem:[#allocation5 + $0x228] ss:$16 sps:$4 sm:$0xff]  }
 0x241   : > { %2721 = vmatmul.mubr.bf16.gmra.mrb[12].mxu0 %v2239_v23  ;;  %3212 = vmatmul.mubr.bf16.gmra.mrb[20].mxu1 %v2239_v23  ;;  %v9062_v23 = vld [vmem:[#allocation5 + $0x224] ss:$16 sps:$4 sm:$0xff]  }
 0x242   : > { %3283 = vmatprep.mubr.bf16.mxu0 %v9897_v0  ;;  %3352 = vmatprep.mubr.bf16.mxu1 %v9897_v0 }
 0x30c   : > { %v2712_v53 = vpop.f32.mrb[8].mxu0  ;;  %v3203_v54 = vpop.f32.mrb[16].mxu1 }
 0x30d   : > { %v3222_v55 = vmax.f32 %v2712_v53, %v3203_v54  ;;  %v2714_v56 = vpop.f32.mrb[9].mxu0  ;;  %v3205_v57 = vpop.f32.mrb[17].mxu1  ;;  %v9090_v53 = vld [vmem:[#allocation5 + $0x2c0] ss:$16 sps:$4 sm:$0xff]   ;;  %v9093_v54 = vld [vmem:[#allocation5 + $0x2c8] ss:$16 sps:$4 sm:$0xff]  }
 0x30e   : > { %v3223_v37 = vmax.f32 %v2714_v56, %v3205_v57  ;;  %v2716_v58 = vpop.f32.mrb[10].mxu0  ;;  %v3207_v59 = vpop.f32.mrb[18].mxu1  ;;  %v9101_v56 = vld [vmem:[#allocation5 + $0x2ec] ss:$16 sps:$4 sm:$0xff]   ;;  %v9096_v57 = vld [vmem:[#allocation5 + $0x2e0] ss:$16 sps:$4 sm:$0xff]  }
 0x30f   : > { %v3224_v60 = vmax.f32 %v2716_v58, %v3207_v59  ;;  %v2718_v61 = vpop.f32.mrb[11].mxu0  ;;  %v3209_v62 = vpop.f32.mrb[19].mxu1  ;;  %v9104_v58 = vld [vmem:[#allocation5 + $0x304] ss:$16 sps:$4 sm:$0xff]   ;;  %v9107_v59 = vld [vmem:[#allocation5 + $0x30c] ss:$16 sps:$4 sm:$0xff]  }
 0x310   : > { %v3225_v63 = vmax.f32 %v2718_v61, %v3209_v62  ;;  %v9105_v61 = vld [vmem:[#allocation5 + $0x308] ss:$16 sps:$4 sm:$0xff]   ;;  %v9110_v62 = vld [vmem:[#allocation5 + $0x324] ss:$16 sps:$4 sm:$0xff]  }
 0x311   : > { %v3230_v1 = vpack.c.bf16 %v3224_v60, %v3222_v55  ;;  %v9098_v55 = vld [vmem:[#allocation5 + $0x2e4] ss:$16 sps:$4 sm:$0xff]   ;;  %v9102_v60 = vld [vmem:[#allocation5 + $0x300] ss:$16 sps:$4 sm:$0xff]  }
 0x312   : > { %v3231_v2 = vpack.c.bf16 %v3225_v63, %v3223_v37  ;;  %v9099_v37 = vld [vmem:[#allocation5 + $0x2e8] ss:$16 sps:$4 sm:$0xff]   ;;  %v9113_v63 = vld [vmem:[#allocation5 + $0x32c] ss:$16 sps:$4 sm:$0xff]  }
 0x314   : > { %v2722_v3 = vpop.f32.mrb[12].mxu0  ;;  %v3213_v4 = vpop.f32.mrb[20].mxu1  ;;  %3251 = vmatprep.subr.bf16.mxu0 %v3231_v2  ;;  %3320 = vmatprep.subr.bf16.mxu1 %v3231_v2  ;;  %v9111_v2 = vld [vmem:[#allocation5 + $0x328] ss:$16 sps:$4 sm:$0xff]  }
 0x315   : > { %v3226_v5 = vmax.f32 %v2722_v3, %v3213_v4  ;;  %v2724_v6 = vpop.f32.mrb[13].mxu0  ;;  %v3215_v7 = vpop.f32.mrb[21].mxu1  ;;  %3252 = vmatpush1.bf16.msra.mxu0 %v3230_v1  ;;  %3321 = vmatpush1.bf16.msra.mxu1 %v3230_v1  ;;  %v9108_v1 = vld [vmem:[#allocation5 + $0x320] ss:$16 sps:$4 sm:$0xff]   ;;  %v9116_v3 = vld [vmem:[#allocation5 + $0x344] ss:$16 sps:$4 sm:$0xff]  }
 0x316   : > { %v3227_v8 = vmax.f32 %v2724_v6, %v3215_v7  ;;  %v2726_v9 = vpop.f32.mrb[14].mxu0  ;;  %v3217_v10 = vpop.f32.mrb[22].mxu1  ;;  %v9119_v4 = vld [vmem:[#allocation5 + $0x34c] ss:$16 sps:$4 sm:$0xff]   ;;  %v9117_v6 = vld [vmem:[#allocation5 + $0x348] ss:$16 sps:$4 sm:$0xff]  }
 0x317   : > { %v3228_v11 = vmax.f32 %v2726_v9, %v3217_v10  ;;  %v2728_v12 = vpop.f32.mrb[15].mxu0  ;;  %v3219_v13 = vpop.f32.mrb[23].mxu1  ;;  %v9122_v7 = vld [vmem:[#allocation5 + $0x364] ss:$16 sps:$4 sm:$0xff]   ;;  %v9120_v9 = vld [vmem:[#allocation5 + $0x360] ss:$16 sps:$4 sm:$0xff]  }
 0x318   : > { %v3229_v15 = vmax.f32 %v2728_v12, %v3219_v13  ;;  %v9123_v10 = vld [vmem:[#allocation5 + $0x368] ss:$16 sps:$4 sm:$0xff]   ;;  %v9131_v12 = vld [vmem:[#allocation5 + $0x38c] ss:$16 sps:$4 sm:$0xff]   ;;  %v9126_v13 = vld [vmem:[#allocation5 + $0x380] ss:$16 sps:$4 sm:$0xff]  }
 0x319   : > { %v3232_v16 = vpack.c.bf16 %v3228_v11, %v3226_v5  ;;  %v9114_v5 = vld [vmem:[#allocation5 + $0x340] ss:$16 sps:$4 sm:$0xff]   ;;  %v9128_v11 = vld [vmem:[#allocation5 + $0x384] ss:$16 sps:$4 sm:$0xff]  }
 0x31a   : > { %v3233_v17 = vpack.c.bf16 %v3229_v15, %v3227_v8  ;;  %v9125_v8 = vld [vmem:[#allocation5 + $0x36c] ss:$16 sps:$4 sm:$0xff]   ;;  %v9129_v15 = vld [vmem:[#allocation5 + $0x388] ss:$16 sps:$4 sm:$0xff]  }
 0x31c   : > { %3253 = vmatprep.subr.bf16.mxu0 %v3233_v17  ;;  %3322 = vmatprep.subr.bf16.mxu1 %v3233_v17  ;;  %v9134_v17 = vld [vmem:[#allocation5 + $0x3a4] ss:$16 sps:$4 sm:$0xff]  }
 0x31d   : > { %3254 = vmatpush1.bf16.msra.mxu0 %v3232_v16  ;;  %3323 = vmatpush1.bf16.msra.mxu1 %v3232_v16  ;;  %v9132_v16 = vld [vmem:[#allocation5 + $0x3a0] ss:$16 sps:$4 sm:$0xff]  }
 0x31e   : > { %3856 = vmatprep.subr.bf16.mxu0 %v9056_v18  ;;  %3899 = vmatprep.subr.bf16.mxu1 %v9059_v19  ;;  %v9135_v18 = vld [vmem:[#allocation5 + $0x3a8] ss:$16 sps:$4 sm:$0xff]   ;;  %v9137_v19 = vld [vmem:[#allocation5 + $0x3ac] ss:$16 sps:$4 sm:$0xff]  }
 0x320   : > { %7806 = vmatmul.mubr.msk.bf16.vlgmr.msra.gmra.mrb[16].mxu0 %vm598_vm0, %v9050_v20  ;;  %7813 = vmatmul.mubr.msk.bf16.vlgmr.msra.gmra.mrb[24].mxu1 %vm598_vm0, %v9051_v14  ;;  %v9140_v20 = vld [vmem:[#allocation5 + $0x3c4] ss:$16 sps:$4 sm:$0xff]   ;;  %v9143_v14 = vld [vmem:[#allocation5 + $0x3cc] ss:$16 sps:$4 sm:$0xff]  }
 0x321   : > { %3293 = vmatprep.mubr.bf16.mxu0 %v9897_v0  ;;  %3362 = vmatprep.mubr.bf16.mxu1 %v9897_v0 }
 0x322   : > { %3857 = vmatpush1.bf16.msra.mxu0 %v9054_v21  ;;  %3900 = vmatpush1.bf16.msra.mxu1 %v9057_v22  ;;  %v9138_v21 = vld [vmem:[#allocation5 + $0x3c0] ss:$16 sps:$4 sm:$0xff]   ;;  %v9141_v22 = vld [vmem:[#allocation5 + $0x3c8] ss:$16 sps:$4 sm:$0xff]  }
 0x323   : > { %3858 = vmatprep.subr.bf16.mxu0 %v9062_v23  ;;  %3901 = vmatprep.subr.bf16.mxu1 %v9065_v24  ;;  %v9146_v23 = vld [vmem:[#allocation5 + $0x3e4] ss:$16 sps:$4 sm:$0xff]   ;;  %v9149_v24 = vld [vmem:[#allocation5 + $0x3ec] ss:$16 sps:$4 sm:$0xff]  }
 0x326   : > { %3859 = vmatpush1.bf16.msra.mxu0 %v9060_v25  ;;  %3902 = vmatpush1.bf16.msra.mxu1 %v9063_v26  ;;  %v9144_v25 = vld [vmem:[#allocation5 + $0x3e0] ss:$16 sps:$4 sm:$0xff]   ;;  %v9147_v26 = vld [vmem:[#allocation5 + $0x3e8] ss:$16 sps:$4 sm:$0xff]  }
 0x327   : > { %3860 = vmatprep.subr.bf16.mxu0 %v9068_v27  ;;  %3903 = vmatprep.subr.bf16.mxu1 %v9071_v28  ;;  %v9152_v27 = vld [vmem:[#allocation5 + $0x4] ss:$16 sps:$4 sm:$0xff]   ;;  %v9155_v28 = vld [vmem:[#allocation5 + $0xc] ss:$16 sps:$4 sm:$0xff]  }
 0x328   : > { %7807 = vmatmul.mubr.msk.bf16.gmra.mrb[20].mxu0 %vm598_vm0, %v9052_v29  ;;  %7814 = vmatmul.mubr.msk.bf16.gmra.mrb[28].mxu1 %vm598_vm0, %v9053_v30 }
 0x32a   : > { %3861 = vmatpush1.bf16.msra.mxu0 %v9066_v31  ;;  %3904 = vmatpush1.bf16.msra.mxu1 %v9069_v32 }
 0x32b   : > { %3862 = vmatprep.subr.bf16.mxu0 %v9074_v38  ;;  %3905 = vmatprep.subr.bf16.mxu1 %v9077_v39 }
 0x32e   : > { %3863 = vmatpush1.bf16.msra.mxu0 %v9072_v41  ;;  %3906 = vmatpush1.bf16.msra.mxu1 %v9075_v42 }
 0x32f   : > { %3864 = vmatprep.subr.bf16.mxu0 %v9080_v43  ;;  %3907 = vmatprep.subr.bf16.mxu1 %v9083_v44 }
 0x332   : > { %3865 = vmatpush1.bf16.msra.mxu0 %v9078_v45  ;;  %3908 = vmatpush1.bf16.msra.mxu1 %v9081_v46 }
 0x333   : > { %3866 = vmatprep.subr.bf16.mxu0 %v9086_v47  ;;  %3909 = vmatprep.subr.bf16.mxu1 %v9089_v48 }
 0x336   : > { %3867 = vmatpush1.bf16.msra.mxu0 %v9084_v49  ;;  %3910 = vmatpush1.bf16.msra.mxu1 %v9087_v50 }
 0x337   : > { %3868 = vmatprep.subr.bf16.mxu0 %v9092_v51  ;;  %3911 = vmatprep.subr.bf16.mxu1 %v9095_v52 }
 0x33a   : > { %3869 = vmatpush1.bf16.msra.mxu0 %v9090_v53  ;;  %3912 = vmatpush1.bf16.msra.mxu1 %v9093_v54 }
 0x33b   : > { %3870 = vmatprep.subr.bf16.mxu0 %v9098_v55  ;;  %3913 = vmatprep.subr.bf16.mxu1 %v9101_v56 }
 0x33e   : > { %3871 = vmatpush1.bf16.msra.mxu0 %v9096_v57  ;;  %3914 = vmatpush1.bf16.msra.mxu1 %v9099_v37 }
 0x33f   : > { %3872 = vmatprep.subr.bf16.mxu0 %v9104_v58  ;;  %3915 = vmatprep.subr.bf16.mxu1 %v9107_v59 }
 0x342   : > { %3873 = vmatpush1.bf16.msra.mxu0 %v9102_v60  ;;  %3916 = vmatpush1.bf16.msra.mxu1 %v9105_v61 }
 0x343   : > { %3874 = vmatprep.subr.bf16.mxu0 %v9110_v62  ;;  %3917 = vmatprep.subr.bf16.mxu1 %v9113_v63 }
 0x346   : > { %3875 = vmatpush1.bf16.msra.mxu0 %v9108_v1  ;;  %3918 = vmatpush1.bf16.msra.mxu1 %v9111_v2 }
 0x347   : > { %3876 = vmatprep.subr.bf16.mxu0 %v9116_v3  ;;  %3919 = vmatprep.subr.bf16.mxu1 %v9119_v4 }
 0x34a   : > { %3877 = vmatpush1.bf16.msra.mxu0 %v9114_v5  ;;  %3920 = vmatpush1.bf16.msra.mxu1 %v9117_v6 }
 0x34b   : > { %3878 = vmatprep.subr.bf16.mxu0 %v9122_v7  ;;  %3921 = vmatprep.subr.bf16.mxu1 %v9125_v8 }
 0x34e   : > { %3879 = vmatpush1.bf16.msra.mxu0 %v9120_v9  ;;  %3922 = vmatpush1.bf16.msra.mxu1 %v9123_v10 }
 0x34f   : > { %3880 = vmatprep.subr.bf16.mxu0 %v9128_v11  ;;  %3923 = vmatprep.subr.bf16.mxu1 %v9131_v12  ;;  %v9150_v11 = vld [vmem:[#allocation5] ss:$16 sps:$4 sm:$0xff]   ;;  %v9153_v12 = vld [vmem:[#allocation5 + $0x8] ss:$16 sps:$4 sm:$0xff]  }
 0x352   : > { %3881 = vmatpush1.bf16.msra.mxu0 %v9126_v13  ;;  %3924 = vmatpush1.bf16.msra.mxu1 %v9129_v15 }
 0x353   : > { %3882 = vmatprep.subr.bf16.mxu0 %v9134_v17  ;;  %3925 = vmatprep.subr.bf16.mxu1 %v9137_v19  ;;  %v9158_v17 = vld [vmem:[#allocation5 + $0x24] ss:$16 sps:$4 sm:$0xff]   ;;  %v9156_v19 = vld [vmem:[#allocation5 + $0x20] ss:$16 sps:$4 sm:$0xff]  }
 0x356   : > { %3883 = vmatpush1.bf16.msra.mxu0 %v9132_v16  ;;  %3926 = vmatpush1.bf16.msra.mxu1 %v9135_v18  ;;  %v9161_v18 = vld [vmem:[#allocation5 + $0x2c] ss:$16 sps:$4 sm:$0xff]  }
 0x357   : > { %3884 = vmatprep.subr.bf16.mxu0 %v9140_v20  ;;  %3927 = vmatprep.subr.bf16.mxu1 %v9143_v14  ;;  %v9159_v20 = vld [vmem:[#allocation5 + $0x28] ss:$16 sps:$4 sm:$0xff]   ;;  %v9164_v14 = vld [vmem:[#allocation5 + $0x44] ss:$16 sps:$4 sm:$0xff]  }
 0x35a   : > { %3885 = vmatpush1.bf16.msra.mxu0 %v9138_v21  ;;  %3928 = vmatpush1.bf16.msra.mxu1 %v9141_v22  ;;  %v9167_v21 = vld [vmem:[#allocation5 + $0x4c] ss:$16 sps:$4 sm:$0xff]   ;;  %v9162_v22 = vld [vmem:[#allocation5 + $0x40] ss:$16 sps:$4 sm:$0xff]  }
 0x35b   : > { %3886 = vmatprep.subr.bf16.mxu0 %v9146_v23  ;;  %3929 = vmatprep.subr.bf16.mxu1 %v9149_v24  ;;  %v9165_v23 = vld [vmem:[#allocation5 + $0x48] ss:$16 sps:$4 sm:$0xff]   ;;  %v9170_v24 = vld [vmem:[#allocation5 + $0x64] ss:$16 sps:$4 sm:$0xff]  }
 0x35e   : > { %3887 = vmatpush1.bf16.msra.mxu0 %v9144_v25  ;;  %3930 = vmatpush1.bf16.msra.mxu1 %v9147_v26  ;;  %v9173_v25 = vld [vmem:[#allocation5 + $0x6c] ss:$16 sps:$4 sm:$0xff]   ;;  %v9168_v26 = vld [vmem:[#allocation5 + $0x60] ss:$16 sps:$4 sm:$0xff]  }
 0x35f   : > { %4262 = vmatprep.subr.bf16.mxu0 %v9152_v27  ;;  %4305 = vmatprep.subr.bf16.mxu1 %v9155_v28  ;;  %v9171_v27 = vld [vmem:[#allocation5 + $0x68] ss:$16 sps:$4 sm:$0xff]   ;;  %v9176_v28 = vld [vmem:[#allocation5 + $0x84] ss:$16 sps:$4 sm:$0xff]  }
 0x3f3   : > { %v3285_v29 = vpop.f32.mrb[16].mxu0  ;;  %v3354_v30 = vpop.f32.mrb[24].mxu1 }
 0x3f4   : > { %v3371_v31 = vmax.f32 %v3285_v29, %v3354_v30  ;;  %v3287_v32 = vpop.f32.mrb[17].mxu0  ;;  %v3356_v38 = vpop.f32.mrb[25].mxu1  ;;  %v9179_v29 = vld [vmem:[#allocation5 + $0x8c] ss:$16 sps:$4 sm:$0xff]   ;;  %v9174_v30 = vld [vmem:[#allocation5 + $0x80] ss:$16 sps:$4 sm:$0xff]  }
 0x3f5   : > { %v3372_v39 = vmax.f32 %v3287_v32, %v3356_v38  ;;  %v3289_v41 = vpop.f32.mrb[18].mxu0  ;;  %v3358_v42 = vpop.f32.mrb[26].mxu1  ;;  %v9182_v32 = vld [vmem:[#allocation5 + $0xa4] ss:$16 sps:$4 sm:$0xff]   ;;  %v9185_v38 = vld [vmem:[#allocation5 + $0xac] ss:$16 sps:$4 sm:$0xff]  }
 0x3f6   : > { %v3373_v43 = vmax.f32 %v3289_v41, %v3358_v42  ;;  %v3291_v44 = vpop.f32.mrb[19].mxu0  ;;  %v3360_v45 = vpop.f32.mrb[27].mxu1  ;;  %v9183_v41 = vld [vmem:[#allocation5 + $0xa8] ss:$16 sps:$4 sm:$0xff]   ;;  %v9188_v42 = vld [vmem:[#allocation5 + $0xc4] ss:$16 sps:$4 sm:$0xff]  }
 0x3f7   : > { %v3374_v46 = vmax.f32 %v3291_v44, %v3360_v45  ;;  %v9186_v44 = vld [vmem:[#allocation5 + $0xc0] ss:$16 sps:$4 sm:$0xff]   ;;  %v9189_v45 = vld [vmem:[#allocation5 + $0xc8] ss:$16 sps:$4 sm:$0xff]  }
 0x3f8   : > { %v10389_v47 = vpack.c.bf16 %v3373_v43, %v3371_v31  ;;  %v9177_v31 = vld [vmem:[#allocation5 + $0x88] ss:$16 sps:$4 sm:$0xff]   ;;  %v9191_v43 = vld [vmem:[#allocation5 + $0xcc] ss:$16 sps:$4 sm:$0xff]  }
 0x3f9   : > { %v3378_v48 = vpack.c.bf16 %v3374_v46, %v3372_v39  ;;  %v9180_v39 = vld [vmem:[#allocation5 + $0xa0] ss:$16 sps:$4 sm:$0xff]   ;;  %v9194_v46 = vld [vmem:[#allocation5 + $0xe4] ss:$16 sps:$4 sm:$0xff]  }
 0x3fa   : > { %v3513_v55 = vshll.u32 %v10389_v47, 16  ;;  %v3511_v7 = vshrl.u32 %v10389_v47, 16 }
 0x3fb   : > { %v3295_v49 = vpop.f32.mrb[20].mxu0  ;;  %v3364_v50 = vpop.f32.mrb[28].mxu1  ;;  %v3525_v51 = vshll.u32 %v3378_v48, 16  ;;  %v3523_v4 = vshrl.u32 %v3378_v48, 16  ;;  %v4420_v5 = vrot.slane %v3378_v48, 1 }
 0x3fc   : > { %v3375_v52 = vmax.f32 %v3295_v49, %v3364_v50  ;;  %v3297_v53 = vpop.f32.mrb[21].mxu0  ;;  %v3366_v54 = vpop.f32.mrb[29].mxu1  ;;  %v3515_v1 = vrot.slane %v3513_v55, 1  ;;  %v9192_v49 = vld [vmem:[#allocation5 + $0xe0] ss:$16 sps:$4 sm:$0xff]  }
 0x3fd   : > { %v3376_v56 = vmax.f32 %v3297_v53, %v3366_v54  ;;  %v3299_v57 = vpop.f32.mrb[22].mxu0  ;;  %v3368_v37 = vpop.f32.mrb[30].mxu1  ;;  %v3527_v62 = vrot.slane %v3525_v51, 1  ;;  %v9195_v50 = vld [vmem:[#allocation5 + $0xe8] ss:$16 sps:$4 sm:$0xff]  }
 0x3fe   : > { %v10392_v58 = vpack.c.bf16 %v3375_v52, %v3375_v52  ;;  %v3300_v59 = vpop.f32.mrb[23].mxu0  ;;  %v3369_v60 = vpop.f32.mrb[31].mxu1  ;;  %v3516_v13 = vor.u32 %v3515_v1, %v3511_v7  ;;  %v9200_v51 = vld [vmem:[#allocation5 + $0x104] ss:$16 sps:$4 sm:$0xff]   ;;  %v9203_v52 = vld [vmem:[#allocation5 + $0x10c] ss:$16 sps:$4 sm:$0xff]  }
 0x3ff   : > { %v3444_v61 = vpack.c.bf16 %v3376_v56, %v3376_v56  ;;  %v3528_v9 = vor.u32 %v3527_v62, %v3523_v4  ;;  %v9198_v53 = vld [vmem:[#allocation5 + $0x100] ss:$16 sps:$4 sm:$0xff]   ;;  %v9201_v54 = vld [vmem:[#allocation5 + $0x108] ss:$16 sps:$4 sm:$0xff]   ;;  %v9206_v55 = vld [vmem:[#allocation5 + $0x124] ss:$16 sps:$4 sm:$0xff]  }
 0x400   : > { %v3518_v63 = vshll.u32 %v10392_v58, 16  ;;  %v9209_v56 = vld [vmem:[#allocation5 + $0x12c] ss:$16 sps:$4 sm:$0xff]   ;;  %v9204_v57 = vld [vmem:[#allocation5 + $0x120] ss:$16 sps:$4 sm:$0xff]  }
 0x401   : > { %v3530_v2 = vshll.u32 %v3444_v61, 16  ;;  %v4421_v3 = vrot.slane %v3444_v61, 1  ;;  %v9207_v37 = vld [vmem:[#allocation5 + $0x128] ss:$16 sps:$4 sm:$0xff]   ;;  %v9212_v59 = vld [vmem:[#allocation5 + $0x144] ss:$16 sps:$4 sm:$0xff]  }
 0x402   : > { %v3520_v6 = vrot.slane %v3518_v63, 1  ;;  %v9215_v60 = vld [vmem:[#allocation5 + $0x14c] ss:$16 sps:$4 sm:$0xff]   ;;  %v9210_v61 = vld [vmem:[#allocation5 + $0x140] ss:$16 sps:$4 sm:$0xff]  }
 0x403   : > { %v3532_v8 = vrot.slane %v3530_v2, 1  ;;  %v10397_v10 = vsel %vm873_vm2, %v4420_v5, %v4421_v3  ;;  %v9213_v62 = vld [vmem:[#allocation5 + $0x148] ss:$16 sps:$4 sm:$0xff]   ;;  %v9218_v63 = vld [vmem:[#allocation5 + $0x164] ss:$16 sps:$4 sm:$0xff]  }
 0x404   : > { %v3521_v16 = vsel %vm537_vm1, %v3516_v13, %v3520_v6  ;;  %v9221_v1 = vld [vmem:[#allocation5 + $0x16c] ss:$16 sps:$4 sm:$0xff]   ;;  %v9216_v2 = vld [vmem:[#allocation5 + $0x160] ss:$16 sps:$4 sm:$0xff]   ;;  %v9219_v3 = vld [vmem:[#allocation5 + $0x168] ss:$16 sps:$4 sm:$0xff]  }
 0x405   : > { %v3533_v15 = vsel %vm537_vm1, %v3528_v9, %v3532_v8  ;;  %v9224_v4 = vld [vmem:[#allocation5 + $0x184] ss:$16 sps:$4 sm:$0xff]   ;;  %v9227_v5 = vld [vmem:[#allocation5 + $0x18c] ss:$16 sps:$4 sm:$0xff]   ;;  %v9222_v6 = vld [vmem:[#allocation5 + $0x180] ss:$16 sps:$4 sm:$0xff]  }
 0x406   : > { %3888 = vmatprep.mubr.bf16.mxu0 %v3533_v15  ;;  %3931 = vmatprep.mubr.bf16.mxu1 %v3533_v15  ;;  %v9225_v7 = vld [vmem:[#allocation5 + $0x188] ss:$16 sps:$4 sm:$0xff]   ;;  %v9230_v8 = vld [vmem:[#allocation5 + $0x1a4] ss:$16 sps:$4 sm:$0xff]   ;;  %v9233_v9 = vld [vmem:[#allocation5 + $0x1ac] ss:$16 sps:$4 sm:$0xff]  }
 0x407   : > { %3889 = vmatmul.mubr.bf16.vlgmr.msra.gmra.mrb[24].mxu0 %v3521_v16  ;;  %3932 = vmatmul.mubr.bf16.vlgmr.msra.gmra.mrb[32].mxu1 %v3521_v16  ;;  %v9236_v13 = vld [vmem:[#allocation5 + $0x1c4] ss:$16 sps:$4 sm:$0xff]   ;;  %v9239_v15 = vld [vmem:[#allocation5 + $0x1cc] ss:$16 sps:$4 sm:$0xff]   ;;  %v9234_v16 = vld [vmem:[#allocation5 + $0x1c0] ss:$16 sps:$4 sm:$0xff]  }
 0x408   : > { %4263 = vmatpush1.bf16.msra.mxu0 %v9150_v11  ;;  %4306 = vmatpush1.bf16.msra.mxu1 %v9153_v12  ;;  %v9228_v11 = vld [vmem:[#allocation5 + $0x1a0] ss:$16 sps:$4 sm:$0xff]   ;;  %v9231_v12 = vld [vmem:[#allocation5 + $0x1a8] ss:$16 sps:$4 sm:$0xff]  }
 0x409   : > { %4294 = vmatprep.mubr.bf16.mxu0 %v3378_v48  ;;  %4337 = vmatprep.mubr.bf16.mxu1 %v3378_v48  ;;  %v9197_v48 = vld [vmem:[#allocation5 + $0xec] ss:$16 sps:$4 sm:$0xff]  }
 0x40a   : > { %4264 = vmatprep.subr.bf16.mxu0 %v9158_v17  ;;  %4307 = vmatprep.subr.bf16.mxu1 %v9161_v18  ;;  %v9237_v17 = vld [vmem:[#allocation5 + $0x1c8] ss:$16 sps:$4 sm:$0xff]   ;;  %v9242_v18 = vld [vmem:[#allocation5 + $0x1e4] ss:$16 sps:$4 sm:$0xff]  }
 0x40c   : > { %4265 = vmatpush1.bf16.msra.mxu0 %v9156_v19  ;;  %4308 = vmatpush1.bf16.msra.mxu1 %v9159_v20  ;;  %v9245_v19 = vld [vmem:[#allocation5 + $0x1ec] ss:$16 sps:$4 sm:$0xff]   ;;  %v9240_v20 = vld [vmem:[#allocation5 + $0x1e0] ss:$16 sps:$4 sm:$0xff]  }
 0x40d   : > { %4266 = vmatprep.subr.bf16.mxu0 %v9164_v14  ;;  %4309 = vmatprep.subr.bf16.mxu1 %v9167_v21  ;;  %v9243_v14 = vld [vmem:[#allocation5 + $0x1e8] ss:$16 sps:$4 sm:$0xff]   ;;  %v9248_v21 = vld [vmem:[#allocation5 + $0x404] ss:$16 sps:$4 sm:$0xff]  }
 0x410   : > { %4267 = vmatpush1.bf16.msra.mxu0 %v9162_v22  ;;  %4310 = vmatpush1.bf16.msra.mxu1 %v9165_v23  ;;  %v9251_v22 = vld [vmem:[#allocation5 + $0x40c] ss:$16 sps:$4 sm:$0xff]   ;;  %v9246_v23 = vld [vmem:[#allocation5 + $0x400] ss:$16 sps:$4 sm:$0xff]  }
 0x411   : > { %4268 = vmatprep.subr.bf16.mxu0 %v9170_v24  ;;  %4311 = vmatprep.subr.bf16.mxu1 %v9173_v25  ;;  %v9249_v24 = vld [vmem:[#allocation5 + $0x408] ss:$16 sps:$4 sm:$0xff]   ;;  %v9254_v25 = vld [vmem:[#allocation5 + $0x424] ss:$16 sps:$4 sm:$0xff]  }
 0x414   : > { %4269 = vmatpush1.bf16.msra.mxu0 %v9168_v26  ;;  %4312 = vmatpush1.bf16.msra.mxu1 %v9171_v27  ;;  %v9257_v26 = vld [vmem:[#allocation5 + $0x42c] ss:$16 sps:$4 sm:$0xff]   ;;  %v9252_v27 = vld [vmem:[#allocation5 + $0x420] ss:$16 sps:$4 sm:$0xff]  }
 0x415   : > { %4270 = vmatprep.subr.bf16.mxu0 %v9176_v28  ;;  %4313 = vmatprep.subr.bf16.mxu1 %v9179_v29  ;;  %v9255_v28 = vld [vmem:[#allocation5 + $0x428] ss:$16 sps:$4 sm:$0xff]   ;;  %v9260_v29 = vld [vmem:[#allocation5 + $0x444] ss:$16 sps:$4 sm:$0xff]  }
 0x418   : > { %4271 = vmatpush1.bf16.msra.mxu0 %v9174_v30  ;;  %4314 = vmatpush1.bf16.msra.mxu1 %v9177_v31  ;;  %v9263_v30 = vld [vmem:[#allocation5 + $0x44c] ss:$16 sps:$4 sm:$0xff]   ;;  %v9258_v31 = vld [vmem:[#allocation5 + $0x440] ss:$16 sps:$4 sm:$0xff]  }
 0x419   : > { %4272 = vmatprep.subr.bf16.mxu0 %v9182_v32  ;;  %4315 = vmatprep.subr.bf16.mxu1 %v9185_v38  ;;  %v9261_v32 = vld [vmem:[#allocation5 + $0x448] ss:$16 sps:$4 sm:$0xff]   ;;  %v9266_v38 = vld [vmem:[#allocation5 + $0x464] ss:$16 sps:$4 sm:$0xff]  }
 0x41c   : > { %4273 = vmatpush1.bf16.msra.mxu0 %v9180_v39  ;;  %4316 = vmatpush1.bf16.msra.mxu1 %v9183_v41  ;;  %v9269_v39 = vld [vmem:[#allocation5 + $0x46c] ss:$16 sps:$4 sm:$0xff]   ;;  %v9264_v41 = vld [vmem:[#allocation5 + $0x460] ss:$16 sps:$4 sm:$0xff]  }
 0x41d   : > { %4274 = vmatprep.subr.bf16.mxu0 %v9188_v42  ;;  %4317 = vmatprep.subr.bf16.mxu1 %v9191_v43  ;;  %v9267_v42 = vld [vmem:[#allocation5 + $0x468] ss:$16 sps:$4 sm:$0xff]   ;;  %v9272_v43 = vld [vmem:[#allocation5 + $0x484] ss:$16 sps:$4 sm:$0xff]  }
 0x420   : > { %4275 = vmatpush1.bf16.msra.mxu0 %v9186_v44  ;;  %4318 = vmatpush1.bf16.msra.mxu1 %v9189_v45  ;;  %v9270_v44 = vld [vmem:[#allocation5 + $0x480] ss:$16 sps:$4 sm:$0xff]   ;;  %v9273_v45 = vld [vmem:[#allocation5 + $0x488] ss:$16 sps:$4 sm:$0xff]  }
 0x421   : > { %4276 = vmatprep.subr.bf16.mxu0 %v9194_v46  ;;  %4319 = vmatprep.subr.bf16.mxu1 %v9197_v48  ;;  %v9278_v46 = vld [vmem:[#allocation5 + $0x4a4] ss:$16 sps:$4 sm:$0xff]   ;;  %v9281_v48 = vld [vmem:[#allocation5 + $0x4ac] ss:$16 sps:$4 sm:$0xff]  }
 0x424   : > { %4277 = vmatpush1.bf16.msra.mxu0 %v9192_v49  ;;  %4320 = vmatpush1.bf16.msra.mxu1 %v9195_v50  ;;  %v9276_v49 = vld [vmem:[#allocation5 + $0x4a0] ss:$16 sps:$4 sm:$0xff]   ;;  %v9279_v50 = vld [vmem:[#allocation5 + $0x4a8] ss:$16 sps:$4 sm:$0xff]  }
 0x425   : > { %4278 = vmatprep.subr.bf16.mxu0 %v9200_v51  ;;  %4321 = vmatprep.subr.bf16.mxu1 %v9203_v52  ;;  %v9284_v51 = vld [vmem:[#allocation5 + $0x4c4] ss:$16 sps:$4 sm:$0xff]   ;;  %v9287_v52 = vld [vmem:[#allocation5 + $0x4cc] ss:$16 sps:$4 sm:$0xff]  }
 0x428   : > { %4279 = vmatpush1.bf16.msra.mxu0 %v9198_v53  ;;  %4322 = vmatpush1.bf16.msra.mxu1 %v9201_v54  ;;  %v9282_v53 = vld [vmem:[#allocation5 + $0x4c0] ss:$16 sps:$4 sm:$0xff]   ;;  %v9285_v54 = vld [vmem:[#allocation5 + $0x4c8] ss:$16 sps:$4 sm:$0xff]  }
 0x429   : > { %4280 = vmatprep.subr.bf16.mxu0 %v9206_v55  ;;  %4323 = vmatprep.subr.bf16.mxu1 %v9209_v56  ;;  %v9290_v55 = vld [vmem:[#allocation5 + $0x4e4] ss:$16 sps:$4 sm:$0xff]   ;;  %v9293_v56 = vld [vmem:[#allocation5 + $0x4ec] ss:$16 sps:$4 sm:$0xff]  }
 0x42c   : > { %4281 = vmatpush1.bf16.msra.mxu0 %v9204_v57  ;;  %4324 = vmatpush1.bf16.msra.mxu1 %v9207_v37  ;;  %v9288_v57 = vld [vmem:[#allocation5 + $0x4e0] ss:$16 sps:$4 sm:$0xff]   ;;  %v9291_v37 = vld [vmem:[#allocation5 + $0x4e8] ss:$16 sps:$4 sm:$0xff]  }
 0x42d   : > { %4282 = vmatprep.subr.bf16.mxu0 %v9212_v59  ;;  %4325 = vmatprep.subr.bf16.mxu1 %v9215_v60  ;;  %v9296_v59 = vld [vmem:[#allocation5 + $0x504] ss:$16 sps:$4 sm:$0xff]   ;;  %v9299_v60 = vld [vmem:[#allocation5 + $0x50c] ss:$16 sps:$4 sm:$0xff]  }
 0x430   : > { %4283 = vmatpush1.bf16.msra.mxu0 %v9210_v61  ;;  %4326 = vmatpush1.bf16.msra.mxu1 %v9213_v62  ;;  %v9294_v61 = vld [vmem:[#allocation5 + $0x500] ss:$16 sps:$4 sm:$0xff]   ;;  %v9297_v62 = vld [vmem:[#allocation5 + $0x508] ss:$16 sps:$4 sm:$0xff]  }
 0x431   : > { %4284 = vmatprep.subr.bf16.mxu0 %v9218_v63  ;;  %4327 = vmatprep.subr.bf16.mxu1 %v9221_v1  ;;  %v9302_v63 = vld [vmem:[#allocation5 + $0x524] ss:$16 sps:$4 sm:$0xff]   ;;  %v9305_v1 = vld [vmem:[#allocation5 + $0x52c] ss:$16 sps:$4 sm:$0xff]  }
 0x434   : > { %4285 = vmatpush1.bf16.msra.mxu0 %v9216_v2  ;;  %4328 = vmatpush1.bf16.msra.mxu1 %v9219_v3  ;;  %v9300_v2 = vld [vmem:[#allocation5 + $0x520] ss:$16 sps:$4 sm:$0xff]   ;;  %v9303_v3 = vld [vmem:[#allocation5 + $0x528] ss:$16 sps:$4 sm:$0xff]  }
 0x435   : > { %4286 = vmatprep.subr.bf16.mxu0 %v9224_v4  ;;  %4329 = vmatprep.subr.bf16.mxu1 %v9227_v5  ;;  %v9308_v4 = vld [vmem:[#allocation5 + $0x544] ss:$16 sps:$4 sm:$0xff]   ;;  %v9311_v5 = vld [vmem:[#allocation5 + $0x54c] ss:$16 sps:$4 sm:$0xff]  }
 0x438   : > { %4287 = vmatpush1.bf16.msra.mxu0 %v9222_v6  ;;  %4330 = vmatpush1.bf16.msra.mxu1 %v9225_v7  ;;  %v9306_v6 = vld [vmem:[#allocation5 + $0x540] ss:$16 sps:$4 sm:$0xff]   ;;  %v9309_v7 = vld [vmem:[#allocation5 + $0x548] ss:$16 sps:$4 sm:$0xff]  }
 0x439   : > { %4288 = vmatprep.subr.bf16.mxu0 %v9230_v8  ;;  %4331 = vmatprep.subr.bf16.mxu1 %v9233_v9  ;;  %v9314_v8 = vld [vmem:[#allocation5 + $0x564] ss:$16 sps:$4 sm:$0xff]   ;;  %v9317_v9 = vld [vmem:[#allocation5 + $0x56c] ss:$16 sps:$4 sm:$0xff]  }
 0x43c   : > { %4289 = vmatpush1.bf16.msra.mxu0 %v9228_v11  ;;  %4332 = vmatpush1.bf16.msra.mxu1 %v9231_v12  ;;  %v9312_v11 = vld [vmem:[#allocation5 + $0x560] ss:$16 sps:$4 sm:$0xff]   ;;  %v9315_v12 = vld [vmem:[#allocation5 + $0x568] ss:$16 sps:$4 sm:$0xff]  }
 0x43d   : > { %4290 = vmatprep.subr.bf16.mxu0 %v9236_v13  ;;  %4333 = vmatprep.subr.bf16.mxu1 %v9239_v15  ;;  %v9320_v13 = vld [vmem:[#allocation5 + $0x584] ss:$16 sps:$4 sm:$0xff]   ;;  %v9323_v15 = vld [vmem:[#allocation5 + $0x58c] ss:$16 sps:$4 sm:$0xff]  }
 0x440   : > { %4291 = vmatpush1.bf16.msra.mxu0 %v9234_v16  ;;  %4334 = vmatpush1.bf16.msra.mxu1 %v9237_v17  ;;  %v9318_v16 = vld [vmem:[#allocation5 + $0x580] ss:$16 sps:$4 sm:$0xff]   ;;  %v9321_v17 = vld [vmem:[#allocation5 + $0x588] ss:$16 sps:$4 sm:$0xff]  }
 0x441   : > { %4292 = vmatprep.subr.bf16.mxu0 %v9242_v18  ;;  %4335 = vmatprep.subr.bf16.mxu1 %v9245_v19  ;;  %v9326_v18 = vld [vmem:[#allocation5 + $0x5a4] ss:$16 sps:$4 sm:$0xff]   ;;  %v9329_v19 = vld [vmem:[#allocation5 + $0x5ac] ss:$16 sps:$4 sm:$0xff]  }
 0x444   : > { %4293 = vmatpush1.bf16.msra.mxu0 %v9240_v20  ;;  %4336 = vmatpush1.bf16.msra.mxu1 %v9243_v14  ;;  %v9324_v20 = vld [vmem:[#allocation5 + $0x5a0] ss:$16 sps:$4 sm:$0xff]   ;;  %v9327_v14 = vld [vmem:[#allocation5 + $0x5a8] ss:$16 sps:$4 sm:$0xff]  }
 0x445   : > { %4745 = vmatprep.subr.bf16.mxu0 %v9248_v21  ;;  %4788 = vmatprep.subr.bf16.mxu1 %v9251_v22  ;;  %v9332_v21 = vld [vmem:[#allocation5 + $0x5c4] ss:$16 sps:$4 sm:$0xff]   ;;  %v9335_v22 = vld [vmem:[#allocation5 + $0x5cc] ss:$16 sps:$4 sm:$0xff]  }
 0x447   : > { %4295 = vmatmul.mubr.bf16.vlgmr.msra.gmra.mrb[24].mxu0 %v10389_v47  ;;  %4338 = vmatmul.mubr.bf16.vlgmr.msra.gmra.mrb[32].mxu1 %v10389_v47 }
 0x448   : > { %4746 = vmatpush1.bf16.msra.mxu0 %v9246_v23  ;;  %4777 = vmatprep.mubr.bf16.mxu0 %v10397_v10  ;;  %v9330_v23 = vld [vmem:[#allocation5 + $0x5c0] ss:$16 sps:$4 sm:$0xff]  }
 0x449   : > { %4789 = vmatpush1.bf16.msra.mxu1 %v9249_v24  ;;  %4820 = vmatprep.mubr.bf16.mxu1 %v10397_v10  ;;  %v9275_v10 = vld [vmem:[#allocation5 + $0x48c] ss:$16 sps:$4 sm:$0xff]   ;;  %v9333_v24 = vld [vmem:[#allocation5 + $0x5c8] ss:$16 sps:$4 sm:$0xff]  }
 0x44a   : > { %4747 = vmatprep.subr.bf16.mxu0 %v9254_v25  ;;  %4790 = vmatprep.subr.bf16.mxu1 %v9257_v26  ;;  %v9338_v25 = vld [vmem:[#allocation5 + $0x5e4] ss:$16 sps:$4 sm:$0xff]   ;;  %v9341_v26 = vld [vmem:[#allocation5 + $0x5ec] ss:$16 sps:$4 sm:$0xff]  }
 0x44c   : > { %4748 = vmatpush1.bf16.msra.mxu0 %v9252_v27  ;;  %v9336_v27 = vld [vmem:[#allocation5 + $0x5e0] ss:$16 sps:$4 sm:$0xff]  }
 0x44d   : > { %4791 = vmatpush1.bf16.msra.mxu1 %v9255_v28  ;;  %4749 = vmatprep.subr.bf16.mxu0 %v9260_v29  ;;  %v9339_v28 = vld [vmem:[#allocation5 + $0x5e8] ss:$16 sps:$4 sm:$0xff]   ;;  %v9344_v29 = vld [vmem:[#allocation8 + $0x4] ss:$8 sps:$4 sm:$0xff]  }
 0x44e   : > { %4792 = vmatprep.subr.bf16.mxu1 %v9263_v30  ;;  %v4418_v30 = vrot.slane %v10392_v58, 1  ;;  %v9351_v58 = vld [vmem:[#allocation8 + $0x210] ss:$8 sps:$4 sm:$0xff]  }
 0x450   : > { %4750 = vmatpush1.bf16.msra.mxu0 %v9258_v31  ;;  %v9347_v31 = vld [vmem:[#allocation8 + $0x204] ss:$8 sps:$4 sm:$0xff]  }
 0x451   : > { %4793 = vmatpush1.bf16.msra.mxu1 %v9261_v32  ;;  %4751 = vmatprep.subr.bf16.mxu0 %v9266_v38  ;;  %v4417_v32 = vrot.slane %v10389_v47, 1  ;;  %v9342_v38 = vld [vmem:[#allocation8] ss:$8 sps:$4 sm:$0xff]  }
 0x452   : > { %4794 = vmatprep.subr.bf16.mxu1 %v9269_v39  ;;  %v9345_v39 = vld [vmem:[#allocation8 + $0x200] ss:$8 sps:$4 sm:$0xff]  }
 0x453   : > { %v9354_v47 = vld [vmem:[#allocation8 + $0x20] ss:$8 sps:$4 sm:$0xff]  }
 0x454   : > { %4752 = vmatpush1.bf16.msra.mxu0 %v9264_v41  ;;  %v9350_v41 = vld [vmem:[#allocation8 + $0x14] ss:$8 sps:$4 sm:$0xff]  }
 0x455   : > { %4795 = vmatpush1.bf16.msra.mxu1 %v9267_v42  ;;  %4753 = vmatprep.subr.bf16.mxu0 %v9272_v43  ;;  %v4419_v42 = vsel %vm873_vm2, %v4417_v32, %v4418_v30  ;;  %v9353_v43 = vld [vmem:[#allocation8 + $0x214] ss:$8 sps:$4 sm:$0xff]   ;;  %v9428_v30 = vld [vmem:[#allocation8 + $0xe4] ss:$8 sps:$4 sm:$0xff]   ;;  %v9426_v32 = vld [vmem:[#allocation8 + $0xe0] ss:$8 sps:$4 sm:$0xff]  }
 0x456   : > { %4796 = vmatprep.subr.bf16.mxu1 %v9275_v10  ;;  %v9348_v10 = vld [vmem:[#allocation8 + $0x10] ss:$8 sps:$4 sm:$0xff]  }
 0x458   : > { %4754 = vmatpush1.bf16.msra.mxu0 %v9270_v44  ;;  %v9356_v44 = vld [vmem:[#allocation8 + $0x24] ss:$8 sps:$4 sm:$0xff]  }
 0x459   : > { %4797 = vmatpush1.bf16.msra.mxu1 %v9273_v45  ;;  %4755 = vmatprep.subr.bf16.mxu0 %v9278_v46  ;;  %v9359_v45 = vld [vmem:[#allocation8 + $0x224] ss:$8 sps:$4 sm:$0xff]   ;;  %v9357_v46 = vld [vmem:[#allocation8 + $0x220] ss:$8 sps:$4 sm:$0xff]  }
 0x45a   : > { %4798 = vmatprep.subr.bf16.mxu1 %v9281_v48  ;;  %v9362_v48 = vld [vmem:[#allocation8 + $0x34] ss:$8 sps:$4 sm:$0xff]  }
 0x45c   : > { %4756 = vmatpush1.bf16.msra.mxu0 %v9276_v49  ;;  %v9365_v49 = vld [vmem:[#allocation8 + $0x234] ss:$8 sps:$4 sm:$0xff]  }
 0x45d   : > { %4799 = vmatpush1.bf16.msra.mxu1 %v9279_v50  ;;  %4757 = vmatprep.subr.bf16.mxu0 %v9284_v51  ;;  %v9360_v50 = vld [vmem:[#allocation8 + $0x30] ss:$8 sps:$4 sm:$0xff]  }
 0x45e   : > { %4800 = vmatprep.subr.bf16.mxu1 %v9287_v52  ;;  %v9363_v51 = vld [vmem:[#allocation8 + $0x230] ss:$8 sps:$4 sm:$0xff]   ;;  %v9368_v52 = vld [vmem:[#allocation8 + $0x44] ss:$8 sps:$4 sm:$0xff]  }
 0x460   : > { %4758 = vmatpush1.bf16.msra.mxu0 %v9282_v53  ;;  %v9371_v53 = vld [vmem:[#allocation8 + $0x244] ss:$8 sps:$4 sm:$0xff]  }
 0x461   : > { %4801 = vmatpush1.bf16.msra.mxu1 %v9285_v54  ;;  %4759 = vmatprep.subr.bf16.mxu0 %v9290_v55  ;;  %v9366_v54 = vld [vmem:[#allocation8 + $0x40] ss:$8 sps:$4 sm:$0xff]  }
 0x462   : > { %4802 = vmatprep.subr.bf16.mxu1 %v9293_v56  ;;  %v9369_v55 = vld [vmem:[#allocation8 + $0x240] ss:$8 sps:$4 sm:$0xff]   ;;  %v9374_v56 = vld [vmem:[#allocation8 + $0x54] ss:$8 sps:$4 sm:$0xff]  }
 0x464   : > { %4760 = vmatpush1.bf16.msra.mxu0 %v9288_v57  ;;  %v9377_v57 = vld [vmem:[#allocation8 + $0x254] ss:$8 sps:$4 sm:$0xff]  }
 0x465   : > { %4803 = vmatpush1.bf16.msra.mxu1 %v9291_v37  ;;  %4761 = vmatprep.subr.bf16.mxu0 %v9296_v59  ;;  %v9372_v37 = vld [vmem:[#allocation8 + $0x50] ss:$8 sps:$4 sm:$0xff]  }
 0x466   : > { %4804 = vmatprep.subr.bf16.mxu1 %v9299_v60  ;;  %v9375_v59 = vld [vmem:[#allocation8 + $0x250] ss:$8 sps:$4 sm:$0xff]   ;;  %v9380_v60 = vld [vmem:[#allocation8 + $0x64] ss:$8 sps:$4 sm:$0xff]  }
 0x468   : > { %4762 = vmatpush1.bf16.msra.mxu0 %v9294_v61  ;;  %v9383_v61 = vld [vmem:[#allocation8 + $0x264] ss:$8 sps:$4 sm:$0xff]  }
 0x469   : > { %4805 = vmatpush1.bf16.msra.mxu1 %v9297_v62  ;;  %4763 = vmatprep.subr.bf16.mxu0 %v9302_v63  ;;  %v9378_v62 = vld [vmem:[#allocation8 + $0x60] ss:$8 sps:$4 sm:$0xff]  }
 0x46a   : > { %4806 = vmatprep.subr.bf16.mxu1 %v9305_v1  ;;  %v9381_v63 = vld [vmem:[#allocation8 + $0x260] ss:$8 sps:$4 sm:$0xff]   ;;  %v9386_v1 = vld [vmem:[#allocation8 + $0x74] ss:$8 sps:$4 sm:$0xff]  }
 0x46c   : > { %4764 = vmatpush1.bf16.msra.mxu0 %v9300_v2  ;;  %v9389_v2 = vld [vmem:[#allocation8 + $0x274] ss:$8 sps:$4 sm:$0xff]  }
 0x46d   : > { %4807 = vmatpush1.bf16.msra.mxu1 %v9303_v3  ;;  %4765 = vmatprep.subr.bf16.mxu0 %v9308_v4  ;;  %v9384_v3 = vld [vmem:[#allocation8 + $0x70] ss:$8 sps:$4 sm:$0xff]  }
 0x46e   : > { %4808 = vmatprep.subr.bf16.mxu1 %v9311_v5  ;;  %v9387_v4 = vld [vmem:[#allocation8 + $0x270] ss:$8 sps:$4 sm:$0xff]   ;;  %v9392_v5 = vld [vmem:[#allocation8 + $0x84] ss:$8 sps:$4 sm:$0xff]  }
 0x470   : > { %4766 = vmatpush1.bf16.msra.mxu0 %v9306_v6  ;;  %v9395_v6 = vld [vmem:[#allocation8 + $0x284] ss:$8 sps:$4 sm:$0xff]  }
 0x471   : > { %4809 = vmatpush1.bf16.msra.mxu1 %v9309_v7  ;;  %4767 = vmatprep.subr.bf16.mxu0 %v9314_v8  ;;  %v9390_v7 = vld [vmem:[#allocation8 + $0x80] ss:$8 sps:$4 sm:$0xff]  }
 0x472   : > { %4810 = vmatprep.subr.bf16.mxu1 %v9317_v9  ;;  %v9393_v8 = vld [vmem:[#allocation8 + $0x280] ss:$8 sps:$4 sm:$0xff]   ;;  %v9398_v9 = vld [vmem:[#allocation8 + $0x94] ss:$8 sps:$4 sm:$0xff]  }
 0x474   : > { %4768 = vmatpush1.bf16.msra.mxu0 %v9312_v11  ;;  %v9401_v11 = vld [vmem:[#allocation8 + $0x294] ss:$8 sps:$4 sm:$0xff]  }
 0x475   : > { %4811 = vmatpush1.bf16.msra.mxu1 %v9315_v12  ;;  %4769 = vmatprep.subr.bf16.mxu0 %v9320_v13  ;;  %v9396_v12 = vld [vmem:[#allocation8 + $0x90] ss:$8 sps:$4 sm:$0xff]  }
 0x476   : > { %4812 = vmatprep.subr.bf16.mxu1 %v9323_v15  ;;  %v9399_v13 = vld [vmem:[#allocation8 + $0x290] ss:$8 sps:$4 sm:$0xff]   ;;  %v9404_v15 = vld [vmem:[#allocation8 + $0xa4] ss:$8 sps:$4 sm:$0xff]  }
 0x478   : > { %4770 = vmatpush1.bf16.msra.mxu0 %v9318_v16  ;;  %v9407_v16 = vld [vmem:[#allocation8 + $0x2a4] ss:$8 sps:$4 sm:$0xff]  }
 0x479   : > { %4813 = vmatpush1.bf16.msra.mxu1 %v9321_v17  ;;  %4771 = vmatprep.subr.bf16.mxu0 %v9326_v18  ;;  %v9402_v17 = vld [vmem:[#allocation8 + $0xa0] ss:$8 sps:$4 sm:$0xff]  }
 0x47a   : > { %4814 = vmatprep.subr.bf16.mxu1 %v9329_v19  ;;  %v9405_v18 = vld [vmem:[#allocation8 + $0x2a0] ss:$8 sps:$4 sm:$0xff]   ;;  %v9410_v19 = vld [vmem:[#allocation8 + $0xb4] ss:$8 sps:$4 sm:$0xff]  }
 0x47c   : > { %4772 = vmatpush1.bf16.msra.mxu0 %v9324_v20  ;;  %v9413_v20 = vld [vmem:[#allocation8 + $0x2b4] ss:$8 sps:$4 sm:$0xff]  }
 0x47d   : > { %4815 = vmatpush1.bf16.msra.mxu1 %v9327_v14  ;;  %4773 = vmatprep.subr.bf16.mxu0 %v9332_v21  ;;  %v9408_v14 = vld [vmem:[#allocation8 + $0xb0] ss:$8 sps:$4 sm:$0xff]  }
 0x47e   : > { %4816 = vmatprep.subr.bf16.mxu1 %v9335_v22  ;;  %v9411_v21 = vld [vmem:[#allocation8 + $0x2b0] ss:$8 sps:$4 sm:$0xff]   ;;  %v9416_v22 = vld [vmem:[#allocation8 + $0xc4] ss:$8 sps:$4 sm:$0xff]  }
 0x480   : > { %4774 = vmatpush1.bf16.msra.mxu0 %v9330_v23  ;;  %v9419_v23 = vld [vmem:[#allocation8 + $0x2c4] ss:$8 sps:$4 sm:$0xff]  }
 0x481   : > { %4817 = vmatpush1.bf16.msra.mxu1 %v9333_v24  ;;  %4775 = vmatprep.subr.bf16.mxu0 %v9338_v25  ;;  %v9414_v24 = vld [vmem:[#allocation8 + $0xc0] ss:$8 sps:$4 sm:$0xff]  }
 0x482   : > { %4818 = vmatprep.subr.bf16.mxu1 %v9341_v26  ;;  %v9417_v25 = vld [vmem:[#allocation8 + $0x2c0] ss:$8 sps:$4 sm:$0xff]   ;;  %v9422_v26 = vld [vmem:[#allocation8 + $0xd4] ss:$8 sps:$4 sm:$0xff]  }
 0x484   : > { %4776 = vmatpush1.bf16.msra.mxu0 %v9336_v27  ;;  %v9425_v27 = vld [vmem:[#allocation8 + $0x2d4] ss:$8 sps:$4 sm:$0xff]  }
 0x485   : > { %4819 = vmatpush1.bf16.msra.mxu1 %v9339_v28  ;;  %5265 = vmatprep.subr.bf16.mxu0 %v9344_v29  ;;  %v9420_v28 = vld [vmem:[#allocation8 + $0xd0] ss:$8 sps:$4 sm:$0xff]  }
 0x486   : > { %5736 = vmatprep.subr.bf16.mxu1 %v9347_v31  ;;  %v9423_v29 = vld [vmem:[#allocation8 + $0x2d0] ss:$8 sps:$4 sm:$0xff]   ;;  %v9431_v31 = vld [vmem:[#allocation8 + $0x2e4] ss:$8 sps:$4 sm:$0xff]  }
 0x487   : > { %4778 = vmatmul.mubr.bf16.vlgmr.msra.gmra.mrb[24].mxu0 %v4419_v42 }
 0x488   : > { %4821 = vmatmul.mubr.bf16.vlgmr.msra.gmra.mrb[32].mxu1 %v4419_v42  ;;  %5266 = vmatpush1.bf16.msra.mxu0 %v9342_v38  ;;  %v9429_v38 = vld [vmem:[#allocation8 + $0x2e0] ss:$8 sps:$4 sm:$0xff]   ;;  %v9432_v42 = vld [vmem:[#allocation8 + $0xf0] ss:$8 sps:$4 sm:$0xff]  }
 0x489   : > { %5737 = vmatpush1.bf16.msra.mxu1 %v9345_v39  ;;  %5267 = vmatprep.subr.bf16.mxu0 %v9350_v41  ;;  %v9434_v39 = vld [vmem:[#allocation8 + $0xf4] ss:$8 sps:$4 sm:$0xff]  }
 0x48a   : > { %5738 = vmatprep.subr.bf16.mxu1 %v9353_v43  ;;  %v9437_v41 = vld [vmem:[#allocation8 + $0x2f4] ss:$8 sps:$4 sm:$0xff]   ;;  %v9435_v43 = vld [vmem:[#allocation8 + $0x2f0] ss:$8 sps:$4 sm:$0xff]  }
 0x48c   : > { %5268 = vmatpush1.bf16.msra.mxu0 %v9348_v10  ;;  %v9440_v10 = vld [vmem:[#allocation8 + $0x104] ss:$8 sps:$4 sm:$0xff]  }
 0x48d   : > { %5739 = vmatpush1.bf16.msra.mxu1 %v9351_v58  ;;  %5269 = vmatprep.subr.bf16.mxu0 %v9356_v44  ;;  %v9443_v58 = vld [vmem:[#allocation8 + $0x304] ss:$8 sps:$4 sm:$0xff]   ;;  %v4839_v44 = vld [vmem:[%s10538_s4] sm:$0xf] }
 0x48e   : > { %5740 = vmatprep.subr.bf16.mxu1 %v9359_v45  ;;  %v4844_v45 = vrot.slane %v4839_v44, %v2183_v35 }
 0x490   : > { %5270 = vmatpush1.bf16.msra.mxu0 %v9354_v47  ;;  %v4852_v47 = vrot.slane %v4839_v44, %v2191_v33 }
 0x491   : > { %5741 = vmatpush1.bf16.msra.mxu1 %v9357_v46  ;;  %5271 = vmatprep.subr.bf16.mxu0 %v9362_v48  ;;  %v4848_v46 = vrot.slane %v4839_v44, %v2187_v36  ;;  %v4856_v48 = vrot.slane %v4839_v44, %v2195_v40  ;;  %v9488_v44 = vld [vmem:[#allocation8 + $0x184] ss:$8 sps:$4 sm:$0xff]  }
 0x492   : > { %5742 = vmatprep.subr.bf16.mxu1 %v9365_v49 }
 0x494   : > { %5272 = vmatpush1.bf16.msra.mxu0 %v9360_v50 }
 0x495   : > { %5743 = vmatpush1.bf16.msra.mxu1 %v9363_v51  ;;  %5273 = vmatprep.subr.bf16.mxu0 %v9368_v52 }
 0x496   : > { %5744 = vmatprep.subr.bf16.mxu1 %v9371_v53 }
 0x498   : > { %5274 = vmatpush1.bf16.msra.mxu0 %v9366_v54 }
 0x499   : > { %5745 = vmatpush1.bf16.msra.mxu1 %v9369_v55  ;;  %5275 = vmatprep.subr.bf16.mxu0 %v9374_v56 }
 0x49a   : > { %5746 = vmatprep.subr.bf16.mxu1 %v9377_v57 }
 0x49c   : > { %5276 = vmatpush1.bf16.msra.mxu0 %v9372_v37 }
 0x49d   : > { %5747 = vmatpush1.bf16.msra.mxu1 %v9375_v59  ;;  %5277 = vmatprep.subr.bf16.mxu0 %v9380_v60 }
 0x49e   : > { %5748 = vmatprep.subr.bf16.mxu1 %v9383_v61 }
 0x4a0   : > { %5278 = vmatpush1.bf16.msra.mxu0 %v9378_v62 }
 0x4a1   : > { %5749 = vmatpush1.bf16.msra.mxu1 %v9381_v63  ;;  %5279 = vmatprep.subr.bf16.mxu0 %v9386_v1 }
 0x4a2   : > { %5750 = vmatprep.subr.bf16.mxu1 %v9389_v2 }
 0x4a4   : > { %5280 = vmatpush1.bf16.msra.mxu0 %v9384_v3 }
 0x4a5   : > { %5751 = vmatpush1.bf16.msra.mxu1 %v9387_v4  ;;  %5281 = vmatprep.subr.bf16.mxu0 %v9392_v5 }
 0x4a6   : > { %5752 = vmatprep.subr.bf16.mxu1 %v9395_v6 }
 0x4a8   : > { %5282 = vmatpush1.bf16.msra.mxu0 %v9390_v7 }
 0x4a9   : > { %5753 = vmatpush1.bf16.msra.mxu1 %v9393_v8  ;;  %5283 = vmatprep.subr.bf16.mxu0 %v9398_v9  ;;  %v9438_v8 = vld [vmem:[#allocation8 + $0x100] ss:$8 sps:$4 sm:$0xff]  }
 0x4aa   : > { %5754 = vmatprep.subr.bf16.mxu1 %v9401_v11  ;;  %v9441_v9 = vld [vmem:[#allocation8 + $0x300] ss:$8 sps:$4 sm:$0xff]  }
 0x4ac   : > { %5284 = vmatpush1.bf16.msra.mxu0 %v9396_v12  ;;  %v9446_v12 = vld [vmem:[#allocation8 + $0x114] ss:$8 sps:$4 sm:$0xff]  }
 0x4ad   : > { %5755 = vmatpush1.bf16.msra.mxu1 %v9399_v13  ;;  %5285 = vmatprep.subr.bf16.mxu0 %v9404_v15  ;;  %v9449_v13 = vld [vmem:[#allocation8 + $0x314] ss:$8 sps:$4 sm:$0xff]   ;;  %v9444_v15 = vld [vmem:[#allocation8 + $0x110] ss:$8 sps:$4 sm:$0xff]  }
 0x4ae   : > { %5756 = vmatprep.subr.bf16.mxu1 %v9407_v16  ;;  %v9447_v16 = vld [vmem:[#allocation8 + $0x310] ss:$8 sps:$4 sm:$0xff]  }
 0x4b0   : > { %5286 = vmatpush1.bf16.msra.mxu0 %v9402_v17  ;;  %v9452_v17 = vld [vmem:[#allocation8 + $0x124] ss:$8 sps:$4 sm:$0xff]  }
 0x4b1   : > { %5757 = vmatpush1.bf16.msra.mxu1 %v9405_v18  ;;  %5287 = vmatprep.subr.bf16.mxu0 %v9410_v19  ;;  %v9455_v18 = vld [vmem:[#allocation8 + $0x324] ss:$8 sps:$4 sm:$0xff]   ;;  %v9450_v19 = vld [vmem:[#allocation8 + $0x120] ss:$8 sps:$4 sm:$0xff]  }
 0x4b2   : > { %5758 = vmatprep.subr.bf16.mxu1 %v9413_v20  ;;  %v9453_v20 = vld [vmem:[#allocation8 + $0x320] ss:$8 sps:$4 sm:$0xff]  }
 0x4b4   : > { %5288 = vmatpush1.bf16.msra.mxu0 %v9408_v14  ;;  %v9458_v14 = vld [vmem:[#allocation8 + $0x134] ss:$8 sps:$4 sm:$0xff]  }
 0x4b5   : > { %5759 = vmatpush1.bf16.msra.mxu1 %v9411_v21  ;;  %5289 = vmatprep.subr.bf16.mxu0 %v9416_v22  ;;  %v9461_v21 = vld [vmem:[#allocation8 + $0x334] ss:$8 sps:$4 sm:$0xff]   ;;  %v9456_v22 = vld [vmem:[#allocation8 + $0x130] ss:$8 sps:$4 sm:$0xff]  }
 0x4b6   : > { %5760 = vmatprep.subr.bf16.mxu1 %v9419_v23  ;;  %v9459_v23 = vld [vmem:[#allocation8 + $0x330] ss:$8 sps:$4 sm:$0xff]  }
 0x4b8   : > { %5290 = vmatpush1.bf16.msra.mxu0 %v9414_v24  ;;  %v9464_v24 = vld [vmem:[#allocation8 + $0x144] ss:$8 sps:$4 sm:$0xff]  }
 0x4b9   : > { %5761 = vmatpush1.bf16.msra.mxu1 %v9417_v25  ;;  %5291 = vmatprep.subr.bf16.mxu0 %v9422_v26  ;;  %v9467_v25 = vld [vmem:[#allocation8 + $0x344] ss:$8 sps:$4 sm:$0xff]   ;;  %v9462_v26 = vld [vmem:[#allocation8 + $0x140] ss:$8 sps:$4 sm:$0xff]  }
 0x4ba   : > { %5762 = vmatprep.subr.bf16.mxu1 %v9425_v27  ;;  %v9465_v27 = vld [vmem:[#allocation8 + $0x340] ss:$8 sps:$4 sm:$0xff]  }
 0x4bc   : > { %5292 = vmatpush1.bf16.msra.mxu0 %v9420_v28  ;;  %v9470_v28 = vld [vmem:[#allocation8 + $0x154] ss:$8 sps:$4 sm:$0xff]  }
 0x4bd   : > { %5763 = vmatpush1.bf16.msra.mxu1 %v9423_v29  ;;  %5293 = vmatprep.subr.bf16.mxu0 %v9428_v30  ;;  %v9473_v29 = vld [vmem:[#allocation8 + $0x354] ss:$8 sps:$4 sm:$0xff]   ;;  %v9468_v30 = vld [vmem:[#allocation8 + $0x150] ss:$8 sps:$4 sm:$0xff]  }
 0x4be   : > { %5764 = vmatprep.subr.bf16.mxu1 %v9431_v31  ;;  %v9471_v31 = vld [vmem:[#allocation8 + $0x350] ss:$8 sps:$4 sm:$0xff]  }
 0x4c0   : > { %5294 = vmatpush1.bf16.msra.mxu0 %v9426_v32  ;;  %v9476_v32 = vld [vmem:[#allocation8 + $0x164] ss:$8 sps:$4 sm:$0xff]  }
 0x4c1   : > { %5765 = vmatpush1.bf16.msra.mxu1 %v9429_v38  ;;  %5295 = vmatprep.subr.bf16.mxu0 %v9434_v39  ;;  %v9479_v38 = vld [vmem:[#allocation8 + $0x364] ss:$8 sps:$4 sm:$0xff]   ;;  %v9474_v39 = vld [vmem:[#allocation8 + $0x160] ss:$8 sps:$4 sm:$0xff]  }
 0x4c2   : > { %5766 = vmatprep.subr.bf16.mxu1 %v9437_v41  ;;  %v9477_v41 = vld [vmem:[#allocation8 + $0x360] ss:$8 sps:$4 sm:$0xff]  }
 0x4c4   : > { %5296 = vmatpush1.bf16.msra.mxu0 %v9432_v42  ;;  %v9482_v42 = vld [vmem:[#allocation8 + $0x174] ss:$8 sps:$4 sm:$0xff]  }
 0x4c5   : > { %5767 = vmatpush1.bf16.msra.mxu1 %v9435_v43  ;;  %5308 = vmatprep.subr.bf16.mxu0 %v9440_v10  ;;  %v9485_v43 = vld [vmem:[#allocation8 + $0x374] ss:$8 sps:$4 sm:$0xff]   ;;  %v9480_v10 = vld [vmem:[#allocation8 + $0x170] ss:$8 sps:$4 sm:$0xff]  }
 0x4c6   : > { %5779 = vmatprep.subr.bf16.mxu1 %v9443_v58  ;;  %v9483_v58 = vld [vmem:[#allocation8 + $0x370] ss:$8 sps:$4 sm:$0xff]  }
 0x55a   : > { %v4779_v49 = vpop.f32.mrb[24].mxu0 }
 0x55b   : > { %v4861_v50 = vadd.f32 %v4844_v45, %v4779_v49  ;;  %v4822_v51 = vpop.f32.mrb[32].mxu1  ;;  %v4781_v52 = vpop.f32.mrb[25].mxu0  ;;  %v9497_v49 = vld [vmem:[#allocation8 + $0x394] ss:$8 sps:$4 sm:$0xff]  }
 0x55c   : > { %v4863_v53 = vadd.f32 %v4852_v47, %v4822_v51  ;;  %v4862_v54 = vadd.f32 %v4848_v46, %v4781_v52  ;;  %v4824_v55 = vpop.f32.mrb[33].mxu1  ;;  %v4783_v56 = vpop.f32.mrb[26].mxu0  ;;  %v9495_v51 = vld [vmem:[#allocation8 + $0x390] ss:$8 sps:$4 sm:$0xff]   ;;  %v9500_v52 = vld [vmem:[#allocation8 + $0x1a4] ss:$8 sps:$4 sm:$0xff]  }
 0x55d   : > { %v4864_v57 = vadd.f32 %v4856_v48, %v4824_v55  ;;  %v4865_v37 = vadd.f32 %v4844_v45, %v4783_v56  ;;  %v4826_v35 = vpop.f32.mrb[34].mxu1  ;;  %v4785_v59 = vpop.f32.mrb[27].mxu0  ;;  %v4869_v62 = vmax.f32 %v4861_v50, 0.0  ;;  %v9491_v45 = vld [vmem:[#allocation8 + $0x384] ss:$8 sps:$4 sm:$0xff]  }
 0x55e   : > { %v4867_v60 = vadd.f32 %v4852_v47, %v4826_v35  ;;  %v4866_v33 = vadd.f32 %v4848_v46, %v4785_v59  ;;  %v4828_v61 = vpop.f32.mrb[35].mxu1  ;;  %v4871_v34 = vmax.f32 %v4863_v53, 0.0  ;;  %v4870_v40 = vmax.f32 %v4862_v54, 0.0  ;;  %v9486_v47 = vld [vmem:[#allocation8 + $0x180] ss:$8 sps:$4 sm:$0xff]  }
 0x55f   : > { %v4873_v36 = vmax.f32 %v4865_v37, 0.0  ;;  %v4868_v63 = vadd.f32 %v4856_v48, %v4828_v61  ;;  %v4872_v3 = vmax.f32 %v4864_v57, 0.0  ;;  %v9489_v46 = vld [vmem:[#allocation8 + $0x380] ss:$8 sps:$4 sm:$0xff]   ;;  %v9494_v48 = vld [vmem:[#allocation8 + $0x194] ss:$8 sps:$4 sm:$0xff]  }
 0x560   : > { %v4875_v1 = vmax.f32 %v4867_v60, 0.0  ;;  %v4874_v2 = vmax.f32 %v4866_v33, 0.0  ;;  %v9492_v50 = vld [vmem:[#allocation8 + $0x190] ss:$8 sps:$4 sm:$0xff]   ;;  %v9503_v53 = vld [vmem:[#allocation8 + $0x3a4] ss:$8 sps:$4 sm:$0xff]  }
 0x561   : > { %v4877_v4 = vpack.c.bf16 %v4873_v36, %v4869_v62  ;;  %v4876_v5 = vmax.f32 %v4868_v63, 0.0  ;;  %v9498_v54 = vld [vmem:[#allocation8 + $0x1a0] ss:$8 sps:$4 sm:$0xff]   ;;  %v9506_v56 = vld [vmem:[#allocation8 + $0x1b4] ss:$8 sps:$4 sm:$0xff]  }
 0x562   : > { %v10419_v6 = vpack.c.bf16 %v4875_v1, %v4871_v34  ;;  %v4878_v7 = vpack.c.bf16 %v4874_v2, %v4870_v40  ;;  %v9501_v55 = vld [vmem:[#allocation8 + $0x3a0] ss:$8 sps:$4 sm:$0xff]   ;;  %v9509_v57 = vld [vmem:[#allocation8 + $0x3b4] ss:$8 sps:$4 sm:$0xff]   ;;  %v9504_v37 = vld [vmem:[#allocation8 + $0x1b0] ss:$8 sps:$4 sm:$0xff]  }
 0x563   : > { %v4880_v11 = vpack.c.bf16 %v4876_v5, %v4872_v3  ;;  %v9507_v35 = vld [vmem:[#allocation8 + $0x3b0] ss:$8 sps:$4 sm:$0xff]   ;;  %v9512_v59 = vld [vmem:[#allocation8 + $0x1c4] ss:$8 sps:$4 sm:$0xff]   ;;  %v9510_v33 = vld [vmem:[#allocation8 + $0x1c0] ss:$8 sps:$4 sm:$0xff]  }
 0x564   : > { %5297 = vmatprep.mubr.bf16.mxu0 %v4878_v7  ;;  %5768 = vmatprep.mubr.bf16.mxu1 %v4878_v7  ;;  %v9515_v60 = vld [vmem:[#allocation8 + $0x3c4] ss:$8 sps:$4 sm:$0xff]   ;;  %v9513_v61 = vld [vmem:[#allocation8 + $0x3c0] ss:$8 sps:$4 sm:$0xff]   ;;  %v9518_v62 = vld [vmem:[#allocation8 + $0x1d4] ss:$8 sps:$4 sm:$0xff]  }
 0x565   : > { %5298 = vmatmul.mubr.bf16.vlgmr.msra.gmra.mrb[28].mxu0 %v4877_v4  ;;  %5769 = vmatmul.mubr.bf16.vlgmr.msra.gmra.mrb[36].mxu1 %v4877_v4  ;;  %v9521_v36 = vld [vmem:[#allocation8 + $0x3d4] ss:$8 sps:$4 sm:$0xff]   ;;  %v9516_v63 = vld [vmem:[#allocation8 + $0x1d0] ss:$8 sps:$4 sm:$0xff]   ;;  %v9524_v40 = vld [vmem:[#allocation8 + $0x1e4] ss:$8 sps:$4 sm:$0xff]  }
 0x566   : > { %5309 = vmatpush1.bf16.msra.mxu0 %v9438_v8  ;;  %5780 = vmatpush1.bf16.msra.mxu1 %v9441_v9  ;;  %v9519_v34 = vld [vmem:[#allocation8 + $0x3d0] ss:$8 sps:$4 sm:$0xff]   ;;  %v9527_v1 = vld [vmem:[#allocation8 + $0x3e4] ss:$8 sps:$4 sm:$0xff]   ;;  %v9522_v2 = vld [vmem:[#allocation8 + $0x1e0] ss:$8 sps:$4 sm:$0xff]  }
 0x567   : > { %5340 = vmatprep.mubr.bf16.mxu0 %v4880_v11  ;;  %5811 = vmatprep.mubr.bf16.mxu1 %v4880_v11  ;;  %v9525_v3 = vld [vmem:[#allocation8 + $0x3e0] ss:$8 sps:$4 sm:$0xff]   ;;  %v9530_v4 = vld [vmem:[#allocation8 + $0x1f4] ss:$8 sps:$4 sm:$0xff]   ;;  %v9528_v7 = vld [vmem:[#allocation8 + $0x1f0] ss:$8 sps:$4 sm:$0xff]  }
 0x568   : > { %5310 = vmatprep.subr.bf16.mxu0 %v9446_v12  ;;  %5781 = vmatprep.subr.bf16.mxu1 %v9449_v13  ;;  %v9533_v5 = vld [vmem:[#allocation8 + $0x3f4] ss:$8 sps:$4 sm:$0xff]   ;;  %v9531_v8 = vld [vmem:[#allocation8 + $0x3f0] ss:$8 sps:$4 sm:$0xff]  }
 0x56a   : > { %5311 = vmatpush1.bf16.msra.mxu0 %v9444_v15  ;;  %5782 = vmatpush1.bf16.msra.mxu1 %v9447_v16 }
 0x56b   : > { %5312 = vmatprep.subr.bf16.mxu0 %v9452_v17  ;;  %5783 = vmatprep.subr.bf16.mxu1 %v9455_v18 }
 0x56e   : > { %5313 = vmatpush1.bf16.msra.mxu0 %v9450_v19  ;;  %5784 = vmatpush1.bf16.msra.mxu1 %v9453_v20 }
 0x56f   : > { %5314 = vmatprep.subr.bf16.mxu0 %v9458_v14  ;;  %5785 = vmatprep.subr.bf16.mxu1 %v9461_v21 }
 0x572   : > { %5315 = vmatpush1.bf16.msra.mxu0 %v9456_v22  ;;  %5786 = vmatpush1.bf16.msra.mxu1 %v9459_v23 }
 0x573   : > { %5316 = vmatprep.subr.bf16.mxu0 %v9464_v24  ;;  %5787 = vmatprep.subr.bf16.mxu1 %v9467_v25  ;;  %v9534_v24 = vld [vmem:[#allocation10 + $0x40] sm:$0xff]  }
 0x574   : > { %v8136_v25 = vld [vmem:[%s10542_s8 + $0x4] sm:$0xf] }
 0x576   : > { %5317 = vmatpush1.bf16.msra.mxu0 %v9462_v26  ;;  %5788 = vmatpush1.bf16.msra.mxu1 %v9465_v27  ;;  %v9535_v26 = vld [vmem:[#allocation10] sm:$0xff]  }
 0x577   : > { %5318 = vmatprep.subr.bf16.mxu0 %v9470_v28  ;;  %5789 = vmatprep.subr.bf16.mxu1 %v9473_v29  ;;  %v9537_v27 = vld [vmem:[#allocation10 + $0x80] sm:$0xff]   ;;  %v9538_v28 = vld [vmem:[#allocation10 + $0x48] sm:$0xff]  }
 0x578   : > { %v9540_v29 = vld [vmem:[#allocation10 + $0xc8] sm:$0xff]  }
 0x57a   : > { %5319 = vmatpush1.bf16.msra.mxu0 %v9468_v30  ;;  %5790 = vmatpush1.bf16.msra.mxu1 %v9471_v31  ;;  %v9539_v30 = vld [vmem:[#allocation10 + $0x8] sm:$0xff]  }
 0x57b   : > { %5320 = vmatprep.subr.bf16.mxu0 %v9476_v32  ;;  %5791 = vmatprep.subr.bf16.mxu1 %v9479_v38  ;;  %v9541_v31 = vld [vmem:[#allocation10 + $0x88] sm:$0xff]   ;;  %v9542_v32 = vld [vmem:[#allocation10 + $0x50] sm:$0xff]  }
 0x57c   : > { %v9544_v38 = vld [vmem:[#allocation10 + $0xd0] sm:$0xff]  }
 0x57e   : > { %5321 = vmatpush1.bf16.msra.mxu0 %v9474_v39  ;;  %5792 = vmatpush1.bf16.msra.mxu1 %v9477_v41  ;;  %v9543_v39 = vld [vmem:[#allocation10 + $0x10] sm:$0xff]  }
 0x57f   : > { %5322 = vmatprep.subr.bf16.mxu0 %v9482_v42  ;;  %5793 = vmatprep.subr.bf16.mxu1 %v9485_v43  ;;  %v9545_v41 = vld [vmem:[#allocation10 + $0x90] sm:$0xff]   ;;  %v9546_v42 = vld [vmem:[#allocation10 + $0x58] sm:$0xff]  }
 0x580   : > { %v9548_v43 = vld [vmem:[#allocation10 + $0xd8] sm:$0xff]  }
 0x582   : > { %5323 = vmatpush1.bf16.msra.mxu0 %v9480_v10  ;;  %5794 = vmatpush1.bf16.msra.mxu1 %v9483_v58  ;;  %v9547_v10 = vld [vmem:[#allocation10 + $0x18] sm:$0xff]  }
 0x583   : > { %5324 = vmatprep.subr.bf16.mxu0 %v9488_v44  ;;  %5795 = vmatprep.subr.bf16.mxu1 %v9491_v45  ;;  %v9549_v58 = vld [vmem:[#allocation10 + $0x98] sm:$0xff]   ;;  %v9550_v44 = vld [vmem:[#allocation10 + $0x60] sm:$0xff]  }
 0x584   : > { %v9552_v45 = vld [vmem:[#allocation10 + $0xe0] sm:$0xff]  }
 0x586   : > { %5325 = vmatpush1.bf16.msra.mxu0 %v9486_v47  ;;  %5796 = vmatpush1.bf16.msra.mxu1 %v9489_v46  ;;  %v9551_v47 = vld [vmem:[#allocation10 + $0x20] sm:$0xff]  }
 0x587   : > { %5326 = vmatprep.subr.bf16.mxu0 %v9494_v48  ;;  %5797 = vmatprep.subr.bf16.mxu1 %v9497_v49  ;;  %v9553_v46 = vld [vmem:[#allocation10 + $0xa0] sm:$0xff]   ;;  %v9554_v48 = vld [vmem:[#allocation10 + $0x68] sm:$0xff]  }
 0x588   : > { %v9556_v49 = vld [vmem:[#allocation10 + $0xe8] sm:$0xff]  }
 0x58a   : > { %5327 = vmatpush1.bf16.msra.mxu0 %v9492_v50  ;;  %5798 = vmatpush1.bf16.msra.mxu1 %v9495_v51  ;;  %v9555_v50 = vld [vmem:[#allocation10 + $0x28] sm:$0xff]  }
 0x58b   : > { %5328 = vmatprep.subr.bf16.mxu0 %v9500_v52  ;;  %5799 = vmatprep.subr.bf16.mxu1 %v9503_v53  ;;  %v9557_v51 = vld [vmem:[#allocation10 + $0xa8] sm:$0xff]   ;;  %v9558_v52 = vld [vmem:[#allocation10 + $0x70] sm:$0xff]  }
 0x58c   : > { %v9559_v53 = vld [vmem:[#allocation10 + $0x30] sm:$0xff]  }
 0x58e   : > { %5329 = vmatpush1.bf16.msra.mxu0 %v9498_v54  ;;  %5800 = vmatpush1.bf16.msra.mxu1 %v9501_v55  ;;  %v9560_v54 = vld [vmem:[#allocation10 + $0xf0] sm:$0xff]  }
 0x58f   : > { %5330 = vmatprep.subr.bf16.mxu0 %v9506_v56  ;;  %5801 = vmatprep.subr.bf16.mxu1 %v9509_v57  ;;  %v9561_v55 = vld [vmem:[#allocation10 + $0xb0] sm:$0xff]   ;;  %v9562_v56 = vld [vmem:[#allocation10 + $0x78] sm:$0xff]  }
 0x590   : > { %v9563_v57 = vld [vmem:[#allocation10 + $0x38] sm:$0xff]  }
 0x592   : > { %5331 = vmatpush1.bf16.msra.mxu0 %v9504_v37  ;;  %5802 = vmatpush1.bf16.msra.mxu1 %v9507_v35  ;;  %v9564_v37 = vld [vmem:[#allocation10 + $0xf8] sm:$0xff]  }
 0x593   : > { %5332 = vmatprep.subr.bf16.mxu0 %v9512_v59  ;;  %5803 = vmatprep.subr.bf16.mxu1 %v9515_v60  ;;  %v9565_v35 = vld [vmem:[#allocation10 + $0xb8] sm:$0xff]   ;;  %v9566_v59 = vld [vmem:[#allocation10 + $0x1c0] sm:$0xff]  }
 0x594   : > { %v9568_v60 = vld [vmem:[#allocation10 + $0x140] sm:$0xff]  }
 0x596   : > { %5333 = vmatpush1.bf16.msra.mxu0 %v9510_v33  ;;  %5804 = vmatpush1.bf16.msra.mxu1 %v9513_v61 }
 0x597   : > { %5334 = vmatprep.subr.bf16.mxu0 %v9518_v62  ;;  %5805 = vmatprep.subr.bf16.mxu1 %v9521_v36 }
 0x59a   : > { %5335 = vmatpush1.bf16.msra.mxu0 %v9516_v63  ;;  %5806 = vmatpush1.bf16.msra.mxu1 %v9519_v34 }
 0x59b   : > { %5336 = vmatprep.subr.bf16.mxu0 %v9524_v40  ;;  %5807 = vmatprep.subr.bf16.mxu1 %v9527_v1 }
 0x59e   : > { %5337 = vmatpush1.bf16.msra.mxu0 %v9522_v2  ;;  %5808 = vmatpush1.bf16.msra.mxu1 %v9525_v3 }
 0x59f   : > { %5338 = vmatprep.subr.bf16.mxu0 %v9530_v4  ;;  %5809 = vmatprep.subr.bf16.mxu1 %v9533_v5 }
 0x5a2   : > { %5339 = vmatpush1.bf16.msra.mxu0 %v9528_v7  ;;  %5810 = vmatpush1.bf16.msra.mxu1 %v9531_v8  ;;  %v9567_v7 = vld [vmem:[#allocation10 + $0x180] sm:$0xff]   ;;  %v9570_v8 = vld [vmem:[#allocation10 + $0x1c8] sm:$0xff]  }
 0x5a5   : > { %5341 = vmatmul.mubr.bf16.vlgmr.msra.gmra.mrb[28].mxu0 %v10419_v6  ;;  %5812 = vmatmul.mubr.bf16.vlgmr.msra.gmra.mrb[36].mxu1 %v10419_v6  ;;  %v9536_v6 = vld [vmem:[#allocation10 + $0xc0] sm:$0xff]  }
 0x5a6   : > { %5865 = vmatprep.mubr.bf16.mxu0 %v9897_v0  ;;  %5911 = vmatprep.mubr.bf16.mxu1 %v9897_v0  ;;  %v5828_v0 = vld [vmem:[%s10542_s8] sm:$0xf] }
 0x678   : > { %v5342_v9 = vpop.f32.mrb[28].mxu0  ;;  %v5813_v11 = vpop.f32.mrb[36].mxu1 }
 0x679   : > { %v5822_v12 = vmax.f32 %v5342_v9, %v5813_v11  ;;  %v5344_v13 = vpop.f32.mrb[29].mxu0  ;;  %v5815_v15 = vpop.f32.mrb[37].mxu1  ;;  %v9569_v11 = vld [vmem:[#allocation10 + $0x100] sm:$0xff]  }
 0x67a   : > { %v5823_v16 = vmax.f32 %v5344_v13, %v5815_v15  ;;  %v5346_v17 = vpop.f32.mrb[30].mxu0  ;;  %v5817_v18 = vpop.f32.mrb[38].mxu1  ;;  %v9572_v13 = vld [vmem:[#allocation10 + $0x148] sm:$0xff]  }
 0x67b   : > { %v5824_v19 = vmax.f32 %v5346_v17, %v5817_v18  ;;  %v5348_v20 = vpop.f32.mrb[31].mxu0  ;;  %v5819_v14 = vpop.f32.mrb[39].mxu1  ;;  %v9571_v15 = vld [vmem:[#allocation10 + $0x188] sm:$0xff]   ;;  %v9574_v18 = vld [vmem:[#allocation10 + $0x1d0] sm:$0xff]  }
 0x67c   : > { %v5825_v21 = vmax.f32 %v5348_v20, %v5819_v14  ;;  %v9576_v20 = vld [vmem:[#allocation10 + $0x150] sm:$0xff]  }
 0x67d   : > { %v5826_v22 = vpack.c.bf16 %v5824_v19, %v5822_v12  ;;  %v9573_v19 = vld [vmem:[#allocation10 + $0x108] sm:$0xff]   ;;  %v9575_v14 = vld [vmem:[#allocation10 + $0x190] sm:$0xff]  }
 0x67e   : > { %v5827_v23 = vpack.c.bf16 %v5825_v21, %v5823_v16  ;;  %v9578_v21 = vld [vmem:[#allocation10 + $0x1d8] sm:$0xff]  }
 0x680   : > { %5833 = vmatprep.subr.bf16.mxu0 %v5827_v23  ;;  %5879 = vmatprep.subr.bf16.mxu1 %v5827_v23  ;;  %v9580_v23 = vld [vmem:[#allocation10 + $0x158] sm:$0xff]  }
 0x681   : > { %5834 = vmatpush1.bf16.msra.mxu0 %v5826_v22  ;;  %5880 = vmatpush1.bf16.msra.mxu1 %v5826_v22  ;;  %v9577_v22 = vld [vmem:[#allocation10 + $0x110] sm:$0xff]  }
 0x682   : > { %8299 = vmatprep.subr.bf16.mxu1 %v9534_v24  ;;  %8277 = vmatprep.subr.bf16.mxu0 %v9536_v6  ;;  %v9579_v24 = vld [vmem:[#allocation10 + $0x198] sm:$0xff]   ;;  %v9582_v6 = vld [vmem:[#allocation10 + $0x1e0] sm:$0xff]  }
 0x684   : > { %8135 = vmatmul.mubr.msk.bf16.vlgmr.msra.gmra.mrb[32].mxu0 %vm5829_vm3, %v5828_v0  ;;  %8137 = vmatmul.mubr.msk.bf16.vlgmr.msra.gmra.mrb[40].mxu1 %vm5829_vm3, %v8136_v25  ;;  %v9581_v0 = vld [vmem:[#allocation10 + $0x118] sm:$0xff]   ;;  %v9584_v25 = vld [vmem:[#allocation10 + $0x160] sm:$0xff]  }
 0x685   : > { %8300 = vmatpush3.bf16.msra.mxu1 %v9535_v26  ;;  %8278 = vmatpush3.bf16.msra.mxu0 %v9537_v27  ;;  %v9583_v26 = vld [vmem:[#allocation10 + $0x1a0] sm:$0xff]   ;;  %v9586_v27 = vld [vmem:[#allocation10 + $0x1e8] sm:$0xff]  }
 0x686   : > { %8301 = vmatprep.subr.bf16.mxu1 %v9538_v28  ;;  %8279 = vmatprep.subr.bf16.mxu0 %v9540_v29  ;;  %v9585_v28 = vld [vmem:[#allocation10 + $0x120] sm:$0xff]   ;;  %v9588_v29 = vld [vmem:[#allocation10 + $0x168] sm:$0xff]  }
 0x689   : > { %8302 = vmatpush3.bf16.msra.mxu1 %v9539_v30  ;;  %8280 = vmatpush3.bf16.msra.mxu0 %v9541_v31  ;;  %v9587_v30 = vld [vmem:[#allocation10 + $0x1a8] sm:$0xff]   ;;  %v9590_v31 = vld [vmem:[#allocation10 + $0x1f0] sm:$0xff]  }
 0x68a   : > { %8303 = vmatprep.subr.bf16.mxu1 %v9542_v32  ;;  %8281 = vmatprep.subr.bf16.mxu0 %v9544_v38  ;;  %v9589_v32 = vld [vmem:[#allocation10 + $0x128] sm:$0xff]   ;;  %v9592_v38 = vld [vmem:[#allocation10 + $0x170] sm:$0xff]  }
 0x68d   : > { %8304 = vmatpush3.bf16.msra.mxu1 %v9543_v39  ;;  %8282 = vmatpush3.bf16.msra.mxu0 %v9545_v41  ;;  %v9591_v39 = vld [vmem:[#allocation10 + $0x1b0] sm:$0xff]   ;;  %v9594_v41 = vld [vmem:[#allocation10 + $0x1f8] sm:$0xff]  }
 0x68e   : > { %8305 = vmatprep.subr.bf16.mxu1 %v9546_v42  ;;  %8283 = vmatprep.subr.bf16.mxu0 %v9548_v43  ;;  %v9593_v42 = vld [vmem:[#allocation10 + $0x130] sm:$0xff]   ;;  %v9596_v43 = vld [vmem:[#allocation10 + $0x178] sm:$0xff]  }
 0x691   : > { %8306 = vmatpush3.bf16.msra.mxu1 %v9547_v10  ;;  %8284 = vmatpush3.bf16.msra.mxu0 %v9549_v58  ;;  %v9595_v10 = vld [vmem:[#allocation10 + $0x1b8] sm:$0xff]   ;;  %v9598_v58 = vld [vmem:[#allocation10 + $0x2c0] sm:$0xff]  }
 0x692   : > { %8307 = vmatprep.subr.bf16.mxu1 %v9550_v44  ;;  %8285 = vmatprep.subr.bf16.mxu0 %v9552_v45  ;;  %v9597_v44 = vld [vmem:[#allocation10 + $0x138] sm:$0xff]   ;;  %v9600_v45 = vld [vmem:[#allocation10 + $0x240] sm:$0xff]  }
 0x695   : > { %8308 = vmatpush3.bf16.msra.mxu1 %v9551_v47  ;;  %8286 = vmatpush3.bf16.msra.mxu0 %v9553_v46  ;;  %v9599_v47 = vld [vmem:[#allocation10 + $0x280] sm:$0xff]  }
 0x696   : > { %8309 = vmatprep.subr.bf16.mxu1 %v9554_v48  ;;  %8287 = vmatprep.subr.bf16.mxu0 %v9556_v49  ;;  %v9602_v48 = vld [vmem:[#allocation10 + $0x2c8] sm:$0xff]  }
 0x699   : > { %8310 = vmatpush3.bf16.msra.mxu1 %v9555_v50  ;;  %8288 = vmatpush3.bf16.msra.mxu0 %v9557_v51  ;;  %v9601_v50 = vld [vmem:[#allocation10 + $0x200] sm:$0xff]  }
 0x69a   : > { %8311 = vmatprep.subr.bf16.mxu1 %v9558_v52  ;;  %8289 = vmatprep.subr.bf16.mxu0 %v9560_v54  ;;  %v9604_v52 = vld [vmem:[#allocation10 + $0x248] sm:$0xff]  }
 0x69b   : > { %v9603_v54 = vld [vmem:[#allocation10 + $0x288] sm:$0xff]  }
 0x69d   : > { %8312 = vmatpush3.bf16.msra.mxu1 %v9559_v53  ;;  %8290 = vmatpush3.bf16.msra.mxu0 %v9561_v55  ;;  %v9606_v55 = vld [vmem:[#allocation10 + $0x2d0] sm:$0xff]  }
 0x69e   : > { %8313 = vmatprep.subr.bf16.mxu1 %v9562_v56  ;;  %8291 = vmatprep.subr.bf16.mxu0 %v9564_v37  ;;  %v9605_v56 = vld [vmem:[#allocation10 + $0x208] sm:$0xff]   ;;  %v9607_v37 = vld [vmem:[#allocation10 + $0x290] sm:$0xff]  }
 0x6a1   : > { %8314 = vmatpush3.bf16.msra.mxu1 %v9563_v57  ;;  %8292 = vmatpush3.bf16.msra.mxu0 %v9565_v35  ;;  %v9608_v57 = vld [vmem:[#allocation10 + $0x250] sm:$0xff]   ;;  %v9610_v35 = vld [vmem:[#allocation10 + $0x2d8] sm:$0xff]  }
 0x6a2   : > { %8343 = vmatprep.subr.bf16.mxu1 %v9566_v59  ;;  %8321 = vmatprep.subr.bf16.mxu0 %v9568_v60  ;;  %v9609_v59 = vld [vmem:[#allocation10 + $0x210] sm:$0xff]   ;;  %v9612_v60 = vld [vmem:[#allocation10 + $0x258] sm:$0xff]  }
 0x757   : > { %v5867_v33 = vpop.f32.mrb[32].mxu0  ;;  %v5913_v61 = vpop.f32.mrb[40].mxu1 }
 0x758   : > { %v5920_v62 = vmax.f32 %v5867_v33, %v5913_v61  ;;  %v5869_v36 = vpop.f32.mrb[33].mxu0  ;;  %v5915_v63 = vpop.f32.mrb[41].mxu1  ;;  %v9611_v33 = vld [vmem:[#allocation10 + $0x298] sm:$0xff]   ;;  %v9614_v61 = vld [vmem:[#allocation10 + $0x2e0] sm:$0xff]  }
 0x759   : > { %v5921_v34 = vmax.f32 %v5869_v36, %v5915_v63  ;;  %v5871_v40 = vpop.f32.mrb[34].mxu0  ;;  %v5917_v1 = vpop.f32.mrb[42].mxu1  ;;  %v9616_v36 = vld [vmem:[#allocation10 + $0x260] sm:$0xff]  }
 0x75a   : > { %v10431_v2 = vpack.c.bf16 %v5920_v62, %v5920_v62  ;;  %v5872_v3 = vpop.f32.mrb[35].mxu0  ;;  %v5918_v4 = vpop.f32.mrb[43].mxu1  ;;  %v9613_v62 = vld [vmem:[#allocation10 + $0x218] sm:$0xff]   ;;  %v9615_v63 = vld [vmem:[#allocation10 + $0x2a0] sm:$0xff]   ;;  %v9620_v1 = vld [vmem:[#allocation10 + $0x268] sm:$0xff]  }
 0x75b   : > { %v10433_v5 = vpack.c.bf16 %v5921_v34, %v5921_v34  ;;  %v9618_v34 = vld [vmem:[#allocation10 + $0x2e8] sm:$0xff]   ;;  %v9617_v40 = vld [vmem:[#allocation10 + $0x220] sm:$0xff]   ;;  %v9622_v4 = vld [vmem:[#allocation10 + $0x2f0] sm:$0xff]  }
 0x75c   : > { %v10441_v12 = vshrl.u32 %v10431_v2, 16  ;;  %v6304_v51 = vrot.slane %v10431_v2, 1  ;;  %v9619_v3 = vld [vmem:[#allocation10 + $0x2a8] sm:$0xff]  }
 0x75d   : > { %6261 = vmatprep.mubr.bf16.mxu1 %v10433_v5  ;;  %v10437_v9 = vshrl.u32 %v10433_v5, 16  ;;  %v6305_v16 = vrot.slane %v10433_v5, 1  ;;  %v6653_v53 = vrot.slane %v10433_v5, 2 }
 0x75e   : > { %6262 = vmatmul.mubr.bf16.vlgmr.msra.gmra.mrb[44].mxu1 %v10431_v2  ;;  %v6478_v46 = vrot.slane %v10441_v12, 1 }
 0x75f   : > { %8344 = vmatpush3.bf16.msra.mxu1 %v9567_v7  ;;  %6125 = vmatprep.mubr.bf16.mxu0 %v10437_v9  ;;  %v6479_v17 = vrot.slane %v10437_v9, 1  ;;  %v6827_v49 = vrot.slane %v10437_v9, 2  ;;  %v9621_v7 = vld [vmem:[#allocation10 + $0x228] sm:$0xff]  }
 0x760   : > { %6126 = vmatmul.mubr.bf16.vlgmr.msra.gmra.mrb[36].mxu0 %v10441_v12  ;;  %8345 = vmatprep.subr.bf16.mxu1 %v9570_v8  ;;  %v9624_v8 = vld [vmem:[#allocation10 + $0x270] sm:$0xff]  }
 0x761   : > { %8322 = vmatpush3.bf16.msra.mxu0 %v9569_v11  ;;  %6436 = vmatprep.mubr.bf16.mxu0 %v6305_v16  ;;  %v9623_v11 = vld [vmem:[#allocation10 + $0x2b0] sm:$0xff]   ;;  %v9628_v16 = vld [vmem:[#allocation10 + $0x278] sm:$0xff]  }
 0x762   : > { %8323 = vmatprep.subr.bf16.mxu0 %v9572_v13  ;;  %6610 = vmatprep.mubr.bf16.mxu1 %v6479_v17  ;;  %v9626_v13 = vld [vmem:[#allocation10 + $0x2f8] sm:$0xff]  }
 0x763   : > { %8346 = vmatpush3.bf16.msra.mxu1 %v9571_v15  ;;  %v9625_v15 = vld [vmem:[#allocation10 + $0x230] sm:$0xff]   ;;  %v9627_v17 = vld [vmem:[#allocation10 + $0x2b8] sm:$0xff]  }
 0x764   : > { %8347 = vmatprep.subr.bf16.mxu1 %v9574_v18  ;;  %v9630_v18 = vld [vmem:[#allocation10 + $0x3c0] sm:$0xff]  }
 0x765   : > { %8324 = vmatpush3.bf16.msra.mxu0 %v9573_v19  ;;  %v9629_v19 = vld [vmem:[#allocation10 + $0x238] sm:$0xff]  }
 0x766   : > { %8325 = vmatprep.subr.bf16.mxu0 %v9576_v20  ;;  %v9632_v20 = vld [vmem:[#allocation10 + $0x340] sm:$0xff]  }
 0x767   : > { %8348 = vmatpush3.bf16.msra.mxu1 %v9575_v14  ;;  %v9631_v14 = vld [vmem:[#allocation10 + $0x380] sm:$0xff]  }
 0x768   : > { %8349 = vmatprep.subr.bf16.mxu1 %v9578_v21  ;;  %v6826_v21 = vrot.slane %v10441_v12, 2 }
 0x769   : > { %8326 = vmatpush3.bf16.msra.mxu0 %v9577_v22  ;;  %v9634_v22 = vld [vmem:[#allocation10 + $0x3c8] sm:$0xff]  }
 0x76a   : > { %8327 = vmatprep.subr.bf16.mxu0 %v9580_v23  ;;  %v7175_v23 = vrot.slane %v10437_v9, 3  ;;  %v9639_v9 = vld [vmem:[#allocation10 + $0x390] sm:$0xff]  }
 0x76b   : > { %8350 = vmatpush3.bf16.msra.mxu1 %v9579_v24  ;;  %v9633_v24 = vld [vmem:[#allocation10 + $0x300] sm:$0xff]  }
 0x76c   : > { %8351 = vmatprep.subr.bf16.mxu1 %v9582_v6  ;;  %v6652_v6 = vrot.slane %v10431_v2, 2 }
 0x76d   : > { %8328 = vmatpush3.bf16.msra.mxu0 %v9581_v0  ;;  %v9636_v0 = vld [vmem:[#allocation10 + $0x348] sm:$0xff]  }
 0x76e   : > { %8329 = vmatprep.subr.bf16.mxu0 %v9584_v25  ;;  %v7001_v25 = vrot.slane %v10433_v5, 3  ;;  %v9646_v5 = vld [vmem:[#allocation10 + $0x3e0] sm:$0xff]  }
 0x76f   : > { %8352 = vmatpush3.bf16.msra.mxu1 %v9583_v26  ;;  %v9635_v26 = vld [vmem:[#allocation10 + $0x388] sm:$0xff]  }
 0x770   : > { %8353 = vmatprep.subr.bf16.mxu1 %v9586_v27  ;;  %v9638_v27 = vld [vmem:[#allocation10 + $0x3d0] sm:$0xff]  }
 0x771   : > { %8330 = vmatpush3.bf16.msra.mxu0 %v9585_v28  ;;  %v9637_v28 = vld [vmem:[#allocation10 + $0x308] sm:$0xff]  }
 0x772   : > { %8331 = vmatprep.subr.bf16.mxu0 %v9588_v29  ;;  %v9640_v29 = vld [vmem:[#allocation10 + $0x350] sm:$0xff]  }
 0x773   : > { %8354 = vmatpush3.bf16.msra.mxu1 %v9587_v30  ;;  %v9642_v30 = vld [vmem:[#allocation10 + $0x3d8] sm:$0xff]  }
 0x774   : > { %8355 = vmatprep.subr.bf16.mxu1 %v9590_v31  ;;  %v9641_v31 = vld [vmem:[#allocation10 + $0x310] sm:$0xff]  }
 0x775   : > { %8332 = vmatpush3.bf16.msra.mxu0 %v9589_v32  ;;  %v9644_v32 = vld [vmem:[#allocation10 + $0x358] sm:$0xff]  }
 0x776   : > { %8333 = vmatprep.subr.bf16.mxu0 %v9592_v38  ;;  %v9643_v38 = vld [vmem:[#allocation10 + $0x398] sm:$0xff]  }
 0x777   : > { %8356 = vmatpush3.bf16.msra.mxu1 %v9591_v39  ;;  %v9645_v39 = vld [vmem:[#allocation10 + $0x318] sm:$0xff]  }
 0x778   : > { %8357 = vmatprep.subr.bf16.mxu1 %v9594_v41  ;;  %v9648_v41 = vld [vmem:[#allocation10 + $0x360] sm:$0xff]  }
 0x779   : > { %8334 = vmatpush3.bf16.msra.mxu0 %v9593_v42  ;;  %v9647_v42 = vld [vmem:[#allocation10 + $0x3a0] sm:$0xff]  }
 0x77a   : > { %8335 = vmatprep.subr.bf16.mxu0 %v9596_v43  ;;  %v9650_v43 = vld [vmem:[#allocation10 + $0x3e8] sm:$0xff]  }
 0x77b   : > { %8358 = vmatpush3.bf16.msra.mxu1 %v9595_v10  ;;  %v9649_v10 = vld [vmem:[#allocation10 + $0x320] sm:$0xff]  }
 0x77c   : > { %8387 = vmatprep.subr.bf16.mxu1 %v9598_v58  ;;  %v9652_v58 = vld [vmem:[#allocation10 + $0x368] sm:$0xff]  }
 0x77d   : > { %8336 = vmatpush3.bf16.msra.mxu0 %v9597_v44  ;;  %v9651_v44 = vld [vmem:[#allocation10 + $0x3a8] sm:$0xff]  }
 0x77e   : > { %6611 = vmatmul.mubr.bf16.vlgmr.msra.gmra.mrb[48].mxu1 %v6478_v46  ;;  %8365 = vmatprep.subr.bf16.mxu0 %v9600_v45  ;;  %v9654_v45 = vld [vmem:[#allocation10 + $0x3f0] sm:$0xff]  }
 0x77f   : > { %8388 = vmatpush3.bf16.msra.mxu1 %v9599_v47  ;;  %6958 = vmatprep.mubr.bf16.mxu1 %v6827_v49  ;;  %v9653_v47 = vld [vmem:[#allocation10 + $0x328] sm:$0xff]   ;;  %v9656_v46 = vld [vmem:[#allocation10 + $0x370] sm:$0xff]   ;;  %v9658_v49 = vld [vmem:[#allocation10 + $0x3f8] sm:$0xff]  }
 0x780   : > { %6437 = vmatmul.mubr.bf16.vlgmr.msra.gmra.mrb[40].mxu0 %v6304_v51  ;;  %8389 = vmatprep.subr.bf16.mxu1 %v9602_v48  ;;  %v9655_v48 = vld [vmem:[#allocation10 + $0x3b0] sm:$0xff]   ;;  %v9660_v51 = vld [vmem:[#allocation10 + $0x378] sm:$0xff]  }
 0x781   : > { %8366 = vmatpush3.bf16.msra.mxu0 %v9601_v50  ;;  %6784 = vmatprep.mubr.bf16.mxu0 %v6653_v53  ;;  %v9657_v50 = vld [vmem:[#allocation10 + $0x330] sm:$0xff]   ;;  %v9661_v53 = vld [vmem:[#allocation10 + $0x338] sm:$0xff]  }
 0x782   : > { %8367 = vmatprep.subr.bf16.mxu0 %v9604_v52  ;;  %v9659_v52 = vld [vmem:[#allocation10 + $0x3b8] sm:$0xff]  }
 0x783   : > { %8390 = vmatpush3.bf16.msra.mxu1 %v9603_v54  ;;  %v7174_v54 = vrot.slane %v10441_v12, 3  ;;  %v9664_v12 = vld [vmem:[%s10545_s11 + $0x10] sm:$0xff]  }
 0x784   : > { %8391 = vmatprep.subr.bf16.mxu1 %v9606_v55  ;;  %v7000_v55 = vrot.slane %v10431_v2, 3  ;;  %v9665_v2 = vld [vmem:[%s10545_s11 + $0x18] sm:$0xff]  }
 0x785   : > { %8368 = vmatpush3.bf16.msra.mxu0 %v9605_v56  ;;  %v9662_v56 = vld [vmem:[%s10545_s11] sm:$0xff]  }
 0x786   : > { %8369 = vmatprep.subr.bf16.mxu0 %v9608_v57  ;;  %v9898_v57 = vmov 0.0  }
 0x787   : > { %8392 = vmatpush3.bf16.msra.mxu1 %v9607_v37  ;;  %v9663_v37 = vld [vmem:[%s10545_s11 + $0x8] sm:$0xff]  }
 0x788   : > { %8393 = vmatprep.subr.bf16.mxu1 %v9610_v35  ;;  %v9666_v35 = vld [vmem:[%s10545_s11 + $0x20] sm:$0xff]  }
 0x789   : > { %8370 = vmatpush3.bf16.msra.mxu0 %v9609_v59  ;;  %v9667_v59 = vld [vmem:[%s10545_s11 + $0x28] sm:$0xff]  }
 0x78a   : > { %8371 = vmatprep.subr.bf16.mxu0 %v9612_v60  ;;  %v9668_v60 = vld [vmem:[%s10545_s11 + $0x30] sm:$0xff]  }
 0x78b   : > { %8394 = vmatpush3.bf16.msra.mxu1 %v9611_v33  ;;  %v9669_v33 = vld [vmem:[%s10545_s11 + $0x38] sm:$0xff]  }
 0x78c   : > { %8395 = vmatprep.subr.bf16.mxu1 %v9614_v61 }
 0x78d   : > { %8372 = vmatpush3.bf16.msra.mxu0 %v9613_v62 }
 0x78e   : > { %8373 = vmatprep.subr.bf16.mxu0 %v9616_v36 }
 0x78f   : > { %8396 = vmatpush3.bf16.msra.mxu1 %v9615_v63 }
 0x790   : > { %8397 = vmatprep.subr.bf16.mxu1 %v9618_v34 }
 0x791   : > { %8374 = vmatpush3.bf16.msra.mxu0 %v9617_v40 }
 0x792   : > { %8375 = vmatprep.subr.bf16.mxu0 %v9620_v1 }
 0x793   : > { %8398 = vmatpush3.bf16.msra.mxu1 %v9619_v3 }
 0x794   : > { %8399 = vmatprep.subr.bf16.mxu1 %v9622_v4 }
 0x795   : > { %8376 = vmatpush3.bf16.msra.mxu0 %v9621_v7 }
 0x796   : > { %8377 = vmatprep.subr.bf16.mxu0 %v9624_v8 }
 0x797   : > { %8400 = vmatpush3.bf16.msra.mxu1 %v9623_v11 }
 0x798   : > { %8401 = vmatprep.subr.bf16.mxu1 %v9626_v13 }
 0x799   : > { %8378 = vmatpush3.bf16.msra.mxu0 %v9625_v15 }
 0x79a   : > { %8379 = vmatprep.subr.bf16.mxu0 %v9628_v16 }
 0x79b   : > { %8402 = vmatpush3.bf16.msra.mxu1 %v9627_v17 }
 0x79c   : > { %8431 = vmatprep.subr.bf16.mxu1 %v9630_v18 }
 0x79d   : > { %8380 = vmatpush3.bf16.msra.mxu0 %v9629_v19 }
 0x79e   : > { %6959 = vmatmul.mubr.bf16.vlgmr.msra.gmra.mrb[52].mxu1 %v6826_v21  ;;  %8409 = vmatprep.subr.bf16.mxu0 %v9632_v20 }
 0x79f   : > { %8432 = vmatpush3.bf16.msra.mxu1 %v9631_v14  ;;  %7306 = vmatprep.mubr.bf16.mxu1 %v7175_v23 }
 0x7a0   : > { %6785 = vmatmul.mubr.bf16.vlgmr.msra.gmra.mrb[44].mxu0 %v6652_v6  ;;  %8433 = vmatprep.subr.bf16.mxu1 %v9634_v22 }
 0x7a1   : > { %8410 = vmatpush3.bf16.msra.mxu0 %v9633_v24  ;;  %7132 = vmatprep.mubr.bf16.mxu0 %v7001_v25 }
 0x7a2   : > { %8411 = vmatprep.subr.bf16.mxu0 %v9636_v0 }
 0x7a3   : > { %8434 = vmatpush3.bf16.msra.mxu1 %v9635_v26 }
 0x7a4   : > { %8435 = vmatprep.subr.bf16.mxu1 %v9638_v27 }
 0x7a5   : > { %8412 = vmatpush3.bf16.msra.mxu0 %v9637_v28 }
 0x7a6   : > { %8413 = vmatprep.subr.bf16.mxu0 %v9640_v29 }
 0x7a7   : > { %8436 = vmatpush3.bf16.msra.mxu1 %v9639_v9 }
 0x7a8   : > { %8437 = vmatprep.subr.bf16.mxu1 %v9642_v30 }
 0x7a9   : > { %8414 = vmatpush3.bf16.msra.mxu0 %v9641_v31 }
 0x7aa   : > { %8415 = vmatprep.subr.bf16.mxu0 %v9644_v32 }
 0x7ab   : > { %8438 = vmatpush3.bf16.msra.mxu1 %v9643_v38 }
 0x7ac   : > { %8439 = vmatprep.subr.bf16.mxu1 %v9646_v5 }
 0x7ad   : > { %8416 = vmatpush3.bf16.msra.mxu0 %v9645_v39 }
 0x7ae   : > { %8417 = vmatprep.subr.bf16.mxu0 %v9648_v41 }
 0x7af   : > { %8440 = vmatpush3.bf16.msra.mxu1 %v9647_v42 }
 0x7b0   : > { %8441 = vmatprep.subr.bf16.mxu1 %v9650_v43 }
 0x7b1   : > { %8418 = vmatpush3.bf16.msra.mxu0 %v9649_v10 }
 0x7b2   : > { %8419 = vmatprep.subr.bf16.mxu0 %v9652_v58 }
 0x7b3   : > { %8442 = vmatpush3.bf16.msra.mxu1 %v9651_v44 }
 0x7b4   : > { %8443 = vmatprep.subr.bf16.mxu1 %v9654_v45 }
 0x7b5   : > { %8420 = vmatpush3.bf16.msra.mxu0 %v9653_v47 }
 0x7b6   : > { %8421 = vmatprep.subr.bf16.mxu0 %v9656_v46  ;;  %v7315_v46 = vld [vmem:[%s10586_s19] sm:$0x1] }
 0x7b7   : > { %8444 = vmatpush3.bf16.msra.mxu1 %v9655_v48 }
 0x7b8   : > { %8445 = vmatprep.subr.bf16.mxu1 %v9658_v49 }
 0x7b9   : > { %8422 = vmatpush3.bf16.msra.mxu0 %v9657_v50 }
 0x7ba   : > { %8423 = vmatprep.subr.bf16.mxu0 %v9660_v51 }
 0x7bb   : > { %8446 = vmatpush3.bf16.msra.mxu1 %v9659_v52  ;;  %v7335_v52 = vld [vmem:[%s10587_s28] sm:$0x1] }
 0x7bd   : > { %8424 = vmatpush3.bf16.msra.mxu0 %v9661_v53 }
 0x7be   : > { %7307 = vmatmul.mubr.bf16.vlgmr.msra.gmra.mrb[56].mxu1 %v7174_v54  ;;  %8462 = vmatprep.subr.bf16.mxu0 %v9898_v57 }
 0x7c0   : > { %7133 = vmatmul.mubr.bf16.vlgmr.msra.gmra.mrb[48].mxu0 %v7000_v55 }
 0x7c1   : > { %8463 = vmatpush3.bf16.msra.mxu0 %v9662_v56  ;;  %8478 = vmatprep.mubr.msk.bf16.mxu0 %vm9899_vm4, %v9898_v57 }
 0x7c2   : > { %8464 = vmatprep.subr.bf16.mxu0 %v9898_v57 }
 0x7c5   : > { %8465 = vmatpush3.bf16.msra.mxu0 %v9663_v37 }
 0x7c6   : > { %8466 = vmatprep.subr.bf16.mxu0 %v9898_v57 }
 0x7c9   : > { %8467 = vmatpush3.bf16.msra.mxu0 %v9664_v12 }
 0x7ca   : > { %8468 = vmatprep.subr.bf16.mxu0 %v9898_v57 }
 0x7cd   : > { %8469 = vmatpush3.bf16.msra.mxu0 %v9665_v2 }
 0x7ce   : > { %8470 = vmatprep.subr.bf16.mxu0 %v9898_v57 }
 0x7d1   : > { %8471 = vmatpush3.bf16.msra.mxu0 %v9666_v35 }
 0x7d2   : > { %8472 = vmatprep.subr.bf16.mxu0 %v9898_v57 }
 0x7d5   : > { %8473 = vmatpush3.bf16.msra.mxu0 %v9667_v59 }
 0x7d6   : > { %8474 = vmatprep.subr.bf16.mxu0 %v9898_v57 }
 0x7d9   : > { %8475 = vmatpush3.bf16.msra.mxu0 %v9668_v60 }
 0x7da   : > { %8476 = vmatprep.subr.bf16.mxu0 %v9898_v57 }
 0x7dd   : > { %8477 = vmatpush3.bf16.msra.mxu0 %v9669_v33 }
 0x831   : > { %v8315_v61 = vpop.f32.mrb[44].mxu1 }
 0x832   : > { %v8316_v62 = vpop.f32.mrb[45].mxu1 }
 0x833   : > { %v8317_v36 = vadd.f32 %v8316_v62, %v8315_v61  ;;  %v8293_v63 = vpop.f32.mrb[36].mxu0  ;;  %v8318_v34 = vpop.f32.mrb[46].mxu1 }
 0x834   : > { %v8294_v40 = vpop.f32.mrb[37].mxu0  ;;  %v8319_v1 = vpop.f32.mrb[47].mxu1 }
 0x835   : > { %v8295_v3 = vadd.f32 %v8294_v40, %v8293_v63  ;;  %v8296_v4 = vpop.f32.mrb[38].mxu0 }
 0x836   : > { %v8297_v7 = vpop.f32.mrb[39].mxu0 }
 0x837   : > { %v6264_v8 = vadd.f32 %v8317_v36, %v8295_v3 }
 0x851   : > { %v8359_v11 = vpop.f32.mrb[48].mxu1 }
 0x852   : > { %v8360_v13 = vpop.f32.mrb[49].mxu1 }
 0x853   : > { %v8361_v15 = vadd.f32 %v8360_v13, %v8359_v11  ;;  %v8337_v16 = vpop.f32.mrb[40].mxu0  ;;  %v8362_v17 = vpop.f32.mrb[50].mxu1 }
 0x854   : > { %v8338_v18 = vpop.f32.mrb[41].mxu0  ;;  %v8363_v19 = vpop.f32.mrb[51].mxu1 }
 0x855   : > { %v8339_v20 = vadd.f32 %v8338_v18, %v8337_v16  ;;  %v8340_v14 = vpop.f32.mrb[42].mxu0 }
 0x856   : > { %v8341_v21 = vpop.f32.mrb[43].mxu0 }
 0x857   : > { %v6444_v22 = vadd.f32 %v8339_v20, %v6264_v8 }
 0x859   : > { %v6618_v23 = vadd.f32 %v8361_v15, %v6444_v22 }
 0x871   : > { %v8403_v24 = vpop.f32.mrb[52].mxu1 }
 0x872   : > { %v8404_v6 = vpop.f32.mrb[53].mxu1 }
 0x873   : > { %v8405_v0 = vadd.f32 %v8404_v6, %v8403_v24  ;;  %v8381_v25 = vpop.f32.mrb[44].mxu0  ;;  %v8406_v26 = vpop.f32.mrb[54].mxu1 }
 0x874   : > { %v8382_v27 = vpop.f32.mrb[45].mxu0  ;;  %v8407_v28 = vpop.f32.mrb[55].mxu1 }
 0x875   : > { %v8383_v29 = vadd.f32 %v8382_v27, %v8381_v25  ;;  %v8384_v9 = vpop.f32.mrb[46].mxu0 }
 0x876   : > { %v8385_v30 = vpop.f32.mrb[47].mxu0 }
 0x877   : > { %v6792_v31 = vadd.f32 %v8383_v29, %v6618_v23 }
 0x879   : > { %v6966_v32 = vadd.f32 %v8405_v0, %v6792_v31 }
 0x891   : > { %v8447_v38 = vpop.f32.mrb[56].mxu1 }
 0x892   : > { %v8448_v5 = vpop.f32.mrb[57].mxu1 }
 0x893   : > { %v8449_v39 = vadd.f32 %v8448_v5, %v8447_v38  ;;  %v8425_v41 = vpop.f32.mrb[48].mxu0  ;;  %v8450_v42 = vpop.f32.mrb[58].mxu1 }
 0x894   : > { %v8426_v43 = vpop.f32.mrb[49].mxu0  ;;  %v8451_v10 = vpop.f32.mrb[59].mxu1 }
 0x895   : > { %v8427_v58 = vadd.f32 %v8426_v43, %v8425_v41  ;;  %v8428_v44 = vpop.f32.mrb[50].mxu0 }
 0x896   : > { %v8429_v45 = vpop.f32.mrb[51].mxu0 }
 0x897   : > { %v7140_v47 = vadd.f32 %v8427_v58, %v6966_v32 }
 0x899   : > { %v7314_v48 = vadd.f32 %v8449_v39, %v7140_v47 }
 0x89b   : > { %v7316_v49 = vadd.f32 %v7315_v46, %v7314_v48 }
 0x89d   : > { %v7317_v50 = vmax.f32 %v7316_v49, 0.0 }
 0x89f   : > { %v7318_v51 = vpack.c.bf16 %v7317_v50, %v7317_v50 }
 0x8a1   : > { %8479 = vmatmul.mubr.bf16.vlgmr.msra.gmra.mrb[52].mxu0 %v7318_v51 }
 0x974   : > { %v7418_v53 = vpop.f32.mrb[52].mxu0 }
 0x975   : > { %v7419_v54 = vadd.f32 %v7418_v53, %v7335_v52  ;;  %v8480_v55 = vpop.f32.mrb[53].mxu0 }
 0x976   : > { %v7421_v56 = vpop.f32.mrb[54].mxu0 }
 0x977   : > { %7424 = vst [vmem:[%s505_s24] sm:$0x1] %v7419_v54  ;;  %v8481_v57 = vpop.f32.mrb[55].mxu0 }
 0x978   : > { %9823 = shalt.err (!%p9820_p6)
}
 0x979   : > { %s9824_s19 = scalar_lea.hbm %s10492_s27, 16  ;;  %s9828_s12 = scalar_lea.hbm %s10590_s14, 32 }
 0x97a   : > { %p9825_p0 = scmp.ne.s32.totalorder %s10492_s27, %s9824_s19  ;;  %p9829_p13 = scmp.lt.u32.totalorder %s10492_s27, %s10590_s14 }
 0x97b   : > { %p9830_p12 = scmp.lt.u32.totalorder %s9828_s12, %s9824_s19  ;;  %p9832_p2 = scmp.lt.u32.totalorder %s9824_s19, %s10492_s27 }
 0x97c   : > { %p9826_p9 = pnand %p9825_p0, %p10591_p3 }
 0x97d   : > { %p9831_p1 = por %p9830_p12, %p9829_p13 }
 0x97e   : > { %p9827_p10 = pneg %p9826_p9 }
 0x97f   : > { %p9833_p4 = por %p9832_p2, %p9831_p1 }
 0x981   : > { %p9834_p7 = pnand %p9833_p4, %p9827_p10 }
 0x983   : > { %9837 = shalt.err (!%p9834_p7)
}
 0x984   : > { %8671 = dma.vmem_to_hbm [thread:$0]  (%p10591_p3), %s10494_s22, 16, %s10492_s27, %s7426_s15  }
 0x985 PF: > { %s10592_s24 = sld [smem:[#allocation18_spill]]  ;;  %s10593_s10 = sld [smem:[#allocation16_spill]] }
 0x986   : > { %s10594_s30 = sld [smem:[#allocation22_spill]] }
 0x98b   : > { %p8703_p8 = scmp.ge.s32.totalorder %s10592_s24, 2  ;;  %s7450_s25 = sand.u32 1, %s10593_s10  }
 0x98c   : > { %p10595_p11 = scmp.ne.s32.totalorder %s10594_s30, 0  ;;  %s7451_s29 = scalar_lea.sflag [#allocation4], %s7450_s25 }
 0x98e   : > { %p8690_p5 = pnand %p8703_p8, %p10595_p11 }
 0x990   : > { %9867 = dma.done.wait (!%p8690_p5), %s7451_s29, 16  }
 0x991   : > { %9869 = vsyncadd (!%p8690_p5), %s7451_s29, 4294967280  ;;  %s10596_s28 = sld [smem:[#allocation19_spill]]  ;;  %s10597_s20 = sld [smem:[#allocation17_spill]] }
 0x992   : > { %s10598_s27 = sld [smem:[#allocation20_spill]]  ;;  %s10599_s25 = smov %s9876_s26 }
 0x997   : > { %p26_p6 = scmp.ge.s32.totalorder %s10596_s28, 4   ;;  %s10600_s26 = smov %s10597_s20 }
 0x999   :  { %28 = sbr.rel (!%p26_p6) target bundleno = 10 (0xa), region = 151 }
 0x9a0   :  { %7455 = vsyncpa [#allocation3], 1 }
 0x9a1   :  { %7457 = vsyncpa [#allocation3 + $0x1], 1 }
 0x9a2   :  { %7458 = vsyncpa [#allocation6], 1 }
 0x9a3   :  { %7459 = vsyncpa [#allocation9], 1 }
 0x9a4   :  { %7460 = vsyncpa [#allocation4], 1 }
 0x9a5   :  { %7462 = vsyncpa [#allocation4 + $0x1], 1 }

</bundles_post_ra>
